<compile_context>
chip_gen: v7x
topology: tpu7x:2x2x1
jax: 0.10.0
libtpu: 0.0.40
codegen_flags: <defaults>
</compile_context>

<pallas_src>
import functools
import math

import jax
import jax.numpy as jnp
from jax.experimental import pallas as pl
from jax.experimental.pallas import tpu as pltpu

FINAL_DIM = 3
HEAD_DIM = 2 * FINAL_DIM            # mu || logvar
IN_DIM = 28 * 28                    # 784
IN_PAD = 896                        # 7 * 128 (lane-dense padding of 784)
ENC_DIMS = [IN_DIM, 512, 256, 128]  # ELU after each of these linears
DEC_DIMS = [FINAL_DIM, 128, 256, 512]
BATCH_TILE = 256


def _elu(v):
    # ELU(alpha=1): v if v > 0 else exp(v) - 1 (safe exp argument).
    # NOTE: kept as exp(.)-1 (guaranteed Mosaic lowering) rather than expm1.
    return jnp.where(v > 0, v, jnp.exp(jnp.minimum(v, 0.0)) - 1.0)


def vae_kernel(
    # inputs
    x_ref, eps_ref,
    ew0, eb0, ew1, eb1, ew2, eb2,     # encoder hidden layers (ELU)
    wh, bh,                           # encoder head -> mu || logvar (fused)
    dw0, db0, dw1, db1, dw2, db2,     # decoder hidden layers (ELU)
    dw3, db3,                         # decoder output layer (Sigmoid)
    # outputs
    dec_ref, lat_ref,
):
    f32 = jnp.float32
    bf16 = jnp.bfloat16

    def dense(a_f32, w_ref, b_ref):
        # bf16 operands on the MXU, f32 accumulation, f32 bias/epilogue.
        return jnp.dot(a_f32.astype(bf16), w_ref[...],
                       preferred_element_type=f32) + b_ref[...]

    x = x_ref[...]                                    # (TB, IN_PAD) f32

    # ---------------- encoder ----------------
    h = _elu(dense(x, ew0, eb0))
    h = _elu(dense(h, ew1, eb1))
    h = _elu(dense(h, ew2, eb2))

    lat = dense(h, wh, bh)                            # (TB, 6) = mu || logvar
    mu = lat[:, :FINAL_DIM]
    logvar = lat[:, FINAL_DIM:]

    # ---------------- reparameterization ----------------
    z = mu + eps_ref[...] * jnp.exp(0.5 * logvar)

    # ---------------- decoder ----------------
    d = _elu(dense(z, dw0, db0))
    d = _elu(dense(d, dw1, db1))
    d = _elu(dense(d, dw2, db2))
    logits = dense(d, dw3, db3)
    # sigmoid with the reciprocal on the EUP slot
    d = pl.reciprocal(1.0 + jnp.exp(-logits), approx=True)

    dec_ref[...] = d
    lat_ref[...] = lat


def init_params(key):
    """PyTorch nn.Linear default init: U(-1/sqrt(fan_in), 1/sqrt(fan_in)).

    Weights stored as (in, out) so the kernel computes x @ W + b.
    """
    def linear(k, fan_in, fan_out):
        kw, kb = jax.random.split(k)
        bound = 1.0 / math.sqrt(fan_in)
        w = jax.random.uniform(kw, (fan_in, fan_out), jnp.float32, -bound, bound)
        b = jax.random.uniform(kb, (1, fan_out), jnp.float32, -bound, bound)
        return w, b

    keys = jax.random.split(key, 8)
    enc = [linear(keys[i], ENC_DIMS[i], ENC_DIMS[i + 1]) for i in range(3)]
    head = linear(keys[3], ENC_DIMS[-1], HEAD_DIM)        # fused mu||logvar head
    dec = [linear(keys[4 + i], DEC_DIMS[i], DEC_DIMS[i + 1]) for i in range(3)]
    dec_out = linear(keys[7], DEC_DIMS[-1], IN_DIM)

    params = []
    for w, b in enc + [head] + dec + [dec_out]:
        params += [w, b]
    return params


def prepare_params(params):
    """Cast weights to bf16 and pad the 784-dim weight/bias to 896 lanes."""
    (ew0, eb0, ew1, eb1, ew2, eb2, wh, bh,
     dw0, db0, dw1, db1, dw2, db2, dw3, db3) = params
    bf16 = jnp.bfloat16

    ew0p = jnp.zeros((IN_PAD, ENC_DIMS[1]), bf16).at[:IN_DIM].set(ew0.astype(bf16))
    dw3p = jnp.zeros((DEC_DIMS[-1], IN_PAD), bf16).at[:, :IN_DIM].set(dw3.astype(bf16))
    db3p = jnp.zeros((1, IN_PAD), jnp.float32).at[:, :IN_DIM].set(db3)

    return [
        ew0p, eb0,
        ew1.astype(bf16), eb1,
        ew2.astype(bf16), eb2,
        wh.astype(bf16), bh,
        dw0.astype(bf16), db0,
        dw1.astype(bf16), db1,
        dw2.astype(bf16), db2,
        dw3p, db3p,
    ]


@functools.partial(jax.jit, static_argnames=("return_latent",))
def vae_forward(x_nchw, eps, prepared_params, return_latent=True):
    B = x_nchw.shape[0]
    x_flat = x_nchw.reshape(B, IN_DIM).astype(jnp.float32)

    # Pad batch to a multiple of the batch tile (>= 8) and features to 896.
    b_pad = max(8, -(-B // 8) * 8)
    tb = min(BATCH_TILE, b_pad)
    b_pad = -(-b_pad // tb) * tb
    num_tiles = b_pad // tb

    x_p = jnp.zeros((b_pad, IN_PAD), jnp.float32).at[:B, :IN_DIM].set(x_flat)
    eps_p = jnp.zeros((b_pad, FINAL_DIM), jnp.float32).at[:B].set(
        eps.astype(jnp.float32))

    def row_map(i):
        return (i, 0)

    def const_map(i):          # weights/biases: same block every step -> resident
        return (0, 0)

    in_specs = [
        pl.BlockSpec((tb, IN_PAD), row_map),
        pl.BlockSpec((tb, FINAL_DIM), row_map),
    ] + [pl.BlockSpec(p.shape, const_map) for p in prepared_params]

    out_specs = (
        pl.BlockSpec((tb, IN_PAD), row_map),
        pl.BlockSpec((tb, HEAD_DIM), row_map),
    )

    decoded, latent = pl.pallas_call(
        vae_kernel,
        grid=(num_tiles,),
        out_shape=(
            jax.ShapeDtypeStruct((b_pad, IN_PAD), jnp.float32),
            jax.ShapeDtypeStruct((b_pad, HEAD_DIM), jnp.float32),
        ),
        in_specs=in_specs,
        out_specs=out_specs,
        compiler_params=pltpu.CompilerParams(
            dimension_semantics=("parallel",),   # v7x: split batch across TCs
            vmem_limit_bytes=24 << 20,
        ),
    )(x_p, eps_p, *prepared_params)

    decoded = decoded[:B, :IN_DIM].reshape(B, 1, 28, 28)
    mu = latent[:B, :FINAL_DIM]
    logvar = latent[:B, FINAL_DIM:]
    if return_latent:
        return decoded, mu, logvar
    return decoded


def vae_reference(x_nchw, eps, params):
    """Pure-JAX reference mirroring the kernel math (bf16 dots, f32 accum)."""
    (ew0, eb0, ew1, eb1, ew2, eb2, wh, bh,
     dw0, db0, dw1, db1, dw2, db2, dw3, db3) = params
    bf16 = jnp.bfloat16

    def dense(a, w, b):
        return jnp.dot(a.astype(bf16), w.astype(bf16),
                       preferred_element_type=jnp.float32) + b

    B = x_nchw.shape[0]
    x = x_nchw.reshape(B, IN_DIM).astype(jnp.float32)
    h = _elu(dense(x, ew0, eb0))
    h = _elu(dense(h, ew1, eb1))
    h = _elu(dense(h, ew2, eb2))
    lat = dense(h, wh, bh)
    mu, logvar = lat[:, :FINAL_DIM], lat[:, FINAL_DIM:]
    z = mu + eps * jnp.exp(0.5 * logvar)
    d = _elu(dense(z, dw0, db0))
    d = _elu(dense(d, dw1, db1))
    d = _elu(dense(d, dw2, db2))
    d = jax.nn.sigmoid(dense(d, dw3, db3))
    return d.reshape(B, 1, 28, 28), mu, logvar


if __name__ == "__main__":
    key = jax.random.PRNGKey(0)
    k_params, k_x, k_eps = jax.random.split(key, 3)

    B = 8
    x = jax.random.uniform(k_x, (B, 1, 28, 28), jnp.float32)      # NCHW input
    # epsilon = torch.randn_like(std): sampled outside the kernel, passed in.
    eps = jax.random.normal(k_eps, (B, FINAL_DIM), jnp.float32)

    params = init_params(k_params)
    prepared = prepare_params(params)

    decoded, mu, logvar = vae_forward(x, eps, prepared, return_latent=True)
    jax.block_until_ready((decoded, mu, logvar))

    # sanity check against a pure-JAX reference (same bf16 weight quantization;
    # tolerance loosened for bf16 dots + approx-reciprocal sigmoid)
    ref_dec, ref_mu, ref_lv = vae_reference(x, eps, params)
    assert decoded.shape == (B, 1, 28, 28)
    assert mu.shape == (B, FINAL_DIM) and logvar.shape == (B, FINAL_DIM)
    assert jnp.allclose(mu, ref_mu, atol=2e-2, rtol=2e-2)
    assert jnp.allclose(logvar, ref_lv, atol=2e-2, rtol=2e-2)
    assert jnp.allclose(decoded, ref_dec, atol=2e-2, rtol=2e-2)

    print("KERNEL_OK")
</pallas_src>

<mosaic_0001>
module attributes {stable_mosaic.version = 11 : i64} {
  func.func @vae_kernel(%arg0: i32, %arg1: memref<8x896xf32, #tpu.memory_space<vmem>>, %arg2: memref<8x3xf32, #tpu.memory_space<vmem>>, %arg3: memref<896x512xbf16, #tpu.memory_space<vmem>>, %arg4: memref<1x512xf32, #tpu.memory_space<vmem>>, %arg5: memref<512x256xbf16, #tpu.memory_space<vmem>>, %arg6: memref<1x256xf32, #tpu.memory_space<vmem>>, %arg7: memref<256x128xbf16, #tpu.memory_space<vmem>>, %arg8: memref<1x128xf32, #tpu.memory_space<vmem>>, %arg9: memref<128x6xbf16, #tpu.memory_space<vmem>>, %arg10: memref<1x6xf32, #tpu.memory_space<vmem>>, %arg11: memref<3x128xbf16, #tpu.memory_space<vmem>>, %arg12: memref<1x128xf32, #tpu.memory_space<vmem>>, %arg13: memref<128x256xbf16, #tpu.memory_space<vmem>>, %arg14: memref<1x256xf32, #tpu.memory_space<vmem>>, %arg15: memref<256x512xbf16, #tpu.memory_space<vmem>>, %arg16: memref<1x512xf32, #tpu.memory_space<vmem>>, %arg17: memref<512x896xbf16, #tpu.memory_space<vmem>>, %arg18: memref<1x896xf32, #tpu.memory_space<vmem>>, %arg19: memref<8x896xf32, #tpu.memory_space<vmem>>, %arg20: memref<8x6xf32, #tpu.memory_space<vmem>>) attributes {dimension_semantics = [#tpu.dimension_semantics<parallel>], iteration_bounds = array<i64: 1>, scalar_prefetch = 0 : i64, scratch_operands = 0 : i64, tpu.core_type = #tpu.core_type<tc>, window_params = [{transform_indices = @transform_0, window_bounds = array<i64: 8, 896>}, {transform_indices = @transform_1, window_bounds = array<i64: 8, 3>}, {pipeline_mode = #tpu.pipeline_mode<synchronous>, transform_indices = @transform_2, window_bounds = array<i64: 896, 512>}, {pipeline_mode = #tpu.pipeline_mode<synchronous>, transform_indices = @transform_3, window_bounds = array<i64: 1, 512>}, {pipeline_mode = #tpu.pipeline_mode<synchronous>, transform_indices = @transform_4, window_bounds = array<i64: 512, 256>}, {pipeline_mode = #tpu.pipeline_mode<synchronous>, transform_indices = @transform_5, window_bounds = array<i64: 1, 256>}, {pipeline_mode = #tpu.pipeline_mode<synchronous>, transform_indices = @transform_6, window_bounds = array<i64: 256, 128>}, {pipeline_mode = #tpu.pipeline_mode<synchronous>, transform_indices = @transform_7, window_bounds = array<i64: 1, 128>}, {pipeline_mode = #tpu.pipeline_mode<synchronous>, transform_indices = @transform_8, window_bounds = array<i64: 128, 6>}, {pipeline_mode = #tpu.pipeline_mode<synchronous>, transform_indices = @transform_9, window_bounds = array<i64: 1, 6>}, {pipeline_mode = #tpu.pipeline_mode<synchronous>, transform_indices = @transform_10, window_bounds = array<i64: 3, 128>}, {pipeline_mode = #tpu.pipeline_mode<synchronous>, transform_indices = @transform_11, window_bounds = array<i64: 1, 128>}, {pipeline_mode = #tpu.pipeline_mode<synchronous>, transform_indices = @transform_12, window_bounds = array<i64: 128, 256>}, {pipeline_mode = #tpu.pipeline_mode<synchronous>, transform_indices = @transform_13, window_bounds = array<i64: 1, 256>}, {pipeline_mode = #tpu.pipeline_mode<synchronous>, transform_indices = @transform_14, window_bounds = array<i64: 256, 512>}, {pipeline_mode = #tpu.pipeline_mode<synchronous>, transform_indices = @transform_15, window_bounds = array<i64: 1, 512>}, {pipeline_mode = #tpu.pipeline_mode<synchronous>, transform_indices = @transform_16, window_bounds = array<i64: 512, 896>}, {pipeline_mode = #tpu.pipeline_mode<synchronous>, transform_indices = @transform_17, window_bounds = array<i64: 1, 896>}, {transform_indices = @transform_18, window_bounds = array<i64: 8, 896>}, {transform_indices = @transform_19, window_bounds = array<i64: 8, 6>}]} {
    %c0 = arith.constant 0 : index
    %c0_0 = arith.constant 0 : index
    %0 = vector.load %arg1[%c0, %c0_0] : memref<8x896xf32, #tpu.memory_space<vmem>>, vector<8x896xf32>
    %1 = arith.truncf %0 : vector<8x896xf32> to vector<8x896xbf16>
    %c0_1 = arith.constant 0 : index
    %c0_2 = arith.constant 0 : index
    %2 = vector.load %arg3[%c0_1, %c0_2] : memref<896x512xbf16, #tpu.memory_space<vmem>>, vector<896x512xbf16>
    %cst = arith.constant dense<0.000000e+00> : vector<8x512xf32>
    %3 = tpu.matmul %1, %2, %cst {dimension_numbers = #tpu.dot_dimension_numbers<[1], [0], [0], [1], [0, 0, 1, 1], [], []>} : vector<8x896xbf16>, vector<896x512xbf16>, vector<8x512xf32> -> vector<8x512xf32>
    %c0_3 = arith.constant 0 : index
    %c0_4 = arith.constant 0 : index
    %4 = vector.load %arg4[%c0_3, %c0_4] : memref<1x512xf32, #tpu.memory_space<vmem>>, vector<1x512xf32>
    %5 = vector.broadcast %4 : vector<1x512xf32> to vector<8x512xf32>
    %6 = arith.addf %3, %5 : vector<8x512xf32>
    %cst_5 = arith.constant 0.000000e+00 : f32
    %7 = vector.broadcast %cst_5 : f32 to vector<8x512xf32>
    %8 = arith.cmpf ogt, %6, %7 : vector<8x512xf32>
    %cst_6 = arith.constant 0.000000e+00 : f32
    %9 = vector.broadcast %cst_6 : f32 to vector<8x512xf32>
    %10 = arith.minimumf %6, %9 : vector<8x512xf32>
    %11 = math.exp %10 : vector<8x512xf32>
    %cst_7 = arith.constant 1.000000e+00 : f32
    %12 = vector.broadcast %cst_7 : f32 to vector<8x512xf32>
    %13 = arith.subf %11, %12 : vector<8x512xf32>
    %14 = arith.select %8, %6, %13 : vector<8x512xi1>, vector<8x512xf32>
    %15 = arith.truncf %14 : vector<8x512xf32> to vector<8x512xbf16>
    %c0_8 = arith.constant 0 : index
    %c0_9 = arith.constant 0 : index
    %16 = vector.load %arg5[%c0_8, %c0_9] : memref<512x256xbf16, #tpu.memory_space<vmem>>, vector<512x256xbf16>
    %cst_10 = arith.constant dense<0.000000e+00> : vector<8x256xf32>
    %17 = tpu.matmul %15, %16, %cst_10 {dimension_numbers = #tpu.dot_dimension_numbers<[1], [0], [0], [1], [0, 0, 1, 1], [], []>} : vector<8x512xbf16>, vector<512x256xbf16>, vector<8x256xf32> -> vector<8x256xf32>
    %c0_11 = arith.constant 0 : index
    %c0_12 = arith.constant 0 : index
    %18 = vector.load %arg6[%c0_11, %c0_12] : memref<1x256xf32, #tpu.memory_space<vmem>>, vector<1x256xf32>
    %19 = vector.broadcast %18 : vector<1x256xf32> to vector<8x256xf32>
    %20 = arith.addf %17, %19 : vector<8x256xf32>
    %cst_13 = arith.constant 0.000000e+00 : f32
    %21 = vector.broadcast %cst_13 : f32 to vector<8x256xf32>
    %22 = arith.cmpf ogt, %20, %21 : vector<8x256xf32>
    %cst_14 = arith.constant 0.000000e+00 : f32
    %23 = vector.broadcast %cst_14 : f32 to vector<8x256xf32>
    %24 = arith.minimumf %20, %23 : vector<8x256xf32>
    %25 = math.exp %24 : vector<8x256xf32>
    %cst_15 = arith.constant 1.000000e+00 : f32
    %26 = vector.broadcast %cst_15 : f32 to vector<8x256xf32>
    %27 = arith.subf %25, %26 : vector<8x256xf32>
    %28 = arith.select %22, %20, %27 : vector<8x256xi1>, vector<8x256xf32>
    %29 = arith.truncf %28 : vector<8x256xf32> to vector<8x256xbf16>
    %c0_16 = arith.constant 0 : index
    %c0_17 = arith.constant 0 : index
    %30 = vector.load %arg7[%c0_16, %c0_17] : memref<256x128xbf16, #tpu.memory_space<vmem>>, vector<256x128xbf16>
    %cst_18 = arith.constant dense<0.000000e+00> : vector<8x128xf32>
    %31 = tpu.matmul %29, %30, %cst_18 {dimension_numbers = #tpu.dot_dimension_numbers<[1], [0], [0], [1], [0, 0, 1, 1], [], []>} : vector<8x256xbf16>, vector<256x128xbf16>, vector<8x128xf32> -> vector<8x128xf32>
    %c0_19 = arith.constant 0 : index
    %c0_20 = arith.constant 0 : index
    %32 = vector.load %arg8[%c0_19, %c0_20] : memref<1x128xf32, #tpu.memory_space<vmem>>, vector<1x128xf32>
    %33 = vector.broadcast %32 : vector<1x128xf32> to vector<8x128xf32>
    %34 = arith.addf %31, %33 : vector<8x128xf32>
    %cst_21 = arith.constant 0.000000e+00 : f32
    %35 = vector.broadcast %cst_21 : f32 to vector<8x128xf32>
    %36 = arith.cmpf ogt, %34, %35 : vector<8x128xf32>
    %cst_22 = arith.constant 0.000000e+00 : f32
    %37 = vector.broadcast %cst_22 : f32 to vector<8x128xf32>
    %38 = arith.minimumf %34, %37 : vector<8x128xf32>
    %39 = math.exp %38 : vector<8x128xf32>
    %cst_23 = arith.constant 1.000000e+00 : f32
    %40 = vector.broadcast %cst_23 : f32 to vector<8x128xf32>
    %41 = arith.subf %39, %40 : vector<8x128xf32>
    %42 = arith.select %36, %34, %41 : vector<8x128xi1>, vector<8x128xf32>
    %43 = arith.truncf %42 : vector<8x128xf32> to vector<8x128xbf16>
    %c0_24 = arith.constant 0 : index
    %c0_25 = arith.constant 0 : index
    %44 = vector.load %arg9[%c0_24, %c0_25] : memref<128x6xbf16, #tpu.memory_space<vmem>>, vector<128x6xbf16>
    %cst_26 = arith.constant dense<0.000000e+00> : vector<8x6xf32>
    %45 = tpu.matmul %43, %44, %cst_26 {dimension_numbers = #tpu.dot_dimension_numbers<[1], [0], [0], [1], [0, 0, 1, 1], [], []>} : vector<8x128xbf16>, vector<128x6xbf16>, vector<8x6xf32> -> vector<8x6xf32>
    %c0_27 = arith.constant 0 : index
    %c0_28 = arith.constant 0 : index
    %46 = vector.load %arg10[%c0_27, %c0_28] : memref<1x6xf32, #tpu.memory_space<vmem>>, vector<1x6xf32>
    %47 = vector.broadcast %46 : vector<1x6xf32> to vector<8x6xf32>
    %48 = arith.addf %45, %47 : vector<8x6xf32>
    %49 = vector.extract_strided_slice %48 {offsets = [0, 0], sizes = [8, 3], strides = [1, 1]} : vector<8x6xf32> to vector<8x3xf32>
    %50 = vector.extract_strided_slice %48 {offsets = [0, 3], sizes = [8, 3], strides = [1, 1]} : vector<8x6xf32> to vector<8x3xf32>
    %c0_29 = arith.constant 0 : index
    %c0_30 = arith.constant 0 : index
    %51 = vector.load %arg2[%c0_29, %c0_30] : memref<8x3xf32, #tpu.memory_space<vmem>>, vector<8x3xf32>
    %cst_31 = arith.constant 5.000000e-01 : f32
    %52 = vector.broadcast %cst_31 : f32 to vector<8x3xf32>
    %53 = arith.mulf %52, %50 : vector<8x3xf32>
    %54 = math.exp %53 : vector<8x3xf32>
    %55 = arith.mulf %51, %54 : vector<8x3xf32>
    %56 = arith.addf %49, %55 : vector<8x3xf32>
    %57 = arith.truncf %56 : vector<8x3xf32> to vector<8x3xbf16>
    %c0_32 = arith.constant 0 : index
    %c0_33 = arith.constant 0 : index
    %58 = vector.load %arg11[%c0_32, %c0_33] : memref<3x128xbf16, #tpu.memory_space<vmem>>, vector<3x128xbf16>
    %cst_34 = arith.constant dense<0.000000e+00> : vector<8x128xf32>
    %59 = tpu.matmul %57, %58, %cst_34 {dimension_numbers = #tpu.dot_dimension_numbers<[1], [0], [0], [1], [0, 0, 1, 1], [], []>} : vector<8x3xbf16>, vector<3x128xbf16>, vector<8x128xf32> -> vector<8x128xf32>
    %c0_35 = arith.constant 0 : index
    %c0_36 = arith.constant 0 : index
    %60 = vector.load %arg12[%c0_35, %c0_36] : memref<1x128xf32, #tpu.memory_space<vmem>>, vector<1x128xf32>
    %61 = vector.broadcast %60 : vector<1x128xf32> to vector<8x128xf32>
    %62 = arith.addf %59, %61 : vector<8x128xf32>
    %cst_37 = arith.constant 0.000000e+00 : f32
    %63 = vector.broadcast %cst_37 : f32 to vector<8x128xf32>
    %64 = arith.cmpf ogt, %62, %63 : vector<8x128xf32>
    %cst_38 = arith.constant 0.000000e+00 : f32
    %65 = vector.broadcast %cst_38 : f32 to vector<8x128xf32>
    %66 = arith.minimumf %62, %65 : vector<8x128xf32>
    %67 = math.exp %66 : vector<8x128xf32>
    %cst_39 = arith.constant 1.000000e+00 : f32
    %68 = vector.broadcast %cst_39 : f32 to vector<8x128xf32>
    %69 = arith.subf %67, %68 : vector<8x128xf32>
    %70 = arith.select %64, %62, %69 : vector<8x128xi1>, vector<8x128xf32>
    %71 = arith.truncf %70 : vector<8x128xf32> to vector<8x128xbf16>
    %c0_40 = arith.constant 0 : index
    %c0_41 = arith.constant 0 : index
    %72 = vector.load %arg13[%c0_40, %c0_41] : memref<128x256xbf16, #tpu.memory_space<vmem>>, vector<128x256xbf16>
    %cst_42 = arith.constant dense<0.000000e+00> : vector<8x256xf32>
    %73 = tpu.matmul %71, %72, %cst_42 {dimension_numbers = #tpu.dot_dimension_numbers<[1], [0], [0], [1], [0, 0, 1, 1], [], []>} : vector<8x128xbf16>, vector<128x256xbf16>, vector<8x256xf32> -> vector<8x256xf32>
    %c0_43 = arith.constant 0 : index
    %c0_44 = arith.constant 0 : index
    %74 = vector.load %arg14[%c0_43, %c0_44] : memref<1x256xf32, #tpu.memory_space<vmem>>, vector<1x256xf32>
    %75 = vector.broadcast %74 : vector<1x256xf32> to vector<8x256xf32>
    %76 = arith.addf %73, %75 : vector<8x256xf32>
    %cst_45 = arith.constant 0.000000e+00 : f32
    %77 = vector.broadcast %cst_45 : f32 to vector<8x256xf32>
    %78 = arith.cmpf ogt, %76, %77 : vector<8x256xf32>
    %cst_46 = arith.constant 0.000000e+00 : f32
    %79 = vector.broadcast %cst_46 : f32 to vector<8x256xf32>
    %80 = arith.minimumf %76, %79 : vector<8x256xf32>
    %81 = math.exp %80 : vector<8x256xf32>
    %cst_47 = arith.constant 1.000000e+00 : f32
    %82 = vector.broadcast %cst_47 : f32 to vector<8x256xf32>
    %83 = arith.subf %81, %82 : vector<8x256xf32>
    %84 = arith.select %78, %76, %83 : vector<8x256xi1>, vector<8x256xf32>
    %85 = arith.truncf %84 : vector<8x256xf32> to vector<8x256xbf16>
    %c0_48 = arith.constant 0 : index
    %c0_49 = arith.constant 0 : index
    %86 = vector.load %arg15[%c0_48, %c0_49] : memref<256x512xbf16, #tpu.memory_space<vmem>>, vector<256x512xbf16>
    %cst_50 = arith.constant dense<0.000000e+00> : vector<8x512xf32>
    %87 = tpu.matmul %85, %86, %cst_50 {dimension_numbers = #tpu.dot_dimension_numbers<[1], [0], [0], [1], [0, 0, 1, 1], [], []>} : vector<8x256xbf16>, vector<256x512xbf16>, vector<8x512xf32> -> vector<8x512xf32>
    %c0_51 = arith.constant 0 : index
    %c0_52 = arith.constant 0 : index
    %88 = vector.load %arg16[%c0_51, %c0_52] : memref<1x512xf32, #tpu.memory_space<vmem>>, vector<1x512xf32>
    %89 = vector.broadcast %88 : vector<1x512xf32> to vector<8x512xf32>
    %90 = arith.addf %87, %89 : vector<8x512xf32>
    %cst_53 = arith.constant 0.000000e+00 : f32
    %91 = vector.broadcast %cst_53 : f32 to vector<8x512xf32>
    %92 = arith.cmpf ogt, %90, %91 : vector<8x512xf32>
    %cst_54 = arith.constant 0.000000e+00 : f32
    %93 = vector.broadcast %cst_54 : f32 to vector<8x512xf32>
    %94 = arith.minimumf %90, %93 : vector<8x512xf32>
    %95 = math.exp %94 : vector<8x512xf32>
    %cst_55 = arith.constant 1.000000e+00 : f32
    %96 = vector.broadcast %cst_55 : f32 to vector<8x512xf32>
    %97 = arith.subf %95, %96 : vector<8x512xf32>
    %98 = arith.select %92, %90, %97 : vector<8x512xi1>, vector<8x512xf32>
    %99 = arith.truncf %98 : vector<8x512xf32> to vector<8x512xbf16>
    %c0_56 = arith.constant 0 : index
    %c0_57 = arith.constant 0 : index
    %100 = vector.load %arg17[%c0_56, %c0_57] : memref<512x896xbf16, #tpu.memory_space<vmem>>, vector<512x896xbf16>
    %cst_58 = arith.constant dense<0.000000e+00> : vector<8x896xf32>
    %101 = tpu.matmul %99, %100, %cst_58 {dimension_numbers = #tpu.dot_dimension_numbers<[1], [0], [0], [1], [0, 0, 1, 1], [], []>} : vector<8x512xbf16>, vector<512x896xbf16>, vector<8x896xf32> -> vector<8x896xf32>
    %c0_59 = arith.constant 0 : index
    %c0_60 = arith.constant 0 : index
    %102 = vector.load %arg18[%c0_59, %c0_60] : memref<1x896xf32, #tpu.memory_space<vmem>>, vector<1x896xf32>
    %103 = vector.broadcast %102 : vector<1x896xf32> to vector<8x896xf32>
    %104 = arith.addf %101, %103 : vector<8x896xf32>
    %cst_61 = arith.constant 0.000000e+00 : f32
    %105 = vector.broadcast %cst_61 : f32 to vector<8x896xf32>
    %106 = arith.subf %105, %104 : vector<8x896xf32>
    %107 = math.exp %106 : vector<8x896xf32>
    %cst_62 = arith.constant 1.000000e+00 : f32
    %108 = vector.broadcast %cst_62 : f32 to vector<8x896xf32>
    %109 = arith.addf %108, %107 : vector<8x896xf32>
    %110 = tpu.reciprocal %109 {approx = true} : vector<8x896xf32> -> vector<8x896xf32>
    %c0_63 = arith.constant 0 : index
    %c0_64 = arith.constant 0 : index
    %111 = vector.load %arg19[%c0_63, %c0_64] : memref<8x896xf32, #tpu.memory_space<vmem>>, vector<8x896xf32>
    tpu.vector_store %arg19[%c0_63, %c0_64], %110 {strides = array<i32>} : memref<8x896xf32, #tpu.memory_space<vmem>>, vector<8x896xf32>,
    %c0_65 = arith.constant 0 : index
    %c0_66 = arith.constant 0 : index
    %112 = vector.load %arg20[%c0_65, %c0_66] : memref<8x6xf32, #tpu.memory_space<vmem>>, vector<8x6xf32>
    tpu.vector_store %arg20[%c0_65, %c0_66], %48 {strides = array<i32>} : memref<8x6xf32, #tpu.memory_space<vmem>>, vector<8x6xf32>,
    return
  }
  func.func @transform_0(%arg0: i32) -> (i32, i32) {
    %c0_i32 = arith.constant 0 : i32
    %c0_i32_0 = arith.constant 0 : i32
    return %arg0, %c0_i32 : i32, i32
  }
  func.func @transform_1(%arg0: i32) -> (i32, i32) {
    %c0_i32 = arith.constant 0 : i32
    %c0_i32_0 = arith.constant 0 : i32
    return %arg0, %c0_i32 : i32, i32
  }
  func.func @transform_2(%arg0: i32) -> (i32, i32) {
    %c0_i32 = arith.constant 0 : i32
    %c0_i32_0 = arith.constant 0 : i32
    %c0_i32_1 = arith.constant 0 : i32
    return %c0_i32, %c0_i32_0 : i32, i32
  }
  func.func @transform_3(%arg0: i32) -> (i32, i32) {
    %c0_i32 = arith.constant 0 : i32
    %c0_i32_0 = arith.constant 0 : i32
    %c0_i32_1 = arith.constant 0 : i32
    return %c0_i32, %c0_i32_0 : i32, i32
  }
  func.func @transform_4(%arg0: i32) -> (i32, i32) {
    %c0_i32 = arith.constant 0 : i32
    %c0_i32_0 = arith.constant 0 : i32
    %c0_i32_1 = arith.constant 0 : i32
    return %c0_i32, %c0_i32_0 : i32, i32
  }
  func.func @transform_5(%arg0: i32) -> (i32, i32) {
    %c0_i32 = arith.constant 0 : i32
    %c0_i32_0 = arith.constant 0 : i32
    %c0_i32_1 = arith.constant 0 : i32
    return %c0_i32, %c0_i32_0 : i32, i32
  }
  func.func @transform_6(%arg0: i32) -> (i32, i32) {
    %c0_i32 = arith.constant 0 : i32
    %c0_i32_0 = arith.constant 0 : i32
    %c0_i32_1 = arith.constant 0 : i32
    return %c0_i32, %c0_i32_0 : i32, i32
  }
  func.func @transform_7(%arg0: i32) -> (i32, i32) {
    %c0_i32 = arith.constant 0 : i32
    %c0_i32_0 = arith.constant 0 : i32
    %c0_i32_1 = arith.constant 0 : i32
    return %c0_i32, %c0_i32_0 : i32, i32
  }
  func.func @transform_8(%arg0: i32) -> (i32, i32) {
    %c0_i32 = arith.constant 0 : i32
    %c0_i32_0 = arith.constant 0 : i32
    %c0_i32_1 = arith.constant 0 : i32
    return %c0_i32, %c0_i32_0 : i32, i32
  }
  func.func @transform_9(%arg0: i32) -> (i32, i32) {
    %c0_i32 = arith.constant 0 : i32
    %c0_i32_0 = arith.constant 0 : i32
    %c0_i32_1 = arith.constant 0 : i32
    return %c0_i32, %c0_i32_0 : i32, i32
  }
  func.func @transform_10(%arg0: i32) -> (i32, i32) {
    %c0_i32 = arith.constant 0 : i32
    %c0_i32_0 = arith.constant 0 : i32
    %c0_i32_1 = arith.constant 0 : i32
    return %c0_i32, %c0_i32_0 : i32, i32
  }
  func.func @transform_11(%arg0: i32) -> (i32, i32) {
    %c0_i32 = arith.constant 0 : i32
    %c0_i32_0 = arith.constant 0 : i32
    %c0_i32_1 = arith.constant 0 : i32
    return %c0_i32, %c0_i32_0 : i32, i32
  }
  func.func @transform_12(%arg0: i32) -> (i32, i32) {
    %c0_i32 = arith.constant 0 : i32
    %c0_i32_0 = arith.constant 0 : i32
    %c0_i32_1 = arith.constant 0 : i32
    return %c0_i32, %c0_i32_0 : i32, i32
  }
  func.func @transform_13(%arg0: i32) -> (i32, i32) {
    %c0_i32 = arith.constant 0 : i32
    %c0_i32_0 = arith.constant 0 : i32
    %c0_i32_1 = arith.constant 0 : i32
    return %c0_i32, %c0_i32_0 : i32, i32
  }
  func.func @transform_14(%arg0: i32) -> (i32, i32) {
    %c0_i32 = arith.constant 0 : i32
    %c0_i32_0 = arith.constant 0 : i32
    %c0_i32_1 = arith.constant 0 : i32
    return %c0_i32, %c0_i32_0 : i32, i32
  }
  func.func @transform_15(%arg0: i32) -> (i32, i32) {
    %c0_i32 = arith.constant 0 : i32
    %c0_i32_0 = arith.constant 0 : i32
    %c0_i32_1 = arith.constant 0 : i32
    return %c0_i32, %c0_i32_0 : i32, i32
  }
  func.func @transform_16(%arg0: i32) -> (i32, i32) {
    %c0_i32 = arith.constant 0 : i32
    %c0_i32_0 = arith.constant 0 : i32
    %c0_i32_1 = arith.constant 0 : i32
    return %c0_i32, %c0_i32_0 : i32, i32
  }
  func.func @transform_17(%arg0: i32) -> (i32, i32) {
    %c0_i32 = arith.constant 0 : i32
    %c0_i32_0 = arith.constant 0 : i32
    %c0_i32_1 = arith.constant 0 : i32
    return %c0_i32, %c0_i32_0 : i32, i32
  }
  func.func @transform_18(%arg0: i32) -> (i32, i32) {
    %c0_i32 = arith.constant 0 : i32
    %c0_i32_0 = arith.constant 0 : i32
    return %arg0, %c0_i32 : i32, i32
  }
  func.func @transform_19(%arg0: i32) -> (i32, i32) {
    %c0_i32 = arith.constant 0 : i32
    %c0_i32_0 = arith.constant 0 : i32
    return %arg0, %c0_i32 : i32, i32
  }
}

</mosaic_0001>

<bundles_post_ra>
// kernel: vae_forward.1
= control target key start
LH: loop header
LB: loop body
LE: loop exit
PB: predicated region body
PF: predicated region fallthrough
CT: control target
= control target key end

     0   :  { %s8141_s0 = inlined_call_operand.vmem [shape: f32[8,896], index: 0, kind: input, shape index: {}]   ;;  %s8142_s1 = inlined_call_operand.vmem [shape: f32[8,3], index: 1, kind: input, shape index: {}]   ;;  %s8143_s2 = inlined_call_operand.hbm [shape: bf16[896,512], index: 2, kind: input, shape index: {}]   ;;  %s8144_s3 = inlined_call_operand.hbm [shape: f32[1,512], index: 3, kind: input, shape index: {}]   ;;  %s8145_s4 = inlined_call_operand.vmem [shape: bf16[512,256], index: 4, kind: input, shape index: {}]   ;;  %s8146_s5 = inlined_call_operand.vmem [shape: f32[1,256], index: 5, kind: input, shape index: {}]   ;;  %s8147_s6 = inlined_call_operand.hbm [shape: bf16[256,128], index: 6, kind: input, shape index: {}]   ;;  %s8148_s7 = inlined_call_operand.vmem [shape: f32[1,128], index: 7, kind: input, shape index: {}]   ;;  %s8149_s8 = inlined_call_operand.vmem [shape: bf16[128,6], index: 8, kind: input, shape index: {}]   ;;  %s8150_s9 = inlined_call_operand.hbm [shape: f32[1,6], index: 9, kind: input, shape index: {}]   ;;  %s8151_s10 = inlined_call_operand.hbm [shape: bf16[3,128], index: 10, kind: input, shape index: {}]   ;;  %s8152_s11 = inlined_call_operand.hbm [shape: f32[1,128], index: 11, kind: input, shape index: {}]   ;;  %s8153_s12 = inlined_call_operand.hbm [shape: bf16[128,256], index: 12, kind: input, shape index: {}]   ;;  %s8154_s13 = inlined_call_operand.hbm [shape: f32[1,256], index: 13, kind: input, shape index: {}]   ;;  %s8155_s14 = inlined_call_operand.vmem [shape: bf16[256,512], index: 14, kind: input, shape index: {}]   ;;  %s8156_s15 = inlined_call_operand.hbm [shape: f32[1,512], index: 15, kind: input, shape index: {}]   ;;  %s8157_s16 = inlined_call_operand.hbm [shape: bf16[512,896], index: 16, kind: input, shape index: {}]   ;;  %s8158_s17 = inlined_call_operand.hbm [shape: f32[1,896], index: 17, kind: input, shape index: {}]   ;;  %s8159_s18 = inlined_call_operand.vmem [shape: f32[8,896], index: 18, kind: output, shape index: {0}]   ;;  %s8160_s19 = inlined_call_operand.vmem [shape: f32[8,6], index: 19, kind: output, shape index: {1}]  }
   0x1   :  { %8164 = sst [smem:[#allocation25_spill]] %s8141_s0 }
   0x2   :  { %8165 = sst [smem:[#allocation26_spill]] %s8142_s1 }
   0x3   :  { %8166 = sst [smem:[#allocation27_spill]] %s8143_s2 }
   0x4   :  { %8167 = sst [smem:[#allocation28_spill]] %s8144_s3 }
   0x5   :  { %25 = vsyncpa [#allocation3], 0 }
   0x6   :  { %26 = vsyncpa [#allocation5], 0 }
   0x7   :  { %27 = vsyncpa [#allocation8], 0 }
   0x8   :  { %28 = vsyncpa [#allocation11], 0 }
   0x9   :  { %29 = vsyncpa [#allocation14], 0 }
   0xa   :  { %30 = vsyncpa [#allocation17], 0  ;;  %s7322_s0 = smov [#allocation4]   ;;  %s7323_s20 = smov [#allocation7]  }
   0xb   :  { %s53_s30 = sshll.u32 %s7322_s0, 4  ;;  %s83_s21 = sshll.u32 %s7323_s20, 4  ;;  %s54_s30 = int_to_ptr.vmem [resolvable:$true] %s53_s30  ;;  %s84_s21 = int_to_ptr.vmem [resolvable:$true] %s83_s21 }
   0xc   :  { %s8168_s2 = sld [smem:[#allocation28_spill]] }
  0x12   :  { %s7068_s23 = scalar_lea.hbm %s8168_s2, 64 }
  0x13   :  { %p7069_p0 = scmp.ne.s32.totalorder %s8168_s2, %s7068_s23  ;;  %p7072_p1 = scmp.lt.u32.totalorder %s7068_s23, %s8168_s2 }
  0x15   :  { %p7074_p2 = pnand %p7072_p1, %p7069_p0 }
  0x17   :  { %7077 = shalt.err (!%p7074_p2)
}
  0x18   :  { %s7078_s27 = scalar_lea.vmem %s54_s30, 64  ;;  %p7083_p4 = scmp.lt.s32.totalorder %s54_s30, %s54_s30 }
  0x19   :  { %p7079_p3 = scmp.ne.s32.totalorder %s54_s30, %s7078_s27  ;;  %p7084_p5 = scmp.lt.s32.totalorder %s7078_s27, %s7078_s27 }
  0x1b   :  { %p7085_p6 = por %p7084_p5, %p7083_p4 }
  0x1d   :  { %p7086_p7 = pnand %p7085_p6, %p7079_p3 }
  0x1f   :  { %7089 = shalt.err (!%p7086_p7)
}
  0x20   :  { %56 = dma.hbm_to_vmem [thread:$0]  %s8168_s2, 64, %s54_s30, [#allocation5]  }
  0x21   :  { %s7090_s1 = scalar_lea.hbm %s8150_s9, 16 }
  0x22   :  { %p7091_p8 = scmp.ne.s32.totalorder %s8150_s9, %s7090_s1  ;;  %p7094_p9 = scmp.lt.u32.totalorder %s7090_s1, %s8150_s9 }
  0x24   :  { %p7096_p10 = pnand %p7094_p9, %p7091_p8 }
  0x26   :  { %7099 = shalt.err (!%p7096_p10)
}
  0x27   :  { %s7100_s3 = scalar_lea.vmem %s84_s21, 16  ;;  %s7104_s26 = scalar_lea.vmem %s84_s21, 32 }
  0x28   :  { %p7101_p11 = scmp.ne.s32.totalorder %s84_s21, %s7100_s3  ;;  %p7105_p12 = scmp.lt.s32.totalorder %s84_s21, %s84_s21 }
  0x29   :  { %p7106_p13 = scmp.lt.s32.totalorder %s7104_s26, %s7100_s3 }
  0x2b   :  { %p7107_p0 = por %p7106_p13, %p7105_p12 }
  0x2d   :  { %p7108_p1 = pnand %p7107_p0, %p7101_p11 }
  0x2f   :  { %7111 = shalt.err (!%p7108_p1)
}
  0x30   :  { %86 = dma.hbm_to_vmem [thread:$0]  %s8150_s9, 16, %s84_s21, [#allocation8]  }
  0x31   :  { %s7324_s27 = smov [#allocation10]   ;;  %s7325_s29 = smov [#allocation13]  }
  0x32   :  { %s103_s28 = sshll.u32 %s7324_s27, 4  ;;  %s125_s0 = sshll.u32 %s7325_s29, 4  ;;  %s104_s28 = int_to_ptr.vmem [resolvable:$true] %s103_s28  ;;  %s126_s0 = int_to_ptr.vmem [resolvable:$true] %s125_s0 }
  0x33   :  { %s7112_s22 = scalar_lea.hbm %s8152_s11, 16 }
  0x34   :  { %p7113_p2 = scmp.ne.s32.totalorder %s8152_s11, %s7112_s22  ;;  %p7116_p3 = scmp.lt.u32.totalorder %s7112_s22, %s8152_s11 }
  0x36   :  { %p7118_p4 = pnand %p7116_p3, %p7113_p2 }
  0x38   :  { %7121 = shalt.err (!%p7118_p4)
}
  0x39   :  { %s7122_s9 = scalar_lea.vmem %s104_s28, 16  ;;  %s7126_s21 = scalar_lea.vmem %s104_s28, 32 }
  0x3a   :  { %p7123_p5 = scmp.ne.s32.totalorder %s104_s28, %s7122_s9  ;;  %p7127_p6 = scmp.lt.s32.totalorder %s104_s28, %s104_s28 }
  0x3b   :  { %p7128_p7 = scmp.lt.s32.totalorder %s7126_s21, %s7122_s9 }
  0x3d   :  { %p7129_p8 = por %p7128_p7, %p7127_p6 }
  0x3f   :  { %p7130_p9 = pnand %p7129_p8, %p7123_p5 }
  0x41   :  { %7133 = shalt.err (!%p7130_p9)
}
  0x42   :  { %106 = dma.hbm_to_vmem [thread:$0]  %s8152_s11, 16, %s104_s28, [#allocation11]  }
  0x43   :  { %s7134_s29 = scalar_lea.hbm %s8154_s13, 32 }
  0x44   :  { %p7135_p10 = scmp.ne.s32.totalorder %s8154_s13, %s7134_s29  ;;  %p7138_p11 = scmp.lt.u32.totalorder %s7134_s29, %s8154_s13 }
  0x46   :  { %p7140_p12 = pnand %p7138_p11, %p7135_p10 }
  0x48   :  { %7143 = shalt.err (!%p7140_p12)
}
  0x49   :  { %s7144_s23 = scalar_lea.vmem %s126_s0, 32  ;;  %p7149_p0 = scmp.lt.s32.totalorder %s126_s0, %s126_s0 }
  0x4a   :  { %p7145_p13 = scmp.ne.s32.totalorder %s126_s0, %s7144_s23  ;;  %p7150_p1 = scmp.lt.s32.totalorder %s7144_s23, %s7144_s23 }
  0x4c   :  { %p7151_p2 = por %p7150_p1, %p7149_p0 }
  0x4e   :  { %p7152_p3 = pnand %p7151_p2, %p7145_p13 }
  0x50   :  { %7155 = shalt.err (!%p7152_p3)
}
  0x51   :  { %128 = dma.hbm_to_vmem [thread:$0]  %s8154_s13, 32, %s126_s0, [#allocation14]  }
  0x52   :  { %s7326_s25 = smov [#allocation16]   ;;  %s7156_s26 = scalar_lea.hbm %s8157_s16, 28672 }
  0x53   :  { %s146_s3 = sshll.u32 %s7326_s25, 4  ;;  %p7157_p4 = scmp.ne.s32.totalorder %s8157_s16, %s7156_s26  ;;  %s147_s3 = int_to_ptr.vmem [resolvable:$true] %s146_s3 }
  0x54   :  { %p7160_p5 = scmp.lt.u32.totalorder %s7156_s26, %s8157_s16 }
  0x56   :  { %p7162_p6 = pnand %p7160_p5, %p7157_p4 }
  0x58   :  { %7165 = shalt.err (!%p7162_p6)
}
  0x59   :  { %s7166_s20 = scalar_lea.vmem %s147_s3, 28672  ;;  %p7171_p8 = scmp.lt.s32.totalorder %s147_s3, %s147_s3 }
  0x5a   :  { %p7167_p7 = scmp.ne.s32.totalorder %s147_s3, %s7166_s20  ;;  %p7172_p9 = scmp.lt.s32.totalorder %s7166_s20, %s7166_s20 }
  0x5c   :  { %p7173_p10 = por %p7172_p9, %p7171_p8 }
  0x5e   :  { %p7174_p11 = pnand %p7173_p10, %p7167_p7 }
  0x60   :  { %7177 = shalt.err (!%p7174_p11)
}
  0x61   :  { %s7327_s13 = smov 448   ;;  %s7328_s0 = smov 28  }
  0x62   :  { %152 = dma.hbm_to_vmem [thread:$0]  %s8157_s16, 28672, %s147_s3, [#allocation17], %s7327_s13, %s7327_s13, %s7328_s0  }
  0x63   :  { %s7329_s24 = smov [#allocation2]   ;;  %s8169_s25 = sld [smem:[#allocation27_spill]] }
  0x64   :  { %s40_s23 = sshll.u32 %s7329_s24, 4  ;;  %s41_s23 = int_to_ptr.vmem [resolvable:$true] %s40_s23 }
  0x69   :  { %s7178_s9 = scalar_lea.hbm %s8169_s25, 28672 }
  0x6a   :  { %p7179_p12 = scmp.ne.s32.totalorder %s8169_s25, %s7178_s9  ;;  %p7182_p13 = scmp.lt.u32.totalorder %s7178_s9, %s8169_s25 }
  0x6c   :  { %p7184_p0 = pnand %p7182_p13, %p7179_p12 }
  0x6e   :  { %7187 = shalt.err (!%p7184_p0)
}
  0x6f   :  { %s7188_s27 = scalar_lea.vmem %s41_s23, 28672  ;;  %p7193_p2 = scmp.lt.s32.totalorder %s41_s23, %s41_s23 }
  0x70   :  { %p7189_p1 = scmp.ne.s32.totalorder %s41_s23, %s7188_s27  ;;  %p7194_p3 = scmp.lt.s32.totalorder %s7188_s27, %s7188_s27 }
  0x72   :  { %p7195_p4 = por %p7194_p3, %p7193_p2 }
  0x74   :  { %p7196_p5 = pnand %p7195_p4, %p7189_p1 }
  0x76   :  { %7199 = shalt.err (!%p7196_p5)
}
  0x77   :  { %s7330_s16 = smov 256   ;;  %s7331_s3 = smov 16  }
  0x78   :  { %46 = dma.hbm_to_vmem [thread:$0]  %s8169_s25, 28672, %s41_s23, [#allocation3], %s7330_s16, %s7330_s16, %s7331_s3  }
  0x79   :  { %s7332_s13 = smov [#allocation6]   ;;  %s7200_s24 = scalar_lea.hbm %s8147_s6, 2048 }
  0x7a   :  { %s66_s0 = sshll.u32 %s7332_s13, 4  ;;  %p7201_p6 = scmp.ne.s32.totalorder %s8147_s6, %s7200_s24  ;;  %s67_s0 = int_to_ptr.vmem [resolvable:$true] %s66_s0 }
  0x7b   :  { %p7204_p7 = scmp.lt.u32.totalorder %s7200_s24, %s8147_s6 }
  0x7d   :  { %p7206_p8 = pnand %p7204_p7, %p7201_p6 }
  0x7f   :  { %7209 = shalt.err (!%p7206_p8)
}
  0x80   :  { %s7210_s26 = scalar_lea.vmem %s67_s0, 2048  ;;  %p7215_p10 = scmp.lt.s32.totalorder %s67_s0, %s67_s0 }
  0x81   :  { %p7211_p9 = scmp.ne.s32.totalorder %s67_s0, %s7210_s26  ;;  %p7216_p11 = scmp.lt.s32.totalorder %s7210_s26, %s7210_s26 }
  0x83   :  { %p7217_p12 = por %p7216_p11, %p7215_p10 }
  0x85   :  { %p7218_p13 = pnand %p7217_p12, %p7211_p9 }
  0x87   :  { %7221 = shalt.err (!%p7218_p13)
}
  0x88   :  { %s7333_s23 = smov 64   ;;  %s7334_s25 = smov 4  }
  0x89   :  { %72 = dma.hbm_to_vmem [thread:$0]  %s8147_s6, 2048, %s67_s0, [#allocation5], %s7333_s23, %s7333_s23, %s7334_s25  }
  0x8a   :  { %s7335_s27 = smov [#allocation9]   ;;  %s7336_s3 = smov [#allocation12]  }
  0x8b   :  { %s93_s16 = sshll.u32 %s7335_s27, 4  ;;  %s112_s29 = sshll.u32 %s7336_s3, 4  ;;  %s94_s16 = int_to_ptr.vmem [resolvable:$true] %s93_s16  ;;  %s113_s29 = int_to_ptr.vmem [resolvable:$true] %s112_s29 }
  0x8c   :  { %s7222_s1 = scalar_lea.hbm %s8151_s10, 32 }
  0x8d   :  { %p7223_p0 = scmp.ne.s32.totalorder %s8151_s10, %s7222_s1  ;;  %p7226_p1 = scmp.lt.u32.totalorder %s7222_s1, %s8151_s10 }
  0x8f   :  { %p7228_p2 = pnand %p7226_p1, %p7223_p0 }
  0x91   :  { %7231 = shalt.err (!%p7228_p2)
}
  0x92   :  { %s7232_s6 = scalar_lea.vmem %s94_s16, 32  ;;  %p7237_p4 = scmp.lt.s32.totalorder %s94_s16, %s94_s16 }
  0x93   :  { %p7233_p3 = scmp.ne.s32.totalorder %s94_s16, %s7232_s6  ;;  %p7238_p5 = scmp.lt.s32.totalorder %s7232_s6, %s7232_s6 }
  0x95   :  { %p7239_p6 = por %p7238_p5, %p7237_p4 }
  0x97   :  { %p7240_p7 = pnand %p7239_p6, %p7233_p3 }
  0x99   :  { %7243 = shalt.err (!%p7240_p7)
}
  0x9a   :  { %96 = dma.hbm_to_vmem [thread:$0]  %s8151_s10, 32, %s94_s16, [#allocation8]  }
  0x9b   :  { %s7244_s23 = scalar_lea.hbm %s8153_s12, 2048 }
  0x9c   :  { %p7245_p8 = scmp.ne.s32.totalorder %s8153_s12, %s7244_s23  ;;  %p7248_p9 = scmp.lt.u32.totalorder %s7244_s23, %s8153_s12 }
  0x9e   :  { %p7250_p10 = pnand %p7248_p9, %p7245_p8 }
  0xa0   :  { %7253 = shalt.err (!%p7250_p10)
}
  0xa1   :  { %s7254_s3 = scalar_lea.vmem %s113_s29, 2048  ;;  %p7259_p12 = scmp.lt.s32.totalorder %s113_s29, %s113_s29 }
  0xa2   :  { %p7255_p11 = scmp.ne.s32.totalorder %s113_s29, %s7254_s3  ;;  %p7260_p13 = scmp.lt.s32.totalorder %s7254_s3, %s7254_s3 }
  0xa4   :  { %p7261_p0 = por %p7260_p13, %p7259_p12 }
  0xa6   :  { %p7262_p1 = pnand %p7261_p0, %p7255_p11 }
  0xa8   :  { %7265 = shalt.err (!%p7262_p1)
}
  0xa9   :  { %s7337_s10 = smov 128   ;;  %s7338_s16 = smov 8  }
  0xaa   :  { %118 = dma.hbm_to_vmem [thread:$0]  %s8153_s12, 2048, %s113_s29, [#allocation11], %s7337_s10, %s7337_s10, %s7338_s16  }
  0xab   :  { %s7339_s1 = smov [#allocation15]   ;;  %s7340_s24 = smov [#allocation18]  }
  0xac   :  { %s137_s22 = sshll.u32 %s7339_s1, 4  ;;  %s159_s11 = sshll.u32 %s7340_s24, 4  ;;  %s138_s22 = int_to_ptr.vmem [resolvable:$true] %s137_s22  ;;  %s160_s11 = int_to_ptr.vmem [resolvable:$true] %s159_s11 }
  0xad   :  { %s7266_s0 = scalar_lea.hbm %s8156_s15, 64 }
  0xae   :  { %p7267_p2 = scmp.ne.s32.totalorder %s8156_s15, %s7266_s0  ;;  %p7270_p3 = scmp.lt.u32.totalorder %s7266_s0, %s8156_s15 }
  0xb0   :  { %p7272_p4 = pnand %p7270_p3, %p7267_p2 }
  0xb2   :  { %7275 = shalt.err (!%p7272_p4)
}
  0xb3   :  { %s7276_s12 = scalar_lea.vmem %s138_s22, 64  ;;  %p7281_p6 = scmp.lt.s32.totalorder %s138_s22, %s138_s22 }
  0xb4   :  { %p7277_p5 = scmp.ne.s32.totalorder %s138_s22, %s7276_s12  ;;  %p7282_p7 = scmp.lt.s32.totalorder %s7276_s12, %s7276_s12 }
  0xb6   :  { %p7283_p8 = por %p7282_p7, %p7281_p6 }
  0xb8   :  { %p7284_p9 = pnand %p7283_p8, %p7277_p5 }
  0xba   :  { %7287 = shalt.err (!%p7284_p9)
}
  0xbb   :  { %140 = dma.hbm_to_vmem [thread:$0]  %s8156_s15, 64, %s138_s22, [#allocation14]  }
  0xbc   :  { %s7288_s27 = scalar_lea.hbm %s8158_s17, 112 }
  0xbd   :  { %p7289_p10 = scmp.ne.s32.totalorder %s8158_s17, %s7288_s27  ;;  %p7292_p11 = scmp.lt.u32.totalorder %s7288_s27, %s8158_s17 }
  0xbf   :  { %p7294_p12 = pnand %p7292_p11, %p7289_p10 }
  0xc1   :  { %7297 = shalt.err (!%p7294_p12)
}
  0xc2   :  { %s7298_s13 = scalar_lea.vmem %s160_s11, 112  ;;  %s7302_s1 = scalar_lea.vmem %s160_s11, 128 }
  0xc3   :  { %p7299_p13 = scmp.ne.s32.totalorder %s160_s11, %s7298_s13  ;;  %p7303_p0 = scmp.lt.s32.totalorder %s160_s11, %s160_s11 }
  0xc4   :  { %p7304_p1 = scmp.lt.s32.totalorder %s7302_s1, %s7298_s13 }
  0xc6   :  { %p7305_p2 = por %p7304_p1, %p7303_p0 }
  0xc8   :  { %p7306_p3 = pnand %p7305_p2, %p7299_p13 }
  0xca   :  { %7309 = shalt.err (!%p7306_p3)
}
  0xcb   :  { %162 = dma.hbm_to_vmem [thread:$0]  %s8158_s17, 112, %s160_s11, [#allocation17]  }
  0xcc   :  { %7310 = dma.done.wait [#allocation3], 28672  }
  0xcd   :  { %7311 = vsyncadd [#allocation3], 4294938624 }
  0xce   :  { %7312 = dma.done.wait [#allocation5], 2112  }
  0xcf   :  { %7313 = vsyncadd [#allocation5], 4294965184 }
  0xd0   :  { %7314 = dma.done.wait [#allocation8], 48  }
  0xd1   :  { %7315 = vsyncadd [#allocation8], 4294967248 }
  0xd2   :  { %7316 = dma.done.wait [#allocation11], 2064  }
  0xd3   :  { %7317 = vsyncadd [#allocation11], 4294965232 }
  0xd4   :  { %7318 = dma.done.wait [#allocation14], 96  }
  0xd5   :  { %7319 = vsyncadd [#allocation14], 4294967200 }
  0xd6   :  { %7320 = dma.done.wait [#allocation17], 28784  }
  0xd7   :  { %7321 = vsyncadd [#allocation17], 4294938512  ;;  %v6114_v0 = vld [vmem:[#allocation2 + $0x4] ss:$16 sps:$4 sm:$0xff]   ;;  %v6116_v1 = vld [vmem:[#allocation2 + $0xc] ss:$16 sps:$4 sm:$0xff]  }
  0xd8   :  { %1577 = vmatprep.subr.bf16.mxu0 %v6114_v0  ;;  %v6118_v2 = vld [vmem:[#allocation2] ss:$16 sps:$4 sm:$0xff]   ;;  %v6119_v3 = vld [vmem:[#allocation2 + $0x8] ss:$16 sps:$4 sm:$0xff]   ;;  %1741 = vmatprep.subr.bf16.mxu1 %v6116_v1  ;;  %v6120_v4 = vld [vmem:[#allocation2 + $0x24] ss:$16 sps:$4 sm:$0xff]  }
  0xd9   :  { %1578 = vmatpush1.bf16.msra.mxu0 %v6118_v2  ;;  %1742 = vmatpush1.bf16.msra.mxu1 %v6119_v3  ;;  %v6122_v5 = vld [vmem:[#allocation2 + $0x2c] ss:$16 sps:$4 sm:$0xff]   ;;  %v6124_v6 = vld [vmem:[#allocation2 + $0x20] ss:$16 sps:$4 sm:$0xff]   ;;  %v6125_v7 = vld [vmem:[#allocation2 + $0x28] ss:$16 sps:$4 sm:$0xff]  }
  0xda   :  { %1579 = vmatprep.subr.bf16.mxu0 %v6120_v4  ;;  %1743 = vmatprep.subr.bf16.mxu1 %v6122_v5  ;;  %v6126_v8 = vld [vmem:[#allocation2 + $0x44] ss:$16 sps:$4 sm:$0xff]   ;;  %v6128_v9 = vld [vmem:[#allocation2 + $0x4c] ss:$16 sps:$4 sm:$0xff]   ;;  %v6130_v10 = vld [vmem:[#allocation2 + $0x40] ss:$16 sps:$4 sm:$0xff]  }
  0xdb   :  { %v6131_v11 = vld [vmem:[#allocation2 + $0x48] ss:$16 sps:$4 sm:$0xff]   ;;  %v6132_v12 = vld [vmem:[#allocation2 + $0x64] ss:$16 sps:$4 sm:$0xff]   ;;  %v6134_v13 = vld [vmem:[#allocation2 + $0x6c] ss:$16 sps:$4 sm:$0xff]  }
  0xdc   :  { %v6136_v14 = vld [vmem:[#allocation2 + $0x60] ss:$16 sps:$4 sm:$0xff]   ;;  %v6137_v15 = vld [vmem:[#allocation2 + $0x68] ss:$16 sps:$4 sm:$0xff]   ;;  %v6138_v16 = vld [vmem:[#allocation2 + $0x84] ss:$16 sps:$4 sm:$0xff]  }
  0xdd   :  { %1580 = vmatpush1.bf16.msra.mxu0 %v6124_v6  ;;  %1744 = vmatpush1.bf16.msra.mxu1 %v6125_v7  ;;  %v6140_v17 = vld [vmem:[#allocation2 + $0x8c] ss:$16 sps:$4 sm:$0xff]   ;;  %v6142_v18 = vld [vmem:[#allocation2 + $0x80] ss:$16 sps:$4 sm:$0xff]   ;;  %v6143_v19 = vld [vmem:[#allocation2 + $0x88] ss:$16 sps:$4 sm:$0xff]  }
  0xde   :  { %1581 = vmatprep.subr.bf16.mxu0 %v6126_v8  ;;  %1745 = vmatprep.subr.bf16.mxu1 %v6128_v9  ;;  %v6144_v20 = vld [vmem:[#allocation2 + $0xa4] ss:$16 sps:$4 sm:$0xff]   ;;  %v6146_v21 = vld [vmem:[#allocation2 + $0xac] ss:$16 sps:$4 sm:$0xff]   ;;  %v6148_v22 = vld [vmem:[#allocation2 + $0xa0] ss:$16 sps:$4 sm:$0xff]  }
  0xdf   :  { %v6149_v23 = vld [vmem:[#allocation2 + $0xa8] ss:$16 sps:$4 sm:$0xff]   ;;  %v6150_v24 = vld [vmem:[#allocation2 + $0xc4] ss:$16 sps:$4 sm:$0xff]   ;;  %v6152_v25 = vld [vmem:[#allocation2 + $0xcc] ss:$16 sps:$4 sm:$0xff]  }
  0xe0   :  { %v6154_v26 = vld [vmem:[#allocation2 + $0xc0] ss:$16 sps:$4 sm:$0xff]   ;;  %v6155_v27 = vld [vmem:[#allocation2 + $0xc8] ss:$16 sps:$4 sm:$0xff]   ;;  %v6156_v28 = vld [vmem:[#allocation2 + $0xe4] ss:$16 sps:$4 sm:$0xff]  }
  0xe1   :  { %1582 = vmatpush1.bf16.msra.mxu0 %v6130_v10  ;;  %1746 = vmatpush1.bf16.msra.mxu1 %v6131_v11  ;;  %v6158_v29 = vld [vmem:[#allocation2 + $0xec] ss:$16 sps:$4 sm:$0xff]   ;;  %v6160_v30 = vld [vmem:[#allocation2 + $0xe0] ss:$16 sps:$4 sm:$0xff]   ;;  %v6161_v31 = vld [vmem:[#allocation2 + $0xe8] ss:$16 sps:$4 sm:$0xff]  }
  0xe2   :  { %1583 = vmatprep.subr.bf16.mxu0 %v6132_v12  ;;  %1747 = vmatprep.subr.bf16.mxu1 %v6134_v13  ;;  %v6162_v32 = vld [vmem:[#allocation2 + $0x104] ss:$16 sps:$4 sm:$0xff]   ;;  %v6164_v33 = vld [vmem:[#allocation2 + $0x10c] ss:$16 sps:$4 sm:$0xff]   ;;  %v6166_v34 = vld [vmem:[#allocation2 + $0x100] ss:$16 sps:$4 sm:$0xff]  }
  0xe3   :  { %v6167_v35 = vld [vmem:[#allocation2 + $0x108] ss:$16 sps:$4 sm:$0xff]   ;;  %v6168_v36 = vld [vmem:[#allocation2 + $0x124] ss:$16 sps:$4 sm:$0xff]   ;;  %v6170_v37 = vld [vmem:[#allocation2 + $0x12c] ss:$16 sps:$4 sm:$0xff]  }
  0xe4   :  { %v6172_v38 = vld [vmem:[#allocation2 + $0x120] ss:$16 sps:$4 sm:$0xff]   ;;  %v6173_v39 = vld [vmem:[#allocation2 + $0x128] ss:$16 sps:$4 sm:$0xff]   ;;  %v6174_v40 = vld [vmem:[#allocation2 + $0x144] ss:$16 sps:$4 sm:$0xff]  }
  0xe5   :  { %1584 = vmatpush1.bf16.msra.mxu0 %v6136_v14  ;;  %1748 = vmatpush1.bf16.msra.mxu1 %v6137_v15  ;;  %v6176_v41 = vld [vmem:[#allocation2 + $0x14c] ss:$16 sps:$4 sm:$0xff]   ;;  %v6178_v42 = vld [vmem:[#allocation2 + $0x140] ss:$16 sps:$4 sm:$0xff]   ;;  %v6179_v43 = vld [vmem:[#allocation2 + $0x148] ss:$16 sps:$4 sm:$0xff]  }
  0xe6   :  { %1585 = vmatprep.subr.bf16.mxu0 %v6138_v16  ;;  %1749 = vmatprep.subr.bf16.mxu1 %v6140_v17  ;;  %v6180_v44 = vld [vmem:[#allocation2 + $0x164] ss:$16 sps:$4 sm:$0xff]   ;;  %v6182_v45 = vld [vmem:[#allocation2 + $0x16c] ss:$16 sps:$4 sm:$0xff]   ;;  %s8170_s11 = sld [smem:[#allocation25_spill]]  ;;  %vm7343_vm6 = vmmov 0  }
  0xe7   :  { %v6184_v47 = vld [vmem:[#allocation2 + $0x160] ss:$16 sps:$4 sm:$0xff]   ;;  %v6185_v49 = vld [vmem:[#allocation2 + $0x168] ss:$16 sps:$4 sm:$0xff]   ;;  %v6186_v50 = vld [vmem:[#allocation2 + $0x184] ss:$16 sps:$4 sm:$0xff]  }
  0xe8   :  { %v6188_v51 = vld [vmem:[#allocation2 + $0x18c] ss:$16 sps:$4 sm:$0xff]   ;;  %v6190_v52 = vld [vmem:[#allocation2 + $0x180] ss:$16 sps:$4 sm:$0xff]   ;;  %v6191_v53 = vld [vmem:[#allocation2 + $0x188] ss:$16 sps:$4 sm:$0xff]  }
  0xe9   :  { %1586 = vmatpush1.bf16.msra.mxu0 %v6142_v18  ;;  %1750 = vmatpush1.bf16.msra.mxu1 %v6143_v19  ;;  %v6192_v54 = vld [vmem:[#allocation2 + $0x1a4] ss:$16 sps:$4 sm:$0xff]   ;;  %v6194_v55 = vld [vmem:[#allocation2 + $0x1ac] ss:$16 sps:$4 sm:$0xff]   ;;  %v6196_v56 = vld [vmem:[#allocation2 + $0x1a0] ss:$16 sps:$4 sm:$0xff]  }
  0xea   :  { %1587 = vmatprep.subr.bf16.mxu0 %v6144_v20  ;;  %1751 = vmatprep.subr.bf16.mxu1 %v6146_v21  ;;  %v6197_v57 = vld [vmem:[#allocation2 + $0x1a8] ss:$16 sps:$4 sm:$0xff]   ;;  %v6198_v58 = vld [vmem:[#allocation2 + $0x1c4] ss:$16 sps:$4 sm:$0xff]   ;;  %v6200_v59 = vld [vmem:[#allocation2 + $0x1cc] ss:$16 sps:$4 sm:$0xff]  }
  0xeb   :  { %v6202_v60 = vld [vmem:[#allocation2 + $0x1c0] ss:$16 sps:$4 sm:$0xff]   ;;  %v6203_v61 = vld [vmem:[#allocation2 + $0x1c8] ss:$16 sps:$4 sm:$0xff]   ;;  %v6204_v62 = vld [vmem:[#allocation2 + $0x1e4] ss:$16 sps:$4 sm:$0xff]  }
  0xec   :  { %v198_v46 = vld [vmem:[%s8170_s11 + $0x8] sm:$0xff]  ;;  %v6208_v0 = vld [vmem:[#allocation2 + $0x1e0] ss:$16 sps:$4 sm:$0xff]   ;;  %v6212_v3 = vld [vmem:[#allocation2 + $0x204] ss:$16 sps:$4 sm:$0xff]   ;;  %vm2741_vm8 = vcmask 1040384  }
  0xed   :  { %1588 = vmatpush1.bf16.msra.mxu0 %v6148_v22  ;;  %1752 = vmatpush1.bf16.msra.mxu1 %v6149_v23  ;;  %v205_v48 = vpack.c.bf16 %v198_v46, %v198_v46  ;;  %v6206_v63 = vld [vmem:[#allocation2 + $0x1ec] ss:$16 sps:$4 sm:$0xff]   ;;  %v6209_v1 = vld [vmem:[#allocation2 + $0x1e8] ss:$16 sps:$4 sm:$0xff]   ;;  %v197_v2 = vld [vmem:[%s8170_s11] sm:$0xff]  ;;  %vm2742_vm9 = vcmask 1041408  }
  0xee   :  { %1589 = vmatprep.subr.bf16.mxu0 %v6150_v24  ;;  %1753 = vmatprep.subr.bf16.mxu1 %v6152_v25  ;;  %v6215_v4 = vld [vmem:[#allocation2 + $0x20c] ss:$16 sps:$4 sm:$0xff]   ;;  %v204_v5 = vpack.c.bf16 %v197_v2, %v197_v2  ;;  %v6210_v6 = vld [vmem:[#allocation2 + $0x200] ss:$16 sps:$4 sm:$0xff]   ;;  %v6213_v7 = vld [vmem:[#allocation2 + $0x208] ss:$16 sps:$4 sm:$0xff]  }
  0xef   :  { %1609 = vmatprep.mubr.bf16.mxu0 %v205_v48  ;;  %1773 = vmatprep.mubr.bf16.mxu1 %v205_v48  ;;  %v6218_v8 = vld [vmem:[#allocation2 + $0x224] ss:$16 sps:$4 sm:$0xff]   ;;  %v6221_v9 = vld [vmem:[#allocation2 + $0x22c] ss:$16 sps:$4 sm:$0xff]   ;;  %v6216_v10 = vld [vmem:[#allocation2 + $0x220] ss:$16 sps:$4 sm:$0xff]  }
  0xf0   :  { %v6219_v11 = vld [vmem:[#allocation2 + $0x228] ss:$16 sps:$4 sm:$0xff]   ;;  %v6224_v12 = vld [vmem:[#allocation2 + $0x244] ss:$16 sps:$4 sm:$0xff]   ;;  %v6227_v13 = vld [vmem:[#allocation2 + $0x24c] ss:$16 sps:$4 sm:$0xff]  }
  0xf1   :  { %1590 = vmatpush1.bf16.msra.mxu0 %v6154_v26  ;;  %1754 = vmatpush1.bf16.msra.mxu1 %v6155_v27  ;;  %v6222_v14 = vld [vmem:[#allocation2 + $0x240] ss:$16 sps:$4 sm:$0xff]   ;;  %v6225_v15 = vld [vmem:[#allocation2 + $0x248] ss:$16 sps:$4 sm:$0xff]   ;;  %v6230_v16 = vld [vmem:[#allocation2 + $0x264] ss:$16 sps:$4 sm:$0xff]  }
  0xf2   :  { %1591 = vmatprep.subr.bf16.mxu0 %v6156_v28  ;;  %1755 = vmatprep.subr.bf16.mxu1 %v6158_v29  ;;  %v6233_v17 = vld [vmem:[#allocation2 + $0x26c] ss:$16 sps:$4 sm:$0xff]   ;;  %v6228_v18 = vld [vmem:[#allocation2 + $0x260] ss:$16 sps:$4 sm:$0xff]   ;;  %v6231_v19 = vld [vmem:[#allocation2 + $0x268] ss:$16 sps:$4 sm:$0xff]  }
  0xf3   :  { %v6236_v20 = vld [vmem:[#allocation2 + $0x284] ss:$16 sps:$4 sm:$0xff]   ;;  %v6239_v21 = vld [vmem:[#allocation2 + $0x28c] ss:$16 sps:$4 sm:$0xff]   ;;  %v6234_v22 = vld [vmem:[#allocation2 + $0x280] ss:$16 sps:$4 sm:$0xff]  }
  0xf4   :  { %v6237_v23 = vld [vmem:[#allocation2 + $0x288] ss:$16 sps:$4 sm:$0xff]   ;;  %v6242_v24 = vld [vmem:[#allocation2 + $0x2a4] ss:$16 sps:$4 sm:$0xff]   ;;  %v6245_v25 = vld [vmem:[#allocation2 + $0x2ac] ss:$16 sps:$4 sm:$0xff]  }
  0xf5   :  { %1592 = vmatpush1.bf16.msra.mxu0 %v6160_v30  ;;  %1756 = vmatpush1.bf16.msra.mxu1 %v6161_v31  ;;  %v6240_v26 = vld [vmem:[#allocation2 + $0x2a0] ss:$16 sps:$4 sm:$0xff]   ;;  %v6243_v27 = vld [vmem:[#allocation2 + $0x2a8] ss:$16 sps:$4 sm:$0xff]   ;;  %v6248_v28 = vld [vmem:[#allocation2 + $0x2c4] ss:$16 sps:$4 sm:$0xff]  }
  0xf6   :  { %1593 = vmatprep.subr.bf16.mxu0 %v6162_v32  ;;  %1757 = vmatprep.subr.bf16.mxu1 %v6164_v33  ;;  %v6251_v29 = vld [vmem:[#allocation2 + $0x2cc] ss:$16 sps:$4 sm:$0xff]   ;;  %v6246_v31 = vld [vmem:[#allocation2 + $0x2c0] ss:$16 sps:$4 sm:$0xff]   ;;  %v6249_v33 = vld [vmem:[#allocation2 + $0x2c8] ss:$16 sps:$4 sm:$0xff]  }
  0xf7   :  { %v200_v30 = vld [vmem:[%s8170_s11 + $0x18] sm:$0xff]  ;;  %v6272_v46 = vld [vmem:[#allocation2 + $0x344] ss:$16 sps:$4 sm:$0xff]   ;;  %v6270_v48 = vld [vmem:[#allocation2 + $0x340] ss:$16 sps:$4 sm:$0xff]   ;;  %vm5287_vm10 = vcmask 48128  }
  0xf8   :  { %v207_v32 = vpack.c.bf16 %v200_v30, %v200_v30  ;;  %v6302_v2 = vld [vmem:[#allocation2 + $0x3e4] ss:$16 sps:$4 sm:$0xff]   ;;  %s7345_s10 = smov 125   ;;  %s8171_s13 = sld [smem:[#allocation26_spill]]  ;;  %vm2737_vm11 = vcmask 23552  }
  0xf9   :  { %1594 = vmatpush1.bf16.msra.mxu0 %v6166_v34  ;;  %1758 = vmatpush1.bf16.msra.mxu1 %v6167_v35  ;;  %v6254_v34 = vld [vmem:[#allocation2 + $0x2e4] ss:$16 sps:$4 sm:$0xff]   ;;  %v6257_v35 = vld [vmem:[#allocation2 + $0x2ec] ss:$16 sps:$4 sm:$0xff]  }
  0xfa   :  { %1595 = vmatprep.subr.bf16.mxu0 %v6168_v36  ;;  %1759 = vmatprep.subr.bf16.mxu1 %v6170_v37  ;;  %v6252_v36 = vld [vmem:[#allocation2 + $0x2e0] ss:$16 sps:$4 sm:$0xff]   ;;  %v6255_v37 = vld [vmem:[#allocation2 + $0x2e8] ss:$16 sps:$4 sm:$0xff]   ;;  %v6338_v30 = vld [vmem:[#allocation2 + $0x4a4] ss:$16 sps:$4 sm:$0xff]  }
  0xfd   :  { %1596 = vmatpush1.bf16.msra.mxu0 %v6172_v38  ;;  %1760 = vmatpush1.bf16.msra.mxu1 %v6173_v39  ;;  %v6260_v38 = vld [vmem:[#allocation2 + $0x304] ss:$16 sps:$4 sm:$0xff]   ;;  %v6263_v39 = vld [vmem:[#allocation2 + $0x30c] ss:$16 sps:$4 sm:$0xff]  }
  0xfe   :  { %1597 = vmatprep.subr.bf16.mxu0 %v6174_v40  ;;  %1761 = vmatprep.subr.bf16.mxu1 %v6176_v41  ;;  %v6258_v40 = vld [vmem:[#allocation2 + $0x300] ss:$16 sps:$4 sm:$0xff]   ;;  %v6261_v41 = vld [vmem:[#allocation2 + $0x308] ss:$16 sps:$4 sm:$0xff]  }
 0x101   :  { %1598 = vmatpush1.bf16.msra.mxu0 %v6178_v42  ;;  %1762 = vmatpush1.bf16.msra.mxu1 %v6179_v43  ;;  %v6266_v42 = vld [vmem:[#allocation2 + $0x324] ss:$16 sps:$4 sm:$0xff]   ;;  %v6269_v43 = vld [vmem:[#allocation2 + $0x32c] ss:$16 sps:$4 sm:$0xff]  }
 0x102   :  { %1599 = vmatprep.subr.bf16.mxu0 %v6180_v44  ;;  %1763 = vmatprep.subr.bf16.mxu1 %v6182_v45  ;;  %v6264_v44 = vld [vmem:[#allocation2 + $0x320] ss:$16 sps:$4 sm:$0xff]   ;;  %v6267_v45 = vld [vmem:[#allocation2 + $0x328] ss:$16 sps:$4 sm:$0xff]  }
 0x105   :  { %1600 = vmatpush1.bf16.msra.mxu0 %v6184_v47  ;;  %1764 = vmatpush1.bf16.msra.mxu1 %v6185_v49  ;;  %v6275_v47 = vld [vmem:[#allocation2 + $0x34c] ss:$16 sps:$4 sm:$0xff]   ;;  %v6273_v49 = vld [vmem:[#allocation2 + $0x348] ss:$16 sps:$4 sm:$0xff]  }
 0x106   :  { %1601 = vmatprep.subr.bf16.mxu0 %v6186_v50  ;;  %1765 = vmatprep.subr.bf16.mxu1 %v6188_v51  ;;  %v6278_v50 = vld [vmem:[#allocation2 + $0x364] ss:$16 sps:$4 sm:$0xff]   ;;  %v6281_v51 = vld [vmem:[#allocation2 + $0x36c] ss:$16 sps:$4 sm:$0xff]  }
 0x109   :  { %1602 = vmatpush1.bf16.msra.mxu0 %v6190_v52  ;;  %1766 = vmatpush1.bf16.msra.mxu1 %v6191_v53  ;;  %v6276_v52 = vld [vmem:[#allocation2 + $0x360] ss:$16 sps:$4 sm:$0xff]   ;;  %v6279_v53 = vld [vmem:[#allocation2 + $0x368] ss:$16 sps:$4 sm:$0xff]  }
 0x10a   :  { %1603 = vmatprep.subr.bf16.mxu0 %v6192_v54  ;;  %1767 = vmatprep.subr.bf16.mxu1 %v6194_v55  ;;  %v6284_v54 = vld [vmem:[#allocation2 + $0x384] ss:$16 sps:$4 sm:$0xff]   ;;  %v6287_v55 = vld [vmem:[#allocation2 + $0x38c] ss:$16 sps:$4 sm:$0xff]  }
 0x10d   :  { %1604 = vmatpush1.bf16.msra.mxu0 %v6196_v56  ;;  %1768 = vmatpush1.bf16.msra.mxu1 %v6197_v57  ;;  %v6282_v56 = vld [vmem:[#allocation2 + $0x380] ss:$16 sps:$4 sm:$0xff]   ;;  %v6285_v57 = vld [vmem:[#allocation2 + $0x388] ss:$16 sps:$4 sm:$0xff]  }
 0x10e   :  { %1605 = vmatprep.subr.bf16.mxu0 %v6198_v58  ;;  %1769 = vmatprep.subr.bf16.mxu1 %v6200_v59  ;;  %v6290_v58 = vld [vmem:[#allocation2 + $0x3a4] ss:$16 sps:$4 sm:$0xff]   ;;  %v6293_v59 = vld [vmem:[#allocation2 + $0x3ac] ss:$16 sps:$4 sm:$0xff]  }
 0x111   :  { %1606 = vmatpush1.bf16.msra.mxu0 %v6202_v60  ;;  %1770 = vmatpush1.bf16.msra.mxu1 %v6203_v61  ;;  %v6288_v60 = vld [vmem:[#allocation2 + $0x3a0] ss:$16 sps:$4 sm:$0xff]   ;;  %v6291_v61 = vld [vmem:[#allocation2 + $0x3a8] ss:$16 sps:$4 sm:$0xff]  }
 0x112   :  { %1607 = vmatprep.subr.bf16.mxu0 %v6204_v62  ;;  %1771 = vmatprep.subr.bf16.mxu1 %v6206_v63  ;;  %v6296_v62 = vld [vmem:[#allocation2 + $0x3c4] ss:$16 sps:$4 sm:$0xff]   ;;  %v6299_v63 = vld [vmem:[#allocation2 + $0x3cc] ss:$16 sps:$4 sm:$0xff]  }
 0x115   :  { %1608 = vmatpush1.bf16.msra.mxu0 %v6208_v0  ;;  %1772 = vmatpush1.bf16.msra.mxu1 %v6209_v1  ;;  %v6294_v0 = vld [vmem:[#allocation2 + $0x3c0] ss:$16 sps:$4 sm:$0xff]   ;;  %v6297_v1 = vld [vmem:[#allocation2 + $0x3c8] ss:$16 sps:$4 sm:$0xff]  }
 0x116   :  { %1618 = vmatprep.subr.bf16.mxu0 %v6212_v3  ;;  %1782 = vmatprep.subr.bf16.mxu1 %v6215_v4  ;;  %v6305_v3 = vld [vmem:[#allocation2 + $0x3ec] ss:$16 sps:$4 sm:$0xff]   ;;  %v6300_v4 = vld [vmem:[#allocation2 + $0x3e0] ss:$16 sps:$4 sm:$0xff]  }
 0x118   :  { %1610 = vmatmul.mubr.bf16.vlgmr.msra.gmra.mrb[0].mxu0 %v204_v5  ;;  %1774 = vmatmul.mubr.bf16.vlgmr.msra.gmra.mrb[0].mxu1 %v204_v5  ;;  %v6303_v5 = vld [vmem:[#allocation2 + $0x3e8] ss:$16 sps:$4 sm:$0xff]  }
 0x119   :  { %1619 = vmatpush1.bf16.msra.mxu0 %v6210_v6  ;;  %1783 = vmatpush1.bf16.msra.mxu1 %v6213_v7  ;;  %v6308_v6 = vld [vmem:[#allocation2 + $0x404] ss:$16 sps:$4 sm:$0xff]  }
 0x11a   :  { %1620 = vmatprep.subr.bf16.mxu0 %v6218_v8  ;;  %1784 = vmatprep.subr.bf16.mxu1 %v6221_v9  ;;  %v199_v7 = vld [vmem:[%s8170_s11 + $0x10] sm:$0xff]  ;;  %v6311_v8 = vld [vmem:[#allocation2 + $0x40c] ss:$16 sps:$4 sm:$0xff]  }
 0x11b   :  { %1650 = vmatprep.mubr.bf16.mxu0 %v207_v32  ;;  %1814 = vmatprep.mubr.bf16.mxu1 %v207_v32  ;;  %v6306_v9 = vld [vmem:[#allocation2 + $0x400] ss:$16 sps:$4 sm:$0xff]  }
 0x11c   :  { %v6336_v32 = vld [vmem:[#allocation2 + $0x4a0] ss:$16 sps:$4 sm:$0xff]  }
 0x11d   :  { %1621 = vmatpush1.bf16.msra.mxu0 %v6216_v10  ;;  %1785 = vmatpush1.bf16.msra.mxu1 %v6219_v11  ;;  %v6309_v10 = vld [vmem:[#allocation2 + $0x408] ss:$16 sps:$4 sm:$0xff]   ;;  %v206_v11 = vpack.c.bf16 %v199_v7, %v199_v7  ;;  %v6401_v7 = vld [vmem:[#allocation2 + $0x5ec] ss:$16 sps:$4 sm:$0xff]  }
 0x11e   :  { %1622 = vmatprep.subr.bf16.mxu0 %v6224_v12  ;;  %1786 = vmatprep.subr.bf16.mxu1 %v6227_v13  ;;  %v6314_v12 = vld [vmem:[#allocation2 + $0x424] ss:$16 sps:$4 sm:$0xff]   ;;  %v6317_v13 = vld [vmem:[#allocation2 + $0x42c] ss:$16 sps:$4 sm:$0xff]  }
 0x121   :  { %1623 = vmatpush1.bf16.msra.mxu0 %v6222_v14  ;;  %1787 = vmatpush1.bf16.msra.mxu1 %v6225_v15  ;;  %v202_v14 = vld [vmem:[%s8170_s11 + $0x28] sm:$0xff] }
 0x122   :  { %1624 = vmatprep.subr.bf16.mxu0 %v6230_v16  ;;  %1788 = vmatprep.subr.bf16.mxu1 %v6233_v17  ;;  %v209_v15 = vpack.c.bf16 %v202_v14, %v202_v14  ;;  %v6312_v16 = vld [vmem:[#allocation2 + $0x420] ss:$16 sps:$4 sm:$0xff]   ;;  %v6315_v17 = vld [vmem:[#allocation2 + $0x428] ss:$16 sps:$4 sm:$0xff]   ;;  %v6407_v14 = vld [vmem:[#allocation2 + $0x624] ss:$16 sps:$4 sm:$0xff]  }
 0x125   :  { %1625 = vmatpush1.bf16.msra.mxu0 %v6228_v18  ;;  %1789 = vmatpush1.bf16.msra.mxu1 %v6231_v19  ;;  %v6320_v18 = vld [vmem:[#allocation2 + $0x444] ss:$16 sps:$4 sm:$0xff]   ;;  %v6323_v19 = vld [vmem:[#allocation2 + $0x44c] ss:$16 sps:$4 sm:$0xff]  }
 0x126   :  { %1626 = vmatprep.subr.bf16.mxu0 %v6236_v20  ;;  %1790 = vmatprep.subr.bf16.mxu1 %v6239_v21  ;;  %v6318_v20 = vld [vmem:[#allocation2 + $0x440] ss:$16 sps:$4 sm:$0xff]   ;;  %v6321_v21 = vld [vmem:[#allocation2 + $0x448] ss:$16 sps:$4 sm:$0xff]  }
 0x129   :  { %1627 = vmatpush1.bf16.msra.mxu0 %v6234_v22  ;;  %1791 = vmatpush1.bf16.msra.mxu1 %v6237_v23  ;;  %v6326_v22 = vld [vmem:[#allocation2 + $0x464] ss:$16 sps:$4 sm:$0xff]   ;;  %v6329_v23 = vld [vmem:[#allocation2 + $0x46c] ss:$16 sps:$4 sm:$0xff]  }
 0x12a   :  { %1628 = vmatprep.subr.bf16.mxu0 %v6242_v24  ;;  %1792 = vmatprep.subr.bf16.mxu1 %v6245_v25  ;;  %v6324_v24 = vld [vmem:[#allocation2 + $0x460] ss:$16 sps:$4 sm:$0xff]   ;;  %v6327_v25 = vld [vmem:[#allocation2 + $0x468] ss:$16 sps:$4 sm:$0xff]  }
 0x12d   :  { %1629 = vmatpush1.bf16.msra.mxu0 %v6240_v26  ;;  %1793 = vmatpush1.bf16.msra.mxu1 %v6243_v27  ;;  %v6332_v26 = vld [vmem:[#allocation2 + $0x484] ss:$16 sps:$4 sm:$0xff]   ;;  %v6335_v27 = vld [vmem:[#allocation2 + $0x48c] ss:$16 sps:$4 sm:$0xff]  }
 0x12e   :  { %1630 = vmatprep.subr.bf16.mxu0 %v6248_v28  ;;  %1794 = vmatprep.subr.bf16.mxu1 %v6251_v29  ;;  %v6330_v28 = vld [vmem:[#allocation2 + $0x480] ss:$16 sps:$4 sm:$0xff]   ;;  %v6333_v29 = vld [vmem:[#allocation2 + $0x488] ss:$16 sps:$4 sm:$0xff]  }
 0x131   :  { %1631 = vmatpush1.bf16.msra.mxu0 %v6246_v31  ;;  %1795 = vmatpush1.bf16.msra.mxu1 %v6249_v33  ;;  %v6341_v31 = vld [vmem:[#allocation2 + $0x4ac] ss:$16 sps:$4 sm:$0xff]   ;;  %v6339_v33 = vld [vmem:[#allocation2 + $0x4a8] ss:$16 sps:$4 sm:$0xff]  }
 0x132   :  { %1632 = vmatprep.subr.bf16.mxu0 %v6254_v34  ;;  %1796 = vmatprep.subr.bf16.mxu1 %v6257_v35  ;;  %v6344_v34 = vld [vmem:[#allocation2 + $0x4c4] ss:$16 sps:$4 sm:$0xff]   ;;  %v6347_v35 = vld [vmem:[#allocation2 + $0x4cc] ss:$16 sps:$4 sm:$0xff]  }
 0x135   :  { %1633 = vmatpush1.bf16.msra.mxu0 %v6252_v36  ;;  %1797 = vmatpush1.bf16.msra.mxu1 %v6255_v37  ;;  %v6342_v36 = vld [vmem:[#allocation2 + $0x4c0] ss:$16 sps:$4 sm:$0xff]   ;;  %v6345_v37 = vld [vmem:[#allocation2 + $0x4c8] ss:$16 sps:$4 sm:$0xff]  }
 0x136   :  { %1634 = vmatprep.subr.bf16.mxu0 %v6260_v38  ;;  %1798 = vmatprep.subr.bf16.mxu1 %v6263_v39  ;;  %v6350_v38 = vld [vmem:[#allocation2 + $0x4e4] ss:$16 sps:$4 sm:$0xff]   ;;  %v6353_v39 = vld [vmem:[#allocation2 + $0x4ec] ss:$16 sps:$4 sm:$0xff]  }
 0x139   :  { %1635 = vmatpush1.bf16.msra.mxu0 %v6258_v40  ;;  %1799 = vmatpush1.bf16.msra.mxu1 %v6261_v41  ;;  %v6348_v40 = vld [vmem:[#allocation2 + $0x4e0] ss:$16 sps:$4 sm:$0xff]   ;;  %v6351_v41 = vld [vmem:[#allocation2 + $0x4e8] ss:$16 sps:$4 sm:$0xff]  }
 0x13a   :  { %1636 = vmatprep.subr.bf16.mxu0 %v6266_v42  ;;  %1800 = vmatprep.subr.bf16.mxu1 %v6269_v43  ;;  %v6356_v42 = vld [vmem:[#allocation2 + $0x504] ss:$16 sps:$4 sm:$0xff]   ;;  %v6359_v43 = vld [vmem:[#allocation2 + $0x50c] ss:$16 sps:$4 sm:$0xff]  }
 0x13d   :  { %1637 = vmatpush1.bf16.msra.mxu0 %v6264_v44  ;;  %1801 = vmatpush1.bf16.msra.mxu1 %v6267_v45  ;;  %v6354_v44 = vld [vmem:[#allocation2 + $0x500] ss:$16 sps:$4 sm:$0xff]   ;;  %v6357_v45 = vld [vmem:[#allocation2 + $0x508] ss:$16 sps:$4 sm:$0xff]  }
 0x13e   :  { %1638 = vmatprep.subr.bf16.mxu0 %v6272_v46  ;;  %1802 = vmatprep.subr.bf16.mxu1 %v6275_v47  ;;  %v6362_v46 = vld [vmem:[#allocation2 + $0x524] ss:$16 sps:$4 sm:$0xff]   ;;  %v6365_v47 = vld [vmem:[#allocation2 + $0x52c] ss:$16 sps:$4 sm:$0xff]  }
 0x141   :  { %1639 = vmatpush1.bf16.msra.mxu0 %v6270_v48  ;;  %1803 = vmatpush1.bf16.msra.mxu1 %v6273_v49  ;;  %v6360_v48 = vld [vmem:[#allocation2 + $0x520] ss:$16 sps:$4 sm:$0xff]   ;;  %v6363_v49 = vld [vmem:[#allocation2 + $0x528] ss:$16 sps:$4 sm:$0xff]  }
 0x142   :  { %1640 = vmatprep.subr.bf16.mxu0 %v6278_v50  ;;  %1804 = vmatprep.subr.bf16.mxu1 %v6281_v51  ;;  %v6368_v50 = vld [vmem:[#allocation2 + $0x544] ss:$16 sps:$4 sm:$0xff]   ;;  %v6371_v51 = vld [vmem:[#allocation2 + $0x54c] ss:$16 sps:$4 sm:$0xff]  }
 0x145   :  { %1641 = vmatpush1.bf16.msra.mxu0 %v6276_v52  ;;  %1805 = vmatpush1.bf16.msra.mxu1 %v6279_v53  ;;  %v6366_v52 = vld [vmem:[#allocation2 + $0x540] ss:$16 sps:$4 sm:$0xff]   ;;  %v6369_v53 = vld [vmem:[#allocation2 + $0x548] ss:$16 sps:$4 sm:$0xff]  }
 0x146   :  { %1642 = vmatprep.subr.bf16.mxu0 %v6284_v54  ;;  %1806 = vmatprep.subr.bf16.mxu1 %v6287_v55  ;;  %v6374_v54 = vld [vmem:[#allocation2 + $0x564] ss:$16 sps:$4 sm:$0xff]   ;;  %v6377_v55 = vld [vmem:[#allocation2 + $0x56c] ss:$16 sps:$4 sm:$0xff]  }
 0x149   :  { %1643 = vmatpush1.bf16.msra.mxu0 %v6282_v56  ;;  %1807 = vmatpush1.bf16.msra.mxu1 %v6285_v57  ;;  %v6372_v56 = vld [vmem:[#allocation2 + $0x560] ss:$16 sps:$4 sm:$0xff]   ;;  %v6375_v57 = vld [vmem:[#allocation2 + $0x568] ss:$16 sps:$4 sm:$0xff]  }
 0x14a   :  { %1644 = vmatprep.subr.bf16.mxu0 %v6290_v58  ;;  %1808 = vmatprep.subr.bf16.mxu1 %v6293_v59  ;;  %v6380_v58 = vld [vmem:[#allocation2 + $0x584] ss:$16 sps:$4 sm:$0xff]   ;;  %v6383_v59 = vld [vmem:[#allocation2 + $0x58c] ss:$16 sps:$4 sm:$0xff]  }
 0x14d   :  { %1645 = vmatpush1.bf16.msra.mxu0 %v6288_v60  ;;  %1809 = vmatpush1.bf16.msra.mxu1 %v6291_v61  ;;  %v6378_v60 = vld [vmem:[#allocation2 + $0x580] ss:$16 sps:$4 sm:$0xff]   ;;  %v6381_v61 = vld [vmem:[#allocation2 + $0x588] ss:$16 sps:$4 sm:$0xff]  }
 0x14e   :  { %1646 = vmatprep.subr.bf16.mxu0 %v6296_v62  ;;  %1810 = vmatprep.subr.bf16.mxu1 %v6299_v63  ;;  %v6386_v62 = vld [vmem:[#allocation2 + $0x5a4] ss:$16 sps:$4 sm:$0xff]   ;;  %v6389_v63 = vld [vmem:[#allocation2 + $0x5ac] ss:$16 sps:$4 sm:$0xff]  }
 0x151   :  { %1647 = vmatpush1.bf16.msra.mxu0 %v6294_v0  ;;  %1811 = vmatpush1.bf16.msra.mxu1 %v6297_v1  ;;  %v6384_v0 = vld [vmem:[#allocation2 + $0x5a0] ss:$16 sps:$4 sm:$0xff]   ;;  %v6387_v1 = vld [vmem:[#allocation2 + $0x5a8] ss:$16 sps:$4 sm:$0xff]  }
 0x152   :  { %1648 = vmatprep.subr.bf16.mxu0 %v6302_v2  ;;  %1812 = vmatprep.subr.bf16.mxu1 %v6305_v3  ;;  %v6392_v2 = vld [vmem:[#allocation2 + $0x5c4] ss:$16 sps:$4 sm:$0xff]   ;;  %v6395_v3 = vld [vmem:[#allocation2 + $0x5cc] ss:$16 sps:$4 sm:$0xff]  }
 0x155   :  { %1649 = vmatpush1.bf16.msra.mxu0 %v6300_v4  ;;  %1813 = vmatpush1.bf16.msra.mxu1 %v6303_v5  ;;  %v6390_v4 = vld [vmem:[#allocation2 + $0x5c0] ss:$16 sps:$4 sm:$0xff]   ;;  %v6393_v5 = vld [vmem:[#allocation2 + $0x5c8] ss:$16 sps:$4 sm:$0xff]  }
 0x156   :  { %1659 = vmatprep.subr.bf16.mxu0 %v6308_v6  ;;  %1823 = vmatprep.subr.bf16.mxu1 %v6311_v8  ;;  %v6398_v6 = vld [vmem:[#allocation2 + $0x5e4] ss:$16 sps:$4 sm:$0xff]   ;;  %v6396_v8 = vld [vmem:[#allocation2 + $0x5e0] ss:$16 sps:$4 sm:$0xff]  }
 0x158   :  { %1651 = vmatmul.mubr.bf16.vlgmr.msra.gmra.mrb[0].mxu0 %v206_v11  ;;  %1815 = vmatmul.mubr.bf16.vlgmr.msra.gmra.mrb[0].mxu1 %v206_v11  ;;  %v6404_v11 = vld [vmem:[#allocation2 + $0x604] ss:$16 sps:$4 sm:$0xff]  }
 0x159   :  { %1660 = vmatpush1.bf16.msra.mxu0 %v6306_v9  ;;  %1824 = vmatpush1.bf16.msra.mxu1 %v6309_v10  ;;  %v6399_v9 = vld [vmem:[#allocation2 + $0x5e8] ss:$16 sps:$4 sm:$0xff]   ;;  %v201_v10 = vld [vmem:[%s8170_s11 + $0x20] sm:$0xff] }
 0x15a   :  { %1661 = vmatprep.subr.bf16.mxu0 %v6314_v12  ;;  %1825 = vmatprep.subr.bf16.mxu1 %v6317_v13  ;;  %v6402_v12 = vld [vmem:[#allocation2 + $0x600] ss:$16 sps:$4 sm:$0xff]   ;;  %v208_v13 = vpack.c.bf16 %v201_v10, %v201_v10 }
 0x15b   :  { %1855 = vmatprep.mubr.bf16.mxu1 %v209_v15  ;;  %1691 = vmatprep.mubr.bf16.mxu0 %v209_v15  ;;  %v6405_v15 = vld [vmem:[#allocation2 + $0x620] ss:$16 sps:$4 sm:$0xff]  }
 0x15c   :  { %v6489_v10 = vld [vmem:[%s8145_s4 + $0xd0] ss:$8 sps:$4 sm:$0xff]  }
 0x15d   :  { %1662 = vmatpush1.bf16.msra.mxu0 %v6312_v16  ;;  %1826 = vmatpush1.bf16.msra.mxu1 %v6315_v17  ;;  %v6410_v16 = vld [vmem:[#allocation2 + $0x644] ss:$16 sps:$4 sm:$0xff]   ;;  %v7341_v17 = vmov 0  }
 0x15e   :  { %1663 = vmatprep.subr.bf16.mxu0 %v6320_v18  ;;  %1827 = vmatprep.subr.bf16.mxu1 %v6323_v19  ;;  %v6408_v18 = vld [vmem:[#allocation2 + $0x640] ss:$16 sps:$4 sm:$0xff]   ;;  %v6413_v19 = vld [vmem:[#allocation2 + $0x664] ss:$16 sps:$4 sm:$0xff]  }
 0x161   :  { %1664 = vmatpush1.bf16.msra.mxu0 %v6318_v20  ;;  %1828 = vmatpush1.bf16.msra.mxu1 %v6321_v21  ;;  %v6411_v20 = vld [vmem:[#allocation2 + $0x660] ss:$16 sps:$4 sm:$0xff]   ;;  %v6416_v21 = vld [vmem:[#allocation2 + $0x684] ss:$16 sps:$4 sm:$0xff]  }
 0x162   :  { %1665 = vmatprep.subr.bf16.mxu0 %v6326_v22  ;;  %1829 = vmatprep.subr.bf16.mxu1 %v6329_v23  ;;  %v6414_v22 = vld [vmem:[#allocation2 + $0x680] ss:$16 sps:$4 sm:$0xff]   ;;  %v6419_v23 = vld [vmem:[#allocation2 + $0x6a4] ss:$16 sps:$4 sm:$0xff]  }
 0x165   :  { %1666 = vmatpush1.bf16.msra.mxu0 %v6324_v24  ;;  %1830 = vmatpush1.bf16.msra.mxu1 %v6327_v25  ;;  %v6417_v24 = vld [vmem:[#allocation2 + $0x6a0] ss:$16 sps:$4 sm:$0xff]   ;;  %v6422_v25 = vld [vmem:[#allocation2 + $0x6c4] ss:$16 sps:$4 sm:$0xff]  }
 0x166   :  { %1667 = vmatprep.subr.bf16.mxu0 %v6332_v26  ;;  %1831 = vmatprep.subr.bf16.mxu1 %v6335_v27  ;;  %v6420_v26 = vld [vmem:[#allocation2 + $0x6c0] ss:$16 sps:$4 sm:$0xff]   ;;  %v6425_v27 = vld [vmem:[#allocation2 + $0x6e4] ss:$16 sps:$4 sm:$0xff]  }
 0x169   :  { %1668 = vmatpush1.bf16.msra.mxu0 %v6330_v28  ;;  %1832 = vmatpush1.bf16.msra.mxu1 %v6333_v29  ;;  %v6423_v28 = vld [vmem:[#allocation2 + $0x6e0] ss:$16 sps:$4 sm:$0xff]  }
 0x16a   :  { %1669 = vmatprep.subr.bf16.mxu0 %v6338_v30  ;;  %1833 = vmatprep.subr.bf16.mxu1 %v6341_v31  ;;  %v203_v29 = vld [vmem:[%s8170_s11 + $0x30] sm:$0xff]  ;;  %v6428_v30 = vld [vmem:[#allocation2 + $0x60c] ss:$16 sps:$4 sm:$0xff]   ;;  %v6426_v31 = vld [vmem:[#allocation2 + $0x608] ss:$16 sps:$4 sm:$0xff]  }
 0x16d   :  { %1670 = vmatpush1.bf16.msra.mxu0 %v6336_v32  ;;  %1834 = vmatpush1.bf16.msra.mxu1 %v6339_v33  ;;  %v210_v32 = vpack.c.bf16 %v203_v29, %v203_v29  ;;  %v6431_v33 = vld [vmem:[#allocation2 + $0x62c] ss:$16 sps:$4 sm:$0xff]   ;;  %v435_v29 = vld [vmem:[#allocation4] sm:$0xf] }
 0x16e   :  { %1671 = vmatprep.subr.bf16.mxu0 %v6344_v34  ;;  %1835 = vmatprep.subr.bf16.mxu1 %v6347_v35  ;;  %v6429_v34 = vld [vmem:[#allocation2 + $0x628] ss:$16 sps:$4 sm:$0xff]   ;;  %v6434_v35 = vld [vmem:[#allocation2 + $0x64c] ss:$16 sps:$4 sm:$0xff]  }
 0x171   :  { %1672 = vmatpush1.bf16.msra.mxu0 %v6342_v36  ;;  %1836 = vmatpush1.bf16.msra.mxu1 %v6345_v37  ;;  %v6432_v36 = vld [vmem:[#allocation2 + $0x648] ss:$16 sps:$4 sm:$0xff]   ;;  %v6437_v37 = vld [vmem:[#allocation2 + $0x66c] ss:$16 sps:$4 sm:$0xff]  }
 0x172   :  { %1673 = vmatprep.subr.bf16.mxu0 %v6350_v38  ;;  %1837 = vmatprep.subr.bf16.mxu1 %v6353_v39  ;;  %v6435_v38 = vld [vmem:[#allocation2 + $0x668] ss:$16 sps:$4 sm:$0xff]   ;;  %v6440_v39 = vld [vmem:[#allocation2 + $0x68c] ss:$16 sps:$4 sm:$0xff]  }
 0x175   :  { %1674 = vmatpush1.bf16.msra.mxu0 %v6348_v40  ;;  %1838 = vmatpush1.bf16.msra.mxu1 %v6351_v41  ;;  %v6438_v40 = vld [vmem:[#allocation2 + $0x688] ss:$16 sps:$4 sm:$0xff]   ;;  %v6443_v41 = vld [vmem:[#allocation2 + $0x6ac] ss:$16 sps:$4 sm:$0xff]  }
 0x176   :  { %1675 = vmatprep.subr.bf16.mxu0 %v6356_v42  ;;  %1839 = vmatprep.subr.bf16.mxu1 %v6359_v43  ;;  %v6441_v42 = vld [vmem:[#allocation2 + $0x6a8] ss:$16 sps:$4 sm:$0xff]   ;;  %v6446_v43 = vld [vmem:[#allocation2 + $0x6cc] ss:$16 sps:$4 sm:$0xff]  }
 0x179   :  { %1676 = vmatpush1.bf16.msra.mxu0 %v6354_v44  ;;  %1840 = vmatpush1.bf16.msra.mxu1 %v6357_v45  ;;  %v6444_v44 = vld [vmem:[#allocation2 + $0x6c8] ss:$16 sps:$4 sm:$0xff]   ;;  %v6449_v45 = vld [vmem:[#allocation2 + $0x6ec] ss:$16 sps:$4 sm:$0xff]  }
 0x17a   :  { %1677 = vmatprep.subr.bf16.mxu0 %v6362_v46  ;;  %1841 = vmatprep.subr.bf16.mxu1 %v6365_v47  ;;  %v6447_v46 = vld [vmem:[#allocation2 + $0x6e8] ss:$16 sps:$4 sm:$0xff]   ;;  %v6452_v47 = vld [vmem:[%s8145_s4 + $0x4] ss:$8 sps:$4 sm:$0xff]  }
 0x17d   :  { %1678 = vmatpush1.bf16.msra.mxu0 %v6360_v48  ;;  %1842 = vmatpush1.bf16.msra.mxu1 %v6363_v49  ;;  %v6450_v48 = vld [vmem:[%s8145_s4] ss:$8 sps:$4 sm:$0xff]   ;;  %v6455_v49 = vld [vmem:[%s8145_s4 + $0x14] ss:$8 sps:$4 sm:$0xff]  }
 0x17e   :  { %1679 = vmatprep.subr.bf16.mxu0 %v6368_v50  ;;  %1843 = vmatprep.subr.bf16.mxu1 %v6371_v51  ;;  %v6453_v50 = vld [vmem:[%s8145_s4 + $0x10] ss:$8 sps:$4 sm:$0xff]   ;;  %v6458_v51 = vld [vmem:[%s8145_s4 + $0x24] ss:$8 sps:$4 sm:$0xff]  }
 0x181   :  { %1680 = vmatpush1.bf16.msra.mxu0 %v6366_v52  ;;  %1844 = vmatpush1.bf16.msra.mxu1 %v6369_v53  ;;  %v6456_v52 = vld [vmem:[%s8145_s4 + $0x20] ss:$8 sps:$4 sm:$0xff]   ;;  %v6461_v53 = vld [vmem:[%s8145_s4 + $0x34] ss:$8 sps:$4 sm:$0xff]  }
 0x182   :  { %1681 = vmatprep.subr.bf16.mxu0 %v6374_v54  ;;  %1845 = vmatprep.subr.bf16.mxu1 %v6377_v55  ;;  %v6459_v54 = vld [vmem:[%s8145_s4 + $0x30] ss:$8 sps:$4 sm:$0xff]   ;;  %v6464_v55 = vld [vmem:[%s8145_s4 + $0x44] ss:$8 sps:$4 sm:$0xff]  }
 0x185   :  { %1682 = vmatpush1.bf16.msra.mxu0 %v6372_v56  ;;  %1846 = vmatpush1.bf16.msra.mxu1 %v6375_v57  ;;  %v6462_v56 = vld [vmem:[%s8145_s4 + $0x40] ss:$8 sps:$4 sm:$0xff]   ;;  %v6467_v57 = vld [vmem:[%s8145_s4 + $0x54] ss:$8 sps:$4 sm:$0xff]  }
 0x186   :  { %1683 = vmatprep.subr.bf16.mxu0 %v6380_v58  ;;  %1847 = vmatprep.subr.bf16.mxu1 %v6383_v59  ;;  %v6465_v58 = vld [vmem:[%s8145_s4 + $0x50] ss:$8 sps:$4 sm:$0xff]   ;;  %v6470_v59 = vld [vmem:[%s8145_s4 + $0x64] ss:$8 sps:$4 sm:$0xff]  }
 0x189   :  { %1684 = vmatpush1.bf16.msra.mxu0 %v6378_v60  ;;  %1848 = vmatpush1.bf16.msra.mxu1 %v6381_v61  ;;  %v6468_v60 = vld [vmem:[%s8145_s4 + $0x60] ss:$8 sps:$4 sm:$0xff]   ;;  %v6473_v61 = vld [vmem:[%s8145_s4 + $0x74] ss:$8 sps:$4 sm:$0xff]  }
 0x18a   :  { %1685 = vmatprep.subr.bf16.mxu0 %v6386_v62  ;;  %1849 = vmatprep.subr.bf16.mxu1 %v6389_v63  ;;  %v6471_v62 = vld [vmem:[%s8145_s4 + $0x70] ss:$8 sps:$4 sm:$0xff]   ;;  %v6476_v63 = vld [vmem:[%s8145_s4 + $0x84] ss:$8 sps:$4 sm:$0xff]  }
 0x18d   :  { %1686 = vmatpush1.bf16.msra.mxu0 %v6384_v0  ;;  %1850 = vmatpush1.bf16.msra.mxu1 %v6387_v1  ;;  %v6474_v0 = vld [vmem:[%s8145_s4 + $0x80] ss:$8 sps:$4 sm:$0xff]   ;;  %v6479_v1 = vld [vmem:[%s8145_s4 + $0x94] ss:$8 sps:$4 sm:$0xff]  }
 0x18e   :  { %1687 = vmatprep.subr.bf16.mxu0 %v6392_v2  ;;  %1851 = vmatprep.subr.bf16.mxu1 %v6395_v3  ;;  %v6477_v2 = vld [vmem:[%s8145_s4 + $0x90] ss:$8 sps:$4 sm:$0xff]   ;;  %v6482_v3 = vld [vmem:[%s8145_s4 + $0xa4] ss:$8 sps:$4 sm:$0xff]  }
 0x191   :  { %1688 = vmatpush1.bf16.msra.mxu0 %v6390_v4  ;;  %1852 = vmatpush1.bf16.msra.mxu1 %v6393_v5  ;;  %v6480_v4 = vld [vmem:[%s8145_s4 + $0xa0] ss:$8 sps:$4 sm:$0xff]   ;;  %v6485_v5 = vld [vmem:[%s8145_s4 + $0xb4] ss:$8 sps:$4 sm:$0xff]  }
 0x192   :  { %1689 = vmatprep.subr.bf16.mxu0 %v6398_v6  ;;  %1853 = vmatprep.subr.bf16.mxu1 %v6401_v7  ;;  %v6483_v6 = vld [vmem:[%s8145_s4 + $0xb0] ss:$8 sps:$4 sm:$0xff]   ;;  %v6488_v7 = vld [vmem:[%s8145_s4 + $0xc4] ss:$8 sps:$4 sm:$0xff]  }
 0x195   :  { %1690 = vmatpush1.bf16.msra.mxu0 %v6396_v8  ;;  %1854 = vmatpush1.bf16.msra.mxu1 %v6399_v9  ;;  %v6486_v8 = vld [vmem:[%s8145_s4 + $0xc0] ss:$8 sps:$4 sm:$0xff]   ;;  %v6491_v9 = vld [vmem:[%s8145_s4 + $0xd4] ss:$8 sps:$4 sm:$0xff]  }
 0x196   :  { %1700 = vmatprep.subr.bf16.mxu0 %v6404_v11  ;;  %v6494_v11 = vld [vmem:[%s8145_s4 + $0xe4] ss:$8 sps:$4 sm:$0xff]  }
 0x198   :  { %1856 = vmatmul.mubr.bf16.vlgmr.msra.gmra.mrb[0].mxu1 %v208_v13  ;;  %1692 = vmatmul.mubr.bf16.vlgmr.msra.gmra.mrb[0].mxu0 %v208_v13  ;;  %v6497_v13 = vld [vmem:[%s8145_s4 + $0xf4] ss:$8 sps:$4 sm:$0xff]  }
 0x199   :  { %1701 = vmatpush1.bf16.msra.mxu0 %v6402_v12  ;;  %1732 = vmatprep.mubr.bf16.mxu0 %v7341_v17  ;;  %v6492_v12 = vld [vmem:[%s8145_s4 + $0xe0] ss:$8 sps:$4 sm:$0xff]  }
 0x19a   :  { %1702 = vmatprep.subr.bf16.mxu0 %v6407_v14  ;;  %v6495_v14 = vld [vmem:[%s8145_s4 + $0xf0] ss:$8 sps:$4 sm:$0xff]  }
 0x19d   :  { %1703 = vmatpush1.bf16.msra.mxu0 %v6405_v15  ;;  %v6500_v15 = vld [vmem:[%s8145_s4 + $0x104] ss:$8 sps:$4 sm:$0xff]  }
 0x19e   :  { %1704 = vmatprep.subr.bf16.mxu0 %v6410_v16  ;;  %v6546_v16 = vld [vmem:[#allocation6 + $0x40] sm:$0xff]  }
 0x19f   :  { %5937 = vmatprep.subr.bf16.mxu1 %v6546_v16  ;;  %v6524_v16 = vld [vmem:[%s8145_s4 + $0x184] ss:$8 sps:$4 sm:$0xff]  }
 0x1a1   :  { %1705 = vmatpush1.bf16.msra.mxu0 %v6408_v18  ;;  %v6547_v18 = vld [vmem:[#allocation6] sm:$0xff]  }
 0x1a2   :  { %1706 = vmatprep.subr.bf16.mxu0 %v6413_v19  ;;  %v6548_v19 = vld [vmem:[#allocation6 + $0x48] sm:$0xff]   ;;  %5938 = vmatpush3.bf16.msra.mxu1 %v6547_v18 }
 0x1a3   :  { %5939 = vmatprep.subr.bf16.mxu1 %v6548_v19 }
 0x1a5   :  { %1707 = vmatpush1.bf16.msra.mxu0 %v6411_v20  ;;  %v6549_v20 = vld [vmem:[#allocation6 + $0x8] sm:$0xff]  }
 0x1a6   :  { %1708 = vmatprep.subr.bf16.mxu0 %v6416_v21  ;;  %5940 = vmatpush3.bf16.msra.mxu1 %v6549_v20  ;;  %v6522_v20 = vld [vmem:[%s8145_s4 + $0x180] ss:$8 sps:$4 sm:$0xff]  }
 0x1a9   :  { %1709 = vmatpush1.bf16.msra.mxu0 %v6414_v22 }
 0x1aa   :  { %1710 = vmatprep.subr.bf16.mxu0 %v6419_v23 }
 0x1ad   :  { %1711 = vmatpush1.bf16.msra.mxu0 %v6417_v24 }
 0x1ae   :  { %1712 = vmatprep.subr.bf16.mxu0 %v6422_v25  ;;  %v437_v25 = vlaneseq }
 0x1b1   :  { %1713 = vmatpush1.bf16.msra.mxu0 %v6420_v26  ;;  %v7700_v26 = vshrl.u32 %v437_v25, 7  ;;  %v6530_v25 = vld [vmem:[%s8145_s4 + $0x1a4] ss:$8 sps:$4 sm:$0xff]  }
 0x1b2   :  { %1714 = vmatprep.subr.bf16.mxu0 %v6425_v27 }
 0x1b3   :  { %v7703_v27 = vsub.s32 0, %v7700_v26 }
 0x1b5   :  { %1715 = vmatpush1.bf16.msra.mxu0 %v6423_v28  ;;  %v7706_v28 = vsub.s32 1, %v7700_v26 }
 0x1b6   :  { %1864 = vmatprep.subr.bf16.mxu0 %v6428_v30  ;;  %v440_v30 = vrot.slane %v435_v29, %v7703_v27 }
 0x1b8   :  { %1733 = vmatmul.mubr.bf16.vlgmr.msra.gmra.mrb[0].mxu0 %v210_v32 }
 0x1b9   :  { %1865 = vmatpush1.bf16.msra.mxu0 %v6426_v31  ;;  %1896 = vmatprep.mubr.bf16.mxu0 %v7341_v17  ;;  %v444_v31 = vrot.slane %v435_v29, %v7706_v28 }
 0x1ba   :  { %1866 = vmatprep.subr.bf16.mxu0 %v6431_v33 }
 0x1bd   :  { %1867 = vmatpush1.bf16.msra.mxu0 %v6429_v34 }
 0x1be   :  { %1868 = vmatprep.subr.bf16.mxu0 %v6434_v35 }
 0x1c1   :  { %1869 = vmatpush1.bf16.msra.mxu0 %v6432_v36 }
 0x1c2   :  { %1870 = vmatprep.subr.bf16.mxu0 %v6437_v37 }
 0x1c5   :  { %1871 = vmatpush1.bf16.msra.mxu0 %v6435_v38 }
 0x1c6   :  { %1872 = vmatprep.subr.bf16.mxu0 %v6440_v39 }
 0x1c9   :  { %1873 = vmatpush1.bf16.msra.mxu0 %v6438_v40 }
 0x1ca   :  { %1874 = vmatprep.subr.bf16.mxu0 %v6443_v41 }
 0x1cd   :  { %1875 = vmatpush1.bf16.msra.mxu0 %v6441_v42 }
 0x1ce   :  { %1876 = vmatprep.subr.bf16.mxu0 %v6446_v43 }
 0x1d1   :  { %1877 = vmatpush1.bf16.msra.mxu0 %v6444_v44 }
 0x1d2   :  { %1878 = vmatprep.subr.bf16.mxu0 %v6449_v45 }
 0x1d5   :  { %1879 = vmatpush1.bf16.msra.mxu0 %v6447_v46 }
 0x1d6   :  { %2329 = vmatprep.subr.bf16.mxu0 %v6452_v47 }
 0x1d8   :  { %1897 = vmatmul.mubr.bf16.vlgmr.msra.gmra.mrb[4].mxu0 %v210_v32 }
 0x1d9   :  { %2330 = vmatpush1.bf16.msra.mxu0 %v6450_v48 }
 0x1da   :  { %2331 = vmatprep.subr.bf16.mxu0 %v6455_v49  ;;  %v6498_v49 = vld [vmem:[%s8145_s4 + $0x100] ss:$8 sps:$4 sm:$0xff]  }
 0x1dd   :  { %2332 = vmatpush1.bf16.msra.mxu0 %v6453_v50  ;;  %v7714_v50 = vsub.s32 2, %v7700_v26 }
 0x1de   :  { %2333 = vmatprep.subr.bf16.mxu0 %v6458_v51 }
 0x1e1   :  { %2334 = vmatpush1.bf16.msra.mxu0 %v6456_v52  ;;  %v6503_v52 = vld [vmem:[%s8145_s4 + $0x114] ss:$8 sps:$4 sm:$0xff]  }
 0x1e2   :  { %2335 = vmatprep.subr.bf16.mxu0 %v6461_v53  ;;  %v7720_v53 = vsub.s32 3, %v7700_v26 }
 0x1e5   :  { %2336 = vmatpush1.bf16.msra.mxu0 %v6459_v54  ;;  %v6501_v54 = vld [vmem:[%s8145_s4 + $0x110] ss:$8 sps:$4 sm:$0xff]  }
 0x1e6   :  { %2337 = vmatprep.subr.bf16.mxu0 %v6464_v55  ;;  %v448_v55 = vrot.slane %v435_v29, %v7714_v50 }
 0x1e9   :  { %2338 = vmatpush1.bf16.msra.mxu0 %v6462_v56  ;;  %v6506_v56 = vld [vmem:[%s8145_s4 + $0x124] ss:$8 sps:$4 sm:$0xff]  }
 0x1ea   :  { %2339 = vmatprep.subr.bf16.mxu0 %v6467_v57  ;;  %v452_v57 = vrot.slane %v435_v29, %v7720_v53  ;;  %v6528_v29 = vld [vmem:[%s8145_s4 + $0x1a0] ss:$8 sps:$4 sm:$0xff]  }
 0x1ed   :  { %2340 = vmatpush1.bf16.msra.mxu0 %v6465_v58  ;;  %v6504_v58 = vld [vmem:[%s8145_s4 + $0x120] ss:$8 sps:$4 sm:$0xff]  }
 0x1ee   :  { %2341 = vmatprep.subr.bf16.mxu0 %v6470_v59 }
 0x1f1   :  { %2342 = vmatpush1.bf16.msra.mxu0 %v6468_v60  ;;  %v6509_v60 = vld [vmem:[%s8145_s4 + $0x134] ss:$8 sps:$4 sm:$0xff]  }
 0x1f2   :  { %2343 = vmatprep.subr.bf16.mxu0 %v6473_v61 }
 0x1f5   :  { %2344 = vmatpush1.bf16.msra.mxu0 %v6471_v62 }
 0x1f6   :  { %2345 = vmatprep.subr.bf16.mxu0 %v6476_v63 }
 0x1f9   :  { %2346 = vmatpush1.bf16.msra.mxu0 %v6474_v0 }
 0x1fa   :  { %2347 = vmatprep.subr.bf16.mxu0 %v6479_v1 }
 0x1fd   :  { %2348 = vmatpush1.bf16.msra.mxu0 %v6477_v2  ;;  %v6507_v2 = vld [vmem:[%s8145_s4 + $0x130] ss:$8 sps:$4 sm:$0xff]  }
 0x1fe   :  { %2349 = vmatprep.subr.bf16.mxu0 %v6482_v3 }
 0x201   :  { %2350 = vmatpush1.bf16.msra.mxu0 %v6480_v4  ;;  %v6512_v4 = vld [vmem:[%s8145_s4 + $0x144] ss:$8 sps:$4 sm:$0xff]  }
 0x202   :  { %2351 = vmatprep.subr.bf16.mxu0 %v6485_v5 }
 0x205   :  { %2352 = vmatpush1.bf16.msra.mxu0 %v6483_v6 }
 0x206   :  { %2353 = vmatprep.subr.bf16.mxu0 %v6488_v7 }
 0x209   :  { %2354 = vmatpush1.bf16.msra.mxu0 %v6486_v8  ;;  %v6510_v8 = vld [vmem:[%s8145_s4 + $0x140] ss:$8 sps:$4 sm:$0xff]  }
 0x20a   :  { %2355 = vmatprep.subr.bf16.mxu0 %v6491_v9  ;;  %v6515_v9 = vld [vmem:[%s8145_s4 + $0x154] ss:$8 sps:$4 sm:$0xff]  }
 0x20d   :  { %2356 = vmatpush1.bf16.msra.mxu0 %v6489_v10  ;;  %v6513_v10 = vld [vmem:[%s8145_s4 + $0x150] ss:$8 sps:$4 sm:$0xff]  }
 0x20e   :  { %2357 = vmatprep.subr.bf16.mxu0 %v6494_v11  ;;  %v6518_v11 = vld [vmem:[%s8145_s4 + $0x164] ss:$8 sps:$4 sm:$0xff]  }
 0x211   :  { %2358 = vmatpush1.bf16.msra.mxu0 %v6492_v12  ;;  %v6516_v12 = vld [vmem:[%s8145_s4 + $0x160] ss:$8 sps:$4 sm:$0xff]  }
 0x212   :  { %2359 = vmatprep.subr.bf16.mxu0 %v6497_v13  ;;  %v6521_v13 = vld [vmem:[%s8145_s4 + $0x174] ss:$8 sps:$4 sm:$0xff]  }
 0x215   :  { %2360 = vmatpush1.bf16.msra.mxu0 %v6495_v14 }
 0x216   :  { %2370 = vmatprep.subr.bf16.mxu0 %v6500_v15  ;;  %v6519_v15 = vld [vmem:[%s8145_s4 + $0x170] ss:$8 sps:$4 sm:$0xff]  }
 0x26b   :  { %v1857_v21 = vpop.f32.mrb[0].mxu1 }
 0x26c   :  { %v1859_v22 = vpop.f32.mrb[1].mxu1  ;;  %v6042_v59 = vadd.f32 %v1857_v21, %v448_v55  ;;  %v6558_v55 = vld [vmem:[#allocation6 + $0x70] sm:$0xff]  }
 0x26d   :  { %v1861_v23 = vpop.f32.mrb[2].mxu1  ;;  %v6044_v61 = vadd.f32 %v1859_v22, %v452_v57  ;;  %v6527_v22 = vld [vmem:[%s8145_s4 + $0x194] ss:$8 sps:$4 sm:$0xff]  }
 0x26e   :  { %v1862_v24 = vpop.f32.mrb[3].mxu1  ;;  %v6525_v23 = vld [vmem:[%s8145_s4 + $0x190] ss:$8 sps:$4 sm:$0xff]   ;;  %v6560_v57 = vld [vmem:[#allocation6 + $0x78] sm:$0xff]  }
 0x28b   :  { %v1734_v32 = vpop.f32.mrb[0].mxu0 }
 0x28c   :  { %v6040_v33 = vadd.f32 %v1734_v32, %v440_v30  ;;  %v1736_v34 = vpop.f32.mrb[1].mxu0  ;;  %v6531_v32 = vld [vmem:[%s8145_s4 + $0x1b0] ss:$8 sps:$4 sm:$0xff]  }
 0x28d   :  { %v6041_v35 = vadd.f32 %v1736_v34, %v444_v31  ;;  %v1738_v36 = vpop.f32.mrb[2].mxu0  ;;  %v6533_v31 = vld [vmem:[%s8145_s4 + $0x1b4] ss:$8 sps:$4 sm:$0xff]   ;;  %v6534_v34 = vld [vmem:[%s8145_s4 + $0x1c0] ss:$8 sps:$4 sm:$0xff]  }
 0x28e   :  { %v1909_v37 = vmin.f32 %v6040_v33, 0.0  ;;  %v1739_v38 = vpop.f32.mrb[3].mxu0  ;;  %vm1905_vm0 = vcmp.gt.f32.partialorder %v6040_v33, 0.0  ;;  %v6537_v36 = vld [vmem:[%s8145_s4 + $0x1d0] ss:$8 sps:$4 sm:$0xff]  }
 0x28f   :  { %v1910_v39 = vmin.f32 %v6041_v35, 0.0  ;;  %vm1906_vm1 = vcmp.gt.f32.partialorder %v6041_v35, 0.0 }
 0x290   :  { %v1913_v40 = vmul.f32 1.442695, %v1909_v37  ;;  %v6542_v37 = vld [vmem:[%s8145_s4 + $0x1e4] ss:$8 sps:$4 sm:$0xff]  }
 0x291   :  { %v1915_v41 = vmul.f32 1.442695, %v1910_v39  ;;  %v6540_v39 = vld [vmem:[%s8145_s4 + $0x1e0] ss:$8 sps:$4 sm:$0xff]  }
 0x292   :  { %7010 = vpow2.f32 %v1913_v40  ;;  %v6545_v40 = vld [vmem:[%s8145_s4 + $0x1f4] ss:$8 sps:$4 sm:$0xff]  }
 0x293   :  { %7012 = vpow2.f32 %v1915_v41 }
 0x29c   :  { %v7011_v42 = vpop.eup %7010 }
 0x29d   :  { %v7013_v43 = vpop.eup %7012  ;;  %v5527_v44 = vadd.f32 -1.0, %v7011_v42  ;;  %v6543_v42 = vld [vmem:[%s8145_s4 + $0x1f0] ss:$8 sps:$4 sm:$0xff]  }
 0x29e   :  { %v5528_v45 = vadd.f32 -1.0, %v7013_v43 }
 0x29f   :  { %v1925_v46 = vsel %vm1905_vm0, %v6040_v33, %v5527_v44  ;;  %v6536_v33 = vld [vmem:[%s8145_s4 + $0x1c4] ss:$8 sps:$4 sm:$0xff]  }
 0x2a0   :  { %v1926_v47 = vsel %vm1906_vm1, %v6041_v35, %v5528_v45  ;;  %v1929_v51 = vpack.c.bf16 %v1925_v46, %v1925_v46  ;;  %v6539_v35 = vld [vmem:[%s8145_s4 + $0x1d4] ss:$8 sps:$4 sm:$0xff]  }
 0x2a1   :  { %v1930_v48 = vpack.c.bf16 %v1926_v47, %v1926_v47  ;;  %v6550_v45 = vld [vmem:[#allocation6 + $0x50] sm:$0xff]   ;;  %v6552_v47 = vld [vmem:[#allocation6 + $0x58] sm:$0xff]  }
 0x2a2   :  { %v6551_v46 = vld [vmem:[#allocation6 + $0x10] sm:$0xff]   ;;  %5941 = vmatprep.subr.bf16.mxu1 %v6550_v45 }
 0x2a3   :  { %2361 = vmatprep.mubr.bf16.mxu0 %v1930_v48  ;;  %5942 = vmatpush3.bf16.msra.mxu1 %v6551_v46  ;;  %v6553_v48 = vld [vmem:[#allocation6 + $0x18] sm:$0xff]  }
 0x2a4   :  { %2362 = vmatmul.mubr.bf16.vlgmr.msra.gmra.mrb[8].mxu0 %v1929_v51  ;;  %5943 = vmatprep.subr.bf16.mxu1 %v6552_v47  ;;  %v6555_v51 = vld [vmem:[#allocation6 + $0x20] sm:$0xff]  }
 0x2a5   :  { %2371 = vmatpush1.bf16.msra.mxu0 %v6498_v49  ;;  %v6554_v49 = vld [vmem:[#allocation6 + $0x60] sm:$0xff]  }
 0x2a6   :  { %2372 = vmatprep.subr.bf16.mxu0 %v6503_v52  ;;  %v6556_v52 = vld [vmem:[#allocation6 + $0x68] sm:$0xff]   ;;  %v5615_v47 = vld [vmem:[#allocation7] ss:$0 sm:$0xff] }
 0x2a7   :  { %5944 = vmatpush3.bf16.msra.mxu1 %v6553_v48 }
 0x2a8   :  { %5945 = vmatprep.subr.bf16.mxu1 %v6554_v49 }
 0x2a9   :  { %2373 = vmatpush1.bf16.msra.mxu0 %v6501_v54  ;;  %v6557_v54 = vld [vmem:[#allocation6 + $0x28] sm:$0xff]  }
 0x2aa   :  { %2374 = vmatprep.subr.bf16.mxu0 %v6506_v56  ;;  %v6559_v56 = vld [vmem:[#allocation6 + $0x30] sm:$0xff]  }
 0x2ab   :  { %v1898_v62 = vpop.f32.mrb[4].mxu0  ;;  %5946 = vmatpush3.bf16.msra.mxu1 %v6555_v51 }
 0x2ac   :  { %v7736_v63 = vadd.f32 %v6042_v59, %v1898_v62  ;;  %v1900_v0 = vpop.f32.mrb[5].mxu0  ;;  %5947 = vmatprep.subr.bf16.mxu1 %v6556_v52  ;;  %v7342_v59 = vmov 0.0  }
 0x2ad   :  { %v6045_v1 = vadd.f32 %v6044_v61, %v1900_v0  ;;  %2375 = vmatpush1.bf16.msra.mxu0 %v6504_v58  ;;  %v1902_v3 = vpop.f32.mrb[6].mxu0  ;;  %v6561_v58 = vld [vmem:[#allocation6 + $0x38] sm:$0xff]  }
 0x2ae   :  { %2376 = vmatprep.subr.bf16.mxu0 %v6509_v60  ;;  %v1903_v5 = vpop.f32.mrb[7].mxu0  ;;  %v1911_v24 = vmin.f32 %v7736_v63, 0.0  ;;  %vm1907_vm3 = vcmp.gt.f32.partialorder %v7736_v63, 0.0  ;;  %v1997_v60 = vld [vmem:[%s8146_s5] sm:$0x3] }
 0x2af   :  { %v1912_v6 = vmin.f32 %v6045_v1, 0.0  ;;  %vm1908_vm2 = vcmp.gt.f32.partialorder %v6045_v1, 0.0  ;;  %5948 = vmatpush3.bf16.msra.mxu1 %v6557_v54  ;;  %v2002_v61 = vrot.slane %v1997_v60, %v7703_v27  ;;  %v2006_v62 = vrot.slane %v1997_v60, %v7706_v28 }
 0x2b0   :  { %v1917_v30 = vmul.f32 1.442695, %v1911_v24  ;;  %5949 = vmatprep.subr.bf16.mxu1 %v6558_v55  ;;  %v6568_v24 = vld [vmem:[%s8149_s8 + $0x30] sm:$0xff]  }
 0x2b1   :  { %v1919_v7 = vmul.f32 1.442695, %v1912_v6  ;;  %2377 = vmatpush1.bf16.msra.mxu0 %v6507_v2 }
 0x2b2   :  { %2378 = vmatprep.subr.bf16.mxu0 %v6512_v4 }
 0x2b3   :  { %7014 = vpow2.f32 %v1919_v7  ;;  %5950 = vmatpush3.bf16.msra.mxu1 %v6559_v56 }
 0x2b4   :  { %7016 = vpow2.f32 %v1917_v30  ;;  %5951 = vmatprep.subr.bf16.mxu1 %v6560_v57  ;;  %v5597_v30 = vld [vmem:[%s8148_s7] ss:$0 sm:$0xff]  ;;  %v6572_v57 = vld [vmem:[#allocation12 + $0x4] ss:$8 sps:$4 sm:$0xff]  }
 0x2b5   :  { %2379 = vmatpush1.bf16.msra.mxu0 %v6510_v8 }
 0x2b6   :  { %2380 = vmatprep.subr.bf16.mxu0 %v6515_v9 }
 0x2b7   :  { %5952 = vmatpush3.bf16.msra.mxu1 %v6561_v58 }
 0x2b8   :  { %6014 = vmatprep.subr.bf16.mxu1 %v7342_v59 }
 0x2b9   :  { %2381 = vmatpush1.bf16.msra.mxu0 %v6513_v10 }
 0x2ba   :  { %2382 = vmatprep.subr.bf16.mxu0 %v6518_v11 }
 0x2bd   :  { %v7015_v14 = vpop.eup %7014  ;;  %2383 = vmatpush1.bf16.msra.mxu0 %v6516_v12 }
 0x2be   :  { %2384 = vmatprep.subr.bf16.mxu0 %v6521_v13  ;;  %v5530_v18 = vadd.f32 -1.0, %v7015_v14  ;;  %v7017_v38 = vpop.eup %7016 }
 0x2bf   :  { %v5529_v41 = vadd.f32 -1.0, %v7017_v38 }
 0x2c0   :  { %v1928_v19 = vsel %vm1908_vm2, %v6045_v1, %v5530_v18 }
 0x2c1   :  { %2385 = vmatpush1.bf16.msra.mxu0 %v6519_v15  ;;  %v1932_v21 = vpack.c.bf16 %v1928_v19, %v1928_v19  ;;  %v1927_v43 = vsel %vm1907_vm3, %v7736_v63, %v5529_v41  ;;  %v6563_v19 = vld [vmem:[%s8149_s8 + $0x8] sm:$0xff]  }
 0x2c2   :  { %2386 = vmatprep.subr.bf16.mxu0 %v6524_v16  ;;  %v1931_v44 = vpack.c.bf16 %v1927_v43, %v1927_v43  ;;  %v6562_v16 = vld [vmem:[%s8149_s8] sm:$0xff]   ;;  %v7344_v43 = vmov 65535  }
 0x2c3   :  { %2402 = vmatprep.mubr.bf16.mxu0 %v1932_v21  ;;  %v6565_v21 = vld [vmem:[%s8149_s8 + $0x18] sm:$0xff]  }
 0x2c5   :  { %2387 = vmatpush1.bf16.msra.mxu0 %v6522_v20  ;;  %v6564_v20 = vld [vmem:[%s8149_s8 + $0x10] sm:$0xff]  }
 0x2c6   :  { %2388 = vmatprep.subr.bf16.mxu0 %v6527_v22  ;;  %v6566_v22 = vld [vmem:[%s8149_s8 + $0x20] sm:$0xff]  }
 0x2c9   :  { %2389 = vmatpush1.bf16.msra.mxu0 %v6525_v23  ;;  %v6567_v23 = vld [vmem:[%s8149_s8 + $0x28] sm:$0xff]  }
 0x2ca   :  { %2390 = vmatprep.subr.bf16.mxu0 %v6530_v25  ;;  %v6569_v25 = vld [vmem:[%s8149_s8 + $0x38] sm:$0xff]  }
 0x2cd   :  { %2391 = vmatpush1.bf16.msra.mxu0 %v6528_v29 }
 0x2ce   :  { %2392 = vmatprep.subr.bf16.mxu0 %v6533_v31 }
 0x2d1   :  { %2393 = vmatpush1.bf16.msra.mxu0 %v6531_v32 }
 0x2d2   :  { %2394 = vmatprep.subr.bf16.mxu0 %v6536_v33 }
 0x2d5   :  { %2395 = vmatpush1.bf16.msra.mxu0 %v6534_v34 }
 0x2d6   :  { %2396 = vmatprep.subr.bf16.mxu0 %v6539_v35 }
 0x2d9   :  { %2397 = vmatpush1.bf16.msra.mxu0 %v6537_v36 }
 0x2da   :  { %2398 = vmatprep.subr.bf16.mxu0 %v6542_v37 }
 0x2dd   :  { %2399 = vmatpush1.bf16.msra.mxu0 %v6540_v39 }
 0x2de   :  { %2400 = vmatprep.subr.bf16.mxu0 %v6545_v40 }
 0x2e1   :  { %2401 = vmatpush1.bf16.msra.mxu0 %v6543_v42  ;;  %v2729_v42 = vld [vmem:[#allocation9] sm:$0x3] }
 0x2e4   :  { %2403 = vmatmul.mubr.bf16.vlgmr.msra.gmra.mrb[8].mxu0 %v1931_v44  ;;  %v2743_v44 = vsel %vm2741_vm8, 4294967295, %v7344_v43 }
 0x2e5   :  { %v2744_v45 = vsel %vm2742_vm9, %v2743_v44, 0 }
 0x2e6   :  { %v2746_v46 = vand.u32 %v2744_v45, %v2729_v42 }
 0x3b7   :  { %v2404_v63 = vpop.f32.mrb[8].mxu0 }
 0x3b8   :  { %v6046_v0 = vadd.f32 %v2404_v63, %v2002_v61  ;;  %v2406_v1 = vpop.f32.mrb[9].mxu0  ;;  %v6570_v63 = vld [vmem:[#allocation12] ss:$8 sps:$4 sm:$0xff]  }
 0x3b9   :  { %v6047_v2 = vadd.f32 %v2406_v1, %v2006_v62  ;;  %v2408_v3 = vpop.f32.mrb[10].mxu0  ;;  %v6575_v1 = vld [vmem:[#allocation12 + $0x14] ss:$8 sps:$4 sm:$0xff]  }
 0x3ba   :  { %v2413_v4 = vmin.f32 %v6046_v0, 0.0  ;;  %v2409_v5 = vpop.f32.mrb[11].mxu0  ;;  %vm2411_vm4 = vcmp.gt.f32.partialorder %v6046_v0, 0.0  ;;  %v6578_v3 = vld [vmem:[#allocation12 + $0x24] ss:$8 sps:$4 sm:$0xff]  }
 0x3bb   :  { %v2414_v6 = vmin.f32 %v6047_v2, 0.0  ;;  %vm2412_vm5 = vcmp.gt.f32.partialorder %v6047_v2, 0.0  ;;  %v6581_v5 = vld [vmem:[#allocation12 + $0x34] ss:$8 sps:$4 sm:$0xff]  }
 0x3bc   :  { %v2415_v7 = vmul.f32 1.442695, %v2413_v4  ;;  %v6576_v4 = vld [vmem:[#allocation12 + $0x20] ss:$8 sps:$4 sm:$0xff]  }
 0x3bd   :  { %v2417_v8 = vmul.f32 1.442695, %v2414_v6  ;;  %v6579_v6 = vld [vmem:[#allocation12 + $0x30] ss:$8 sps:$4 sm:$0xff]  }
 0x3be   :  { %7018 = vpow2.f32 %v2415_v7  ;;  %v6584_v7 = vld [vmem:[#allocation12 + $0x44] ss:$8 sps:$4 sm:$0xff]  }
 0x3bf   :  { %7020 = vpow2.f32 %v2417_v8  ;;  %v6582_v8 = vld [vmem:[#allocation12 + $0x40] ss:$8 sps:$4 sm:$0xff]  }
 0x3c8   :  { %v7019_v9 = vpop.eup %7018 }
 0x3c9   :  { %v7021_v10 = vpop.eup %7020  ;;  %v5595_v11 = vadd.f32 -1.0, %v7019_v9  ;;  %v6587_v9 = vld [vmem:[#allocation12 + $0x54] ss:$8 sps:$4 sm:$0xff]  }
 0x3ca   :  { %v5596_v12 = vadd.f32 -1.0, %v7021_v10  ;;  %v6585_v10 = vld [vmem:[#allocation12 + $0x50] ss:$8 sps:$4 sm:$0xff]  }
 0x3cb   :  { %v2421_v13 = vsel %vm2411_vm4, %v6046_v0, %v5595_v11  ;;  %v6590_v11 = vld [vmem:[#allocation12 + $0x64] ss:$8 sps:$4 sm:$0xff]  }
 0x3cc   :  { %v2422_v14 = vsel %vm2412_vm5, %v6047_v2, %v5596_v12  ;;  %v2423_v18 = vpack.c.bf16 %v2421_v13, %v2421_v13  ;;  %v6573_v2 = vld [vmem:[#allocation12 + $0x10] ss:$8 sps:$4 sm:$0xff]   ;;  %v6593_v12 = vld [vmem:[#allocation12 + $0x74] ss:$8 sps:$4 sm:$0xff]  }
 0x3cd   :  { %v2424_v15 = vpack.c.bf16 %v2422_v14, %v2422_v14  ;;  %v6591_v13 = vld [vmem:[#allocation12 + $0x70] ss:$8 sps:$4 sm:$0xff]  }
 0x3ce   :  { %v6596_v14 = vld [vmem:[%s8155_s14 + $0x4] ss:$16 sps:$4 sm:$0xff]  }
 0x3cf   :  { %2592 = vmatprep.mubr.bf16.mxu1 %v2424_v15  ;;  %v6597_v15 = vld [vmem:[%s8155_s14 + $0x8] ss:$16 sps:$4 sm:$0xff]  }
 0x3d0   :  { %2593 = vmatmul.mubr.bf16.vlgmr.msra.gmra.mrb[4].mxu1 %v2423_v18  ;;  %v6605_v18 = vld [vmem:[%s8155_s14 + $0x2c] ss:$16 sps:$4 sm:$0xff]  }
 0x3d1   :  { %6015 = vmatpush3.bf16.msra.mxu1 %v6562_v16  ;;  %6030 = vmatprep.mubr.msk.bf16.mxu1 %vm7343_vm6, %v7342_v59  ;;  %v6599_v16 = vld [vmem:[%s8155_s14 + $0xc] ss:$16 sps:$4 sm:$0xff]  }
 0x3d2   :  { %6016 = vmatprep.subr.bf16.mxu1 %v7342_v59  ;;  %3405 = vmatprep.subr.bf16.mxu0 %v6599_v16  ;;  %v6671_v16 = vld [vmem:[%s8155_s14 + $0x18c] ss:$16 sps:$4 sm:$0xff]  }
 0x3d3   :  { %3406 = vmatpush1.bf16.msra.mxu0 %v6597_v15  ;;  %v6668_v15 = vld [vmem:[%s8155_s14 + $0x184] ss:$16 sps:$4 sm:$0xff]  }
 0x3d4   :  { %3407 = vmatprep.subr.bf16.mxu0 %v6605_v18  ;;  %v6666_v18 = vld [vmem:[%s8155_s14 + $0x180] ss:$16 sps:$4 sm:$0xff]  }
 0x3d5   :  { %6017 = vmatpush3.bf16.msra.mxu1 %v6563_v19  ;;  %v6603_v19 = vld [vmem:[%s8155_s14 + $0x28] ss:$16 sps:$4 sm:$0xff]  }
 0x3d6   :  { %6018 = vmatprep.subr.bf16.mxu1 %v7342_v59 }
 0x3d7   :  { %3408 = vmatpush1.bf16.msra.mxu0 %v6603_v19  ;;  %v6669_v19 = vld [vmem:[%s8155_s14 + $0x188] ss:$16 sps:$4 sm:$0xff]  }
 0x3d9   :  { %6019 = vmatpush3.bf16.msra.mxu1 %v6564_v20  ;;  %v6611_v20 = vld [vmem:[%s8155_s14 + $0x4c] ss:$16 sps:$4 sm:$0xff]  }
 0x3da   :  { %6020 = vmatprep.subr.bf16.mxu1 %v7342_v59  ;;  %3409 = vmatprep.subr.bf16.mxu0 %v6611_v20  ;;  %v6674_v20 = vld [vmem:[%s8155_s14 + $0x1a4] ss:$16 sps:$4 sm:$0xff]  }
 0x3dd   :  { %6021 = vmatpush3.bf16.msra.mxu1 %v6565_v21  ;;  %v6609_v21 = vld [vmem:[%s8155_s14 + $0x48] ss:$16 sps:$4 sm:$0xff]  }
 0x3de   :  { %6022 = vmatprep.subr.bf16.mxu1 %v7342_v59  ;;  %3410 = vmatpush1.bf16.msra.mxu0 %v6609_v21  ;;  %v6677_v21 = vld [vmem:[%s8155_s14 + $0x1ac] ss:$16 sps:$4 sm:$0xff]  }
 0x3e1   :  { %6023 = vmatpush3.bf16.msra.mxu1 %v6566_v22  ;;  %v6617_v22 = vld [vmem:[%s8155_s14 + $0x6c] ss:$16 sps:$4 sm:$0xff]  }
 0x3e2   :  { %6024 = vmatprep.subr.bf16.mxu1 %v7342_v59  ;;  %3411 = vmatprep.subr.bf16.mxu0 %v6617_v22  ;;  %v6672_v22 = vld [vmem:[%s8155_s14 + $0x1a0] ss:$16 sps:$4 sm:$0xff]  }
 0x3e5   :  { %6025 = vmatpush3.bf16.msra.mxu1 %v6567_v23  ;;  %v6615_v23 = vld [vmem:[%s8155_s14 + $0x68] ss:$16 sps:$4 sm:$0xff]  }
 0x3e6   :  { %6026 = vmatprep.subr.bf16.mxu1 %v7342_v59  ;;  %3412 = vmatpush1.bf16.msra.mxu0 %v6615_v23  ;;  %v6675_v23 = vld [vmem:[%s8155_s14 + $0x1a8] ss:$16 sps:$4 sm:$0xff]  }
 0x3e9   :  { %6027 = vmatpush3.bf16.msra.mxu1 %v6568_v24  ;;  %v6623_v24 = vld [vmem:[%s8155_s14 + $0x8c] ss:$16 sps:$4 sm:$0xff]  }
 0x3ea   :  { %6028 = vmatprep.subr.bf16.mxu1 %v7342_v59  ;;  %3413 = vmatprep.subr.bf16.mxu0 %v6623_v24  ;;  %v6680_v24 = vld [vmem:[%s8155_s14 + $0x1c4] ss:$16 sps:$4 sm:$0xff]  }
 0x3ed   :  { %6029 = vmatpush3.bf16.msra.mxu1 %v6569_v25  ;;  %v6621_v25 = vld [vmem:[%s8155_s14 + $0x88] ss:$16 sps:$4 sm:$0xff]  }
 0x3ee   :  { %6034 = vmatprep.subr.bf16.mxu1 %v7342_v59  ;;  %3414 = vmatpush1.bf16.msra.mxu0 %v6621_v25  ;;  %v6683_v25 = vld [vmem:[%s8155_s14 + $0x1cc] ss:$16 sps:$4 sm:$0xff]  }
 0x4a3   :  { %v5953_v29 = vpop.f32.mrb[4].mxu1 }
 0x4a4   :  { %v5954_v31 = vpop.f32.mrb[5].mxu1 }
 0x4a5   :  { %v5955_v32 = vadd.f32 %v5954_v31, %v5953_v29  ;;  %v5956_v33 = vpop.f32.mrb[6].mxu1  ;;  %v6629_v29 = vld [vmem:[%s8155_s14 + $0xac] ss:$16 sps:$4 sm:$0xff]  }
 0x4a6   :  { %v5957_v34 = vpop.f32.mrb[7].mxu1  ;;  %3415 = vmatprep.subr.bf16.mxu0 %v6629_v29  ;;  %v6635_v31 = vld [vmem:[%s8155_s14 + $0xcc] ss:$16 sps:$4 sm:$0xff]   ;;  %v6678_v29 = vld [vmem:[%s8155_s14 + $0x1c0] ss:$16 sps:$4 sm:$0xff]  }
 0x4a7   :  { %v2595_v35 = vadd.f32 %v5955_v32, %v5597_v30  ;;  %v6627_v30 = vld [vmem:[%s8155_s14 + $0xa8] ss:$16 sps:$4 sm:$0xff]   ;;  %v6641_v33 = vld [vmem:[%s8155_s14 + $0xec] ss:$16 sps:$4 sm:$0xff]  }
 0x4a8   :  { %3416 = vmatpush1.bf16.msra.mxu0 %v6627_v30  ;;  %v6633_v32 = vld [vmem:[%s8155_s14 + $0xc8] ss:$16 sps:$4 sm:$0xff]  }
 0x4a9   :  { %v2601_v36 = vmin.f32 %v2595_v35, 0.0  ;;  %vm2600_vm7 = vcmp.gt.f32.partialorder %v2595_v35, 0.0  ;;  %3417 = vmatprep.subr.bf16.mxu0 %v6635_v31  ;;  %v6639_v34 = vld [vmem:[%s8155_s14 + $0xe8] ss:$16 sps:$4 sm:$0xff]   ;;  %v6686_v31 = vld [vmem:[%s8155_s14 + $0x1e4] ss:$16 sps:$4 sm:$0xff]  }
 0x4aa   :  { %v6681_v30 = vld [vmem:[%s8155_s14 + $0x1c8] ss:$16 sps:$4 sm:$0xff]  }
 0x4ab   :  { %v2602_v37 = vmul.f32 1.442695, %v2601_v36  ;;  %v6645_v36 = vld [vmem:[%s8155_s14 + $0x108] ss:$16 sps:$4 sm:$0xff]  }
 0x4ac   :  { %3418 = vmatpush1.bf16.msra.mxu0 %v6633_v32  ;;  %v6689_v32 = vld [vmem:[%s8155_s14 + $0x1ec] ss:$16 sps:$4 sm:$0xff]  }
 0x4ad   :  { %7022 = vpow2.f32 %v2602_v37  ;;  %3419 = vmatprep.subr.bf16.mxu0 %v6641_v33  ;;  %v6653_v37 = vld [vmem:[%s8155_s14 + $0x12c] ss:$16 sps:$4 sm:$0xff]   ;;  %v6684_v33 = vld [vmem:[%s8155_s14 + $0x1e0] ss:$16 sps:$4 sm:$0xff]  }
 0x4b0   :  { %3420 = vmatpush1.bf16.msra.mxu0 %v6639_v34  ;;  %v6687_v34 = vld [vmem:[%s8155_s14 + $0x1e8] ss:$16 sps:$4 sm:$0xff]  }
 0x4b7   :  { %v7023_v38 = vpop.eup %7022 }
 0x4b8   :  { %v5614_v39 = vadd.f32 -1.0, %v7023_v38  ;;  %v6651_v38 = vld [vmem:[%s8155_s14 + $0x128] ss:$16 sps:$4 sm:$0xff]  }
 0x4ba   :  { %v2605_v40 = vsel %vm2600_vm7, %v2595_v35, %v5614_v39  ;;  %v6647_v35 = vld [vmem:[%s8155_s14 + $0x10c] ss:$16 sps:$4 sm:$0xff]   ;;  %v5624_v39 = vld [vmem:[#allocation10] ss:$0 sm:$0xff] }
 0x4bb   :  { %v2606_v41 = vpack.c.bf16 %v2605_v40, %v2605_v40  ;;  %3421 = vmatprep.subr.bf16.mxu0 %v6647_v35  ;;  %v6692_v35 = vld [vmem:[#allocation16 + $0x4] ss:$28 sps:$4 sm:$0xff]  }
 0x4bc   :  { %3422 = vmatpush1.bf16.msra.mxu0 %v6645_v36  ;;  %v6695_v36 = vld [vmem:[#allocation16 + $0xc] ss:$28 sps:$4 sm:$0xff]  }
 0x4bd   :  { %6031 = vmatmul.mubr.bf16.vlgmr.msra.gmra.mrb[8].mxu1 %v2606_v41  ;;  %3423 = vmatprep.subr.bf16.mxu0 %v6653_v37  ;;  %v2811_v37 = vld [vmem:[#allocation13] sm:$0x3] }
 0x4be   :  { %6036 = vmatprep.mubr.msk.bf16.mxu1 %vm7343_vm6, %v7342_v59  ;;  %6035 = vmatpush3.bf16.msra.mxu1 %v2746_v46  ;;  %v2718_v59 = vld [vmem:[%s8171_s13] sm:$0xff] }
 0x4bf   :  { %2903 = vmatprep.subr.bf16.mxu1 %v6572_v57  ;;  %v6606_v57 = vld [vmem:[%s8155_s14 + $0x40] ss:$16 sps:$4 sm:$0xff]  }
 0x4c0   :  { %3424 = vmatpush1.bf16.msra.mxu0 %v6651_v38  ;;  %v2816_v38 = vrot.slane %v2811_v37, %v7703_v27 }
 0x590   :  { %v2712_v48 = vpop.f32.mrb[8].mxu1 }
 0x591   :  { %v2713_v49 = vadd.f32 %v5615_v47, %v2712_v48  ;;  %v6032_v51 = vpop.f32.mrb[9].mxu1 }
 0x592   :  { %v2715_v52 = vpop.f32.mrb[10].mxu1  ;;  %v6594_v51 = vld [vmem:[%s8155_s14] ss:$16 sps:$4 sm:$0xff]  }
 0x593   :  { %v2719_v54 = vmul.f32 0.5, %v2713_v49  ;;  %5288 = vst.msk [vmem:[%s8160_s19] sm:$0xff] %vm5287_vm10, %v2713_v49  ;;  %v6033_v55 = vpop.f32.mrb[11].mxu1 }
 0x594   :  { %v6600_v55 = vld [vmem:[%s8155_s14 + $0x20] ss:$16 sps:$4 sm:$0xff]  }
 0x595   :  { %v2720_v56 = vmul.f32 1.442695, %v2719_v54  ;;  %v6602_v54 = vld [vmem:[%s8155_s14 + $0x24] ss:$16 sps:$4 sm:$0xff]  }
 0x597   :  { %7024 = vpow2.f32 %v2720_v56  ;;  %v6608_v56 = vld [vmem:[%s8155_s14 + $0x44] ss:$16 sps:$4 sm:$0xff]  }
 0x5a1   :  { %v7025_v58 = vpop.eup %7024 }
 0x5a2   :  { %2723 = vrot.lane.b32.xlu0 %v7025_v58, %s7345_s10  ;;  %v6614_v58 = vld [vmem:[%s8155_s14 + $0x64] ss:$16 sps:$4 sm:$0xff]  }
 0x614   :  { %v2724_v60 = vpop.permute.xlu0 %2723 }
 0x615   :  { %v2726_v61 = vmul.f32 %v2724_v60, %v2718_v59  ;;  %v6612_v59 = vld [vmem:[%s8155_s14 + $0x60] ss:$16 sps:$4 sm:$0xff]   ;;  %v6620_v60 = vld [vmem:[%s8155_s14 + $0x84] ss:$16 sps:$4 sm:$0xff]  }
 0x617   :  { %v2727_v62 = vadd.f32 %v2726_v61, %v2713_v49  ;;  %v6618_v61 = vld [vmem:[%s8155_s14 + $0x80] ss:$16 sps:$4 sm:$0xff]  }
 0x619   :  { %v2728_v0 = vpack.c.bf16 %v2727_v62, %v2727_v62  ;;  %v6626_v62 = vld [vmem:[%s8155_s14 + $0xa4] ss:$16 sps:$4 sm:$0xff]  }
 0x61b   :  { %6037 = vmatmul.mubr.msk.bf16.vlgmr.msra.gmra.mrb[12].mxu1 %vm2737_vm11, %v2728_v0  ;;  %v6632_v0 = vld [vmem:[%s8155_s14 + $0xc4] ss:$16 sps:$4 sm:$0xff]  }
 0x61c   :  { %2904 = vmatpush1.bf16.msra.mxu1 %v6570_v63  ;;  %2935 = vmatprep.mubr.bf16.mxu1 %v7341_v17  ;;  %v6588_v17 = vld [vmem:[#allocation12 + $0x60] ss:$8 sps:$4 sm:$0xff]  }
 0x61d   :  { %2905 = vmatprep.subr.bf16.mxu1 %v6575_v1  ;;  %v6624_v63 = vld [vmem:[%s8155_s14 + $0xa0] ss:$16 sps:$4 sm:$0xff]  }
 0x61e   :  { %v6630_v1 = vld [vmem:[%s8155_s14 + $0xc0] ss:$16 sps:$4 sm:$0xff]  }
 0x620   :  { %2906 = vmatpush1.bf16.msra.mxu1 %v6573_v2  ;;  %v6638_v2 = vld [vmem:[%s8155_s14 + $0xe4] ss:$16 sps:$4 sm:$0xff]  }
 0x621   :  { %2907 = vmatprep.subr.bf16.mxu1 %v6578_v3  ;;  %v6636_v3 = vld [vmem:[%s8155_s14 + $0xe0] ss:$16 sps:$4 sm:$0xff]  }
 0x624   :  { %2908 = vmatpush1.bf16.msra.mxu1 %v6576_v4  ;;  %v6644_v4 = vld [vmem:[%s8155_s14 + $0x104] ss:$16 sps:$4 sm:$0xff]  }
 0x625   :  { %2909 = vmatprep.subr.bf16.mxu1 %v6581_v5  ;;  %v6642_v5 = vld [vmem:[%s8155_s14 + $0x100] ss:$16 sps:$4 sm:$0xff]  }
 0x628   :  { %2910 = vmatpush1.bf16.msra.mxu1 %v6579_v6  ;;  %v6650_v6 = vld [vmem:[%s8155_s14 + $0x124] ss:$16 sps:$4 sm:$0xff]  }
 0x629   :  { %2911 = vmatprep.subr.bf16.mxu1 %v6584_v7  ;;  %v6648_v7 = vld [vmem:[%s8155_s14 + $0x120] ss:$16 sps:$4 sm:$0xff]  }
 0x62c   :  { %2912 = vmatpush1.bf16.msra.mxu1 %v6582_v8  ;;  %v6656_v8 = vld [vmem:[%s8155_s14 + $0x144] ss:$16 sps:$4 sm:$0xff]  }
 0x62d   :  { %2913 = vmatprep.subr.bf16.mxu1 %v6587_v9  ;;  %v6659_v9 = vld [vmem:[%s8155_s14 + $0x14c] ss:$16 sps:$4 sm:$0xff]  }
 0x62e   :  { %3425 = vmatprep.subr.bf16.mxu0 %v6659_v9  ;;  %v6711_v9 = vld [vmem:[#allocation16 + $0xb0] ss:$28 sps:$4 sm:$0xff]  }
 0x630   :  { %2914 = vmatpush1.bf16.msra.mxu1 %v6585_v10  ;;  %v6654_v10 = vld [vmem:[%s8155_s14 + $0x140] ss:$16 sps:$4 sm:$0xff]  }
 0x631   :  { %2915 = vmatprep.subr.bf16.mxu1 %v6590_v11  ;;  %v6657_v11 = vld [vmem:[%s8155_s14 + $0x148] ss:$16 sps:$4 sm:$0xff]  }
 0x632   :  { %3426 = vmatpush1.bf16.msra.mxu0 %v6657_v11  ;;  %v6719_v11 = vld [vmem:[#allocation16 + $0xec] ss:$28 sps:$4 sm:$0xff]  }
 0x634   :  { %2916 = vmatpush1.bf16.msra.mxu1 %v6588_v17  ;;  %v6662_v17 = vld [vmem:[%s8155_s14 + $0x164] ss:$16 sps:$4 sm:$0xff]  }
 0x635   :  { %2917 = vmatprep.subr.bf16.mxu1 %v6593_v12  ;;  %v6665_v12 = vld [vmem:[%s8155_s14 + $0x16c] ss:$16 sps:$4 sm:$0xff]  }
 0x636   :  { %3427 = vmatprep.subr.bf16.mxu0 %v6665_v12  ;;  %v6717_v12 = vld [vmem:[#allocation16 + $0xe8] ss:$28 sps:$4 sm:$0xff]  }
 0x638   :  { %2918 = vmatpush1.bf16.msra.mxu1 %v6591_v13  ;;  %v6660_v13 = vld [vmem:[%s8155_s14 + $0x160] ss:$16 sps:$4 sm:$0xff]  }
 0x639   :  { %3364 = vmatprep.subr.bf16.mxu1 %v6596_v14  ;;  %v6663_v14 = vld [vmem:[%s8155_s14 + $0x168] ss:$16 sps:$4 sm:$0xff]  }
 0x63a   :  { %3428 = vmatpush1.bf16.msra.mxu0 %v6663_v14  ;;  %v6725_v14 = vld [vmem:[#allocation16 + $0x124] ss:$28 sps:$4 sm:$0xff]  }
 0x63b   :  { %3429 = vmatprep.subr.bf16.mxu0 %v6671_v16  ;;  %v6723_v16 = vld [vmem:[#allocation16 + $0x120] ss:$28 sps:$4 sm:$0xff]  }
 0x63e   :  { %3430 = vmatpush1.bf16.msra.mxu0 %v6669_v19  ;;  %v6731_v19 = vld [vmem:[#allocation16 + $0x15c] ss:$28 sps:$4 sm:$0xff]  }
 0x63f   :  { %3431 = vmatprep.subr.bf16.mxu0 %v6677_v21  ;;  %v6729_v21 = vld [vmem:[#allocation16 + $0x158] ss:$28 sps:$4 sm:$0xff]  }
 0x642   :  { %3432 = vmatpush1.bf16.msra.mxu0 %v6675_v23  ;;  %v6737_v23 = vld [vmem:[#allocation16 + $0x194] ss:$28 sps:$4 sm:$0xff]  }
 0x643   :  { %3433 = vmatprep.subr.bf16.mxu0 %v6683_v25  ;;  %v6735_v25 = vld [vmem:[#allocation16 + $0x190] ss:$28 sps:$4 sm:$0xff]  }
 0x646   :  { %3434 = vmatpush1.bf16.msra.mxu0 %v6681_v30  ;;  %v6743_v30 = vld [vmem:[#allocation16 + $0x1cc] ss:$28 sps:$4 sm:$0xff]  }
 0x647   :  { %3435 = vmatprep.subr.bf16.mxu0 %v6689_v32  ;;  %v6741_v32 = vld [vmem:[#allocation16 + $0x1c8] ss:$28 sps:$4 sm:$0xff]  }
 0x64a   :  { %3436 = vmatpush1.bf16.msra.mxu0 %v6687_v34  ;;  %v6749_v34 = vld [vmem:[#allocation16 + $0x204] ss:$28 sps:$4 sm:$0xff]  }
 0x64b   :  { %5001 = vmatprep.subr.bf16.mxu0 %v6695_v36  ;;  %v6747_v36 = vld [vmem:[#allocation16 + $0x200] ss:$28 sps:$4 sm:$0xff]  }
 0x6ee   :  { %v2782_v40 = vpop.f32.mrb[12].mxu1 }
 0x6ef   :  { %v2783_v41 = vadd.f32 %v5624_v39, %v2782_v40  ;;  %v6038_v42 = vpop.f32.mrb[13].mxu1  ;;  %v2820_v39 = vrot.slane %v2811_v37, %v7706_v28  ;;  %v6752_v37 = vld [vmem:[#allocation16 + $0x234] ss:$28 sps:$4 sm:$0xff]  }
 0x6f0   :  { %v2785_v43 = vpop.f32.mrb[14].mxu1 }
 0x6f1   :  { %v2789_v44 = vmin.f32 %v2783_v41, 0.0  ;;  %v6039_v45 = vpop.f32.mrb[15].mxu1  ;;  %vm2788_vm12 = vcmp.gt.f32.partialorder %v2783_v41, 0.0 }
 0x6f3   :  { %v2790_v46 = vmul.f32 1.442695, %v2789_v44 }
 0x6f5   :  { %7026 = vpow2.f32 %v2790_v46 }
 0x6ff   :  { %v7027_v47 = vpop.eup %7026 }
 0x700   :  { %v5626_v48 = vadd.f32 -1.0, %v7027_v47 }
 0x702   :  { %v2793_v49 = vsel %vm2788_vm12, %v2783_v41, %v5626_v48 }
 0x703   :  { %v2794_v52 = vpack.c.bf16 %v2793_v49, %v2793_v49 }
 0x705   :  { %2936 = vmatmul.mubr.bf16.vlgmr.msra.gmra.mrb[16].mxu1 %v2794_v52 }
 0x706   :  { %3365 = vmatpush1.bf16.msra.mxu1 %v6594_v51 }
 0x707   :  { %3366 = vmatprep.subr.bf16.mxu1 %v6602_v54 }
 0x70a   :  { %3367 = vmatpush1.bf16.msra.mxu1 %v6600_v55 }
 0x70b   :  { %3368 = vmatprep.subr.bf16.mxu1 %v6608_v56 }
 0x70e   :  { %3369 = vmatpush1.bf16.msra.mxu1 %v6606_v57 }
 0x70f   :  { %3370 = vmatprep.subr.bf16.mxu1 %v6614_v58 }
 0x712   :  { %3371 = vmatpush1.bf16.msra.mxu1 %v6612_v59  ;;  %v6690_v59 = vld [vmem:[#allocation16] ss:$28 sps:$4 sm:$0xff]  }
 0x713   :  { %3372 = vmatprep.subr.bf16.mxu1 %v6620_v60  ;;  %v6693_v60 = vld [vmem:[#allocation16 + $0x8] ss:$28 sps:$4 sm:$0xff]  }
 0x716   :  { %3373 = vmatpush1.bf16.msra.mxu1 %v6618_v61 }
 0x717   :  { %3374 = vmatprep.subr.bf16.mxu1 %v6626_v62  ;;  %v6698_v62 = vld [vmem:[#allocation16 + $0x3c] ss:$28 sps:$4 sm:$0xff]  }
 0x71a   :  { %3375 = vmatpush1.bf16.msra.mxu1 %v6624_v63  ;;  %v6701_v63 = vld [vmem:[#allocation16 + $0x44] ss:$28 sps:$4 sm:$0xff]  }
 0x71b   :  { %3376 = vmatprep.subr.bf16.mxu1 %v6632_v0  ;;  %v6696_v0 = vld [vmem:[#allocation16 + $0x38] ss:$28 sps:$4 sm:$0xff]  }
 0x71e   :  { %3377 = vmatpush1.bf16.msra.mxu1 %v6630_v1  ;;  %v6699_v1 = vld [vmem:[#allocation16 + $0x40] ss:$28 sps:$4 sm:$0xff]  }
 0x71f   :  { %3378 = vmatprep.subr.bf16.mxu1 %v6638_v2  ;;  %v6704_v2 = vld [vmem:[#allocation16 + $0x74] ss:$28 sps:$4 sm:$0xff]  }
 0x722   :  { %3379 = vmatpush1.bf16.msra.mxu1 %v6636_v3  ;;  %v6707_v3 = vld [vmem:[#allocation16 + $0x7c] ss:$28 sps:$4 sm:$0xff]  }
 0x723   :  { %3380 = vmatprep.subr.bf16.mxu1 %v6644_v4  ;;  %v6702_v4 = vld [vmem:[#allocation16 + $0x70] ss:$28 sps:$4 sm:$0xff]  }
 0x726   :  { %3381 = vmatpush1.bf16.msra.mxu1 %v6642_v5  ;;  %v6705_v5 = vld [vmem:[#allocation16 + $0x78] ss:$28 sps:$4 sm:$0xff]  }
 0x727   :  { %3382 = vmatprep.subr.bf16.mxu1 %v6650_v6  ;;  %v6710_v6 = vld [vmem:[#allocation16 + $0xac] ss:$28 sps:$4 sm:$0xff]  }
 0x72a   :  { %3383 = vmatpush1.bf16.msra.mxu1 %v6648_v7  ;;  %v6713_v7 = vld [vmem:[#allocation16 + $0xb4] ss:$28 sps:$4 sm:$0xff]  }
 0x72b   :  { %3384 = vmatprep.subr.bf16.mxu1 %v6656_v8  ;;  %v6708_v8 = vld [vmem:[#allocation16 + $0xa8] ss:$28 sps:$4 sm:$0xff]  }
 0x72e   :  { %3385 = vmatpush1.bf16.msra.mxu1 %v6654_v10  ;;  %v6716_v10 = vld [vmem:[#allocation16 + $0xe4] ss:$28 sps:$4 sm:$0xff]  }
 0x72f   :  { %3386 = vmatprep.subr.bf16.mxu1 %v6662_v17  ;;  %v6714_v17 = vld [vmem:[#allocation16 + $0xe0] ss:$28 sps:$4 sm:$0xff]  }
 0x732   :  { %3387 = vmatpush1.bf16.msra.mxu1 %v6660_v13  ;;  %v6722_v13 = vld [vmem:[#allocation16 + $0x11c] ss:$28 sps:$4 sm:$0xff]  }
 0x733   :  { %3388 = vmatprep.subr.bf16.mxu1 %v6668_v15  ;;  %v6720_v15 = vld [vmem:[#allocation16 + $0x118] ss:$28 sps:$4 sm:$0xff]  }
 0x736   :  { %3389 = vmatpush1.bf16.msra.mxu1 %v6666_v18  ;;  %v6728_v18 = vld [vmem:[#allocation16 + $0x154] ss:$28 sps:$4 sm:$0xff]  }
 0x737   :  { %3390 = vmatprep.subr.bf16.mxu1 %v6674_v20  ;;  %v6726_v20 = vld [vmem:[#allocation16 + $0x150] ss:$28 sps:$4 sm:$0xff]  }
 0x73a   :  { %3391 = vmatpush1.bf16.msra.mxu1 %v6672_v22  ;;  %v6734_v22 = vld [vmem:[#allocation16 + $0x18c] ss:$28 sps:$4 sm:$0xff]  }
 0x73b   :  { %3392 = vmatprep.subr.bf16.mxu1 %v6680_v24  ;;  %v6732_v24 = vld [vmem:[#allocation16 + $0x188] ss:$28 sps:$4 sm:$0xff]  }
 0x73e   :  { %3393 = vmatpush1.bf16.msra.mxu1 %v6678_v29  ;;  %v6740_v29 = vld [vmem:[#allocation16 + $0x1c4] ss:$28 sps:$4 sm:$0xff]  }
 0x73f   :  { %3394 = vmatprep.subr.bf16.mxu1 %v6686_v31  ;;  %v6738_v31 = vld [vmem:[#allocation16 + $0x1c0] ss:$28 sps:$4 sm:$0xff]  }
 0x742   :  { %3395 = vmatpush1.bf16.msra.mxu1 %v6684_v33  ;;  %v6746_v33 = vld [vmem:[#allocation16 + $0x1fc] ss:$28 sps:$4 sm:$0xff]  }
 0x743   :  { %4919 = vmatprep.subr.bf16.mxu1 %v6692_v35  ;;  %v6744_v35 = vld [vmem:[#allocation16 + $0x1f8] ss:$28 sps:$4 sm:$0xff]  }
 0x7d8   :  { %v2937_v40 = vpop.f32.mrb[16].mxu1 }
 0x7d9   :  { %v2938_v41 = vadd.f32 %v2937_v40, %v2816_v38  ;;  %v2939_v42 = vpop.f32.mrb[17].mxu1  ;;  %v6755_v38 = vld [vmem:[#allocation16 + $0x23c] ss:$28 sps:$4 sm:$0xff]  }
 0x7da   :  { %v2940_v43 = vadd.f32 %v2939_v42, %v2820_v39  ;;  %v2941_v44 = vpop.f32.mrb[18].mxu1  ;;  %v6750_v39 = vld [vmem:[#allocation16 + $0x230] ss:$28 sps:$4 sm:$0xff]   ;;  %v6753_v40 = vld [vmem:[#allocation16 + $0x238] ss:$28 sps:$4 sm:$0xff]  }
 0x7db   :  { %v2946_v45 = vmin.f32 %v2938_v41, 0.0  ;;  %v2942_v46 = vpop.f32.mrb[19].mxu1  ;;  %vm2944_vm13 = vcmp.gt.f32.partialorder %v2938_v41, 0.0  ;;  %v6761_v42 = vld [vmem:[#allocation16 + $0x274] ss:$28 sps:$4 sm:$0xff]  }
 0x7dc   :  { %v2947_v47 = vmin.f32 %v2940_v43, 0.0  ;;  %vm2945_vm14 = vcmp.gt.f32.partialorder %v2940_v43, 0.0  ;;  %v6759_v44 = vld [vmem:[#allocation16 + $0x270] ss:$28 sps:$4 sm:$0xff]  }
 0x7dd   :  { %v2948_v48 = vmul.f32 1.442695, %v2946_v45  ;;  %v6764_v45 = vld [vmem:[#allocation16 + $0x2a4] ss:$28 sps:$4 sm:$0xff]   ;;  %v6767_v46 = vld [vmem:[#allocation16 + $0x2ac] ss:$28 sps:$4 sm:$0xff]  }
 0x7de   :  { %v2950_v49 = vmul.f32 1.442695, %v2947_v47  ;;  %v6762_v47 = vld [vmem:[#allocation16 + $0x2a0] ss:$28 sps:$4 sm:$0xff]  }
 0x7df   :  { %7028 = vpow2.f32 %v2948_v48  ;;  %v6765_v48 = vld [vmem:[#allocation16 + $0x2a8] ss:$28 sps:$4 sm:$0xff]  }
 0x7e0   :  { %7030 = vpow2.f32 %v2950_v49  ;;  %v6770_v49 = vld [vmem:[#allocation16 + $0x2dc] ss:$28 sps:$4 sm:$0xff]  }
 0x7e9   :  { %v7029_v51 = vpop.eup %7028 }
 0x7ea   :  { %v7031_v52 = vpop.eup %7030  ;;  %v5643_v54 = vadd.f32 -1.0, %v7029_v51  ;;  %v6773_v51 = vld [vmem:[#allocation16 + $0x2e4] ss:$28 sps:$4 sm:$0xff]  }
 0x7eb   :  { %v5644_v55 = vadd.f32 -1.0, %v7031_v52  ;;  %v6768_v52 = vld [vmem:[#allocation16 + $0x2d8] ss:$28 sps:$4 sm:$0xff]  }
 0x7ec   :  { %v2954_v56 = vsel %vm2944_vm13, %v2938_v41, %v5643_v54  ;;  %v6758_v41 = vld [vmem:[#allocation16 + $0x26c] ss:$28 sps:$4 sm:$0xff]   ;;  %v6771_v54 = vld [vmem:[#allocation16 + $0x2e0] ss:$28 sps:$4 sm:$0xff]  }
 0x7ed   :  { %v2955_v57 = vsel %vm2945_vm14, %v2940_v43, %v5644_v55  ;;  %v2956_v61 = vpack.c.bf16 %v2954_v56, %v2954_v56  ;;  %v6756_v43 = vld [vmem:[#allocation16 + $0x268] ss:$28 sps:$4 sm:$0xff]   ;;  %v6776_v55 = vld [vmem:[#allocation16 + $0x314] ss:$28 sps:$4 sm:$0xff]   ;;  %v6779_v56 = vld [vmem:[#allocation16 + $0x31c] ss:$28 sps:$4 sm:$0xff]  }
 0x7ee   :  { %v2957_v58 = vpack.c.bf16 %v2955_v57, %v2955_v57  ;;  %v6774_v57 = vld [vmem:[#allocation16 + $0x310] ss:$28 sps:$4 sm:$0xff]  }
 0x7f0   :  { %3396 = vmatprep.mubr.bf16.mxu1 %v2957_v58  ;;  %3437 = vmatprep.mubr.bf16.mxu0 %v2957_v58  ;;  %v6777_v58 = vld [vmem:[#allocation16 + $0x318] ss:$28 sps:$4 sm:$0xff]  }
 0x7f1   :  { %3397 = vmatmul.mubr.bf16.vlgmr.msra.gmra.mrb[20].mxu1 %v2956_v61  ;;  %3438 = vmatmul.mubr.bf16.vlgmr.msra.gmra.mrb[12].mxu0 %v2956_v61  ;;  %v6780_v61 = vld [vmem:[#allocation16 + $0x348] ss:$28 sps:$4 sm:$0xff]  }
 0x7f2   :  { %4920 = vmatpush1.bf16.msra.mxu1 %v6690_v59  ;;  %5002 = vmatpush1.bf16.msra.mxu0 %v6693_v60  ;;  %v6782_v59 = vld [vmem:[#allocation16 + $0x34c] ss:$28 sps:$4 sm:$0xff]   ;;  %v6785_v60 = vld [vmem:[#allocation16 + $0x354] ss:$28 sps:$4 sm:$0xff]  }
 0x7f3   :  { %4921 = vmatprep.subr.bf16.mxu1 %v6698_v62  ;;  %5003 = vmatprep.subr.bf16.mxu0 %v6701_v63  ;;  %v6783_v62 = vld [vmem:[#allocation16 + $0x350] ss:$28 sps:$4 sm:$0xff]   ;;  %v6788_v63 = vld [vmem:[#allocation16 + $0x384] ss:$28 sps:$4 sm:$0xff]  }
 0x7f6   :  { %4922 = vmatpush1.bf16.msra.mxu1 %v6696_v0  ;;  %5004 = vmatpush1.bf16.msra.mxu0 %v6699_v1  ;;  %v6791_v0 = vld [vmem:[#allocation16 + $0x38c] ss:$28 sps:$4 sm:$0xff]   ;;  %v8062_v1 = vld [vmem:[#allocation15] sm:$0xf] }
 0x7f7   :  { %4923 = vmatprep.subr.bf16.mxu1 %v6704_v2  ;;  %5005 = vmatprep.subr.bf16.mxu0 %v6707_v3  ;;  %v3027_v2 = vrot.slane %v8062_v1, %v7703_v27  ;;  %v3031_v3 = vrot.slane %v8062_v1, %v7706_v28 }
 0x7fa   :  { %4924 = vmatpush1.bf16.msra.mxu1 %v6702_v4  ;;  %5006 = vmatpush1.bf16.msra.mxu0 %v6705_v5  ;;  %v3039_v4 = vrot.slane %v8062_v1, %v7720_v53 }
 0x7fb   :  { %4925 = vmatprep.subr.bf16.mxu1 %v6710_v6  ;;  %5007 = vmatprep.subr.bf16.mxu0 %v6713_v7 }
 0x7fe   :  { %4926 = vmatpush1.bf16.msra.mxu1 %v6708_v8  ;;  %5008 = vmatpush1.bf16.msra.mxu0 %v6711_v9 }
 0x7ff   :  { %4927 = vmatprep.subr.bf16.mxu1 %v6716_v10  ;;  %5009 = vmatprep.subr.bf16.mxu0 %v6719_v11 }
 0x802   :  { %4928 = vmatpush1.bf16.msra.mxu1 %v6714_v17  ;;  %5010 = vmatpush1.bf16.msra.mxu0 %v6717_v12 }
 0x803   :  { %4929 = vmatprep.subr.bf16.mxu1 %v6722_v13  ;;  %5011 = vmatprep.subr.bf16.mxu0 %v6725_v14 }
 0x806   :  { %4930 = vmatpush1.bf16.msra.mxu1 %v6720_v15  ;;  %5012 = vmatpush1.bf16.msra.mxu0 %v6723_v16 }
 0x807   :  { %4931 = vmatprep.subr.bf16.mxu1 %v6728_v18  ;;  %5013 = vmatprep.subr.bf16.mxu0 %v6731_v19 }
 0x80a   :  { %4932 = vmatpush1.bf16.msra.mxu1 %v6726_v20  ;;  %5014 = vmatpush1.bf16.msra.mxu0 %v6729_v21 }
 0x80b   :  { %4933 = vmatprep.subr.bf16.mxu1 %v6734_v22  ;;  %5015 = vmatprep.subr.bf16.mxu0 %v6737_v23 }
 0x80e   :  { %4934 = vmatpush1.bf16.msra.mxu1 %v6732_v24  ;;  %5016 = vmatpush1.bf16.msra.mxu0 %v6735_v25 }
 0x80f   :  { %4935 = vmatprep.subr.bf16.mxu1 %v6740_v29  ;;  %5017 = vmatprep.subr.bf16.mxu0 %v6743_v30 }
 0x812   :  { %4936 = vmatpush1.bf16.msra.mxu1 %v6738_v31  ;;  %5018 = vmatpush1.bf16.msra.mxu0 %v6741_v32 }
 0x813   :  { %4937 = vmatprep.subr.bf16.mxu1 %v6746_v33  ;;  %5019 = vmatprep.subr.bf16.mxu0 %v6749_v34 }
 0x816   :  { %4938 = vmatpush1.bf16.msra.mxu1 %v6744_v35  ;;  %5020 = vmatpush1.bf16.msra.mxu0 %v6747_v36  ;;  %v6786_v35 = vld [vmem:[#allocation16 + $0x380] ss:$28 sps:$4 sm:$0xff]   ;;  %v6789_v36 = vld [vmem:[#allocation16 + $0x388] ss:$28 sps:$4 sm:$0xff]  }
 0x817   :  { %4939 = vmatprep.subr.bf16.mxu1 %v6752_v37  ;;  %5021 = vmatprep.subr.bf16.mxu0 %v6755_v38  ;;  %v6794_v38 = vld [vmem:[#allocation16 + $0x3bc] ss:$28 sps:$4 sm:$0xff]  }
 0x81a   :  { %4940 = vmatpush1.bf16.msra.mxu1 %v6750_v39  ;;  %5022 = vmatpush1.bf16.msra.mxu0 %v6753_v40  ;;  %v6797_v39 = vld [vmem:[#allocation16 + $0x3c4] ss:$28 sps:$4 sm:$0xff]  }
 0x81b   :  { %4941 = vmatprep.subr.bf16.mxu1 %v6758_v41  ;;  %5023 = vmatprep.subr.bf16.mxu0 %v6761_v42  ;;  %v6792_v41 = vld [vmem:[#allocation16 + $0x3b8] ss:$28 sps:$4 sm:$0xff]   ;;  %v6795_v42 = vld [vmem:[#allocation16 + $0x3c0] ss:$28 sps:$4 sm:$0xff]  }
 0x81e   :  { %4942 = vmatpush1.bf16.msra.mxu1 %v6756_v43  ;;  %5024 = vmatpush1.bf16.msra.mxu0 %v6759_v44  ;;  %v6800_v43 = vld [vmem:[#allocation16 + $0x3f4] ss:$28 sps:$4 sm:$0xff]   ;;  %v6803_v44 = vld [vmem:[#allocation16 + $0x3fc] ss:$28 sps:$4 sm:$0xff]  }
 0x81f   :  { %4943 = vmatprep.subr.bf16.mxu1 %v6764_v45  ;;  %5025 = vmatprep.subr.bf16.mxu0 %v6767_v46  ;;  %v6798_v45 = vld [vmem:[#allocation16 + $0x3f0] ss:$28 sps:$4 sm:$0xff]   ;;  %v6801_v46 = vld [vmem:[#allocation16 + $0x3f8] ss:$28 sps:$4 sm:$0xff]  }
 0x822   :  { %4944 = vmatpush1.bf16.msra.mxu1 %v6762_v47  ;;  %5026 = vmatpush1.bf16.msra.mxu0 %v6765_v48  ;;  %v6806_v47 = vld [vmem:[#allocation16 + $0x42c] ss:$28 sps:$4 sm:$0xff]   ;;  %v6809_v48 = vld [vmem:[#allocation16 + $0x434] ss:$28 sps:$4 sm:$0xff]  }
 0x823   :  { %4945 = vmatprep.subr.bf16.mxu1 %v6770_v49  ;;  %5027 = vmatprep.subr.bf16.mxu0 %v6773_v51  ;;  %v6804_v49 = vld [vmem:[#allocation16 + $0x428] ss:$28 sps:$4 sm:$0xff]   ;;  %v6807_v51 = vld [vmem:[#allocation16 + $0x430] ss:$28 sps:$4 sm:$0xff]  }
 0x826   :  { %4946 = vmatpush1.bf16.msra.mxu1 %v6768_v52  ;;  %5028 = vmatpush1.bf16.msra.mxu0 %v6771_v54  ;;  %v6812_v52 = vld [vmem:[#allocation16 + $0x464] ss:$28 sps:$4 sm:$0xff]   ;;  %v6815_v54 = vld [vmem:[#allocation16 + $0x46c] ss:$28 sps:$4 sm:$0xff]  }
 0x827   :  { %4947 = vmatprep.subr.bf16.mxu1 %v6776_v55  ;;  %5029 = vmatprep.subr.bf16.mxu0 %v6779_v56  ;;  %v6810_v55 = vld [vmem:[#allocation16 + $0x460] ss:$28 sps:$4 sm:$0xff]   ;;  %v6813_v56 = vld [vmem:[#allocation16 + $0x468] ss:$28 sps:$4 sm:$0xff]  }
 0x82a   :  { %4948 = vmatpush1.bf16.msra.mxu1 %v6774_v57  ;;  %5030 = vmatpush1.bf16.msra.mxu0 %v6777_v58  ;;  %v6818_v57 = vld [vmem:[#allocation16 + $0x49c] ss:$28 sps:$4 sm:$0xff]   ;;  %v6821_v58 = vld [vmem:[#allocation16 + $0x4a4] ss:$28 sps:$4 sm:$0xff]  }
 0x82b   :  { %4949 = vmatprep.subr.bf16.mxu1 %v6782_v59  ;;  %5031 = vmatprep.subr.bf16.mxu0 %v6785_v60  ;;  %v6816_v59 = vld [vmem:[#allocation16 + $0x498] ss:$28 sps:$4 sm:$0xff]   ;;  %v6819_v60 = vld [vmem:[#allocation16 + $0x4a0] ss:$28 sps:$4 sm:$0xff]  }
 0x82e   :  { %4950 = vmatpush1.bf16.msra.mxu1 %v6780_v61  ;;  %5032 = vmatpush1.bf16.msra.mxu0 %v6783_v62  ;;  %v6824_v61 = vld [vmem:[#allocation16 + $0x4d4] ss:$28 sps:$4 sm:$0xff]   ;;  %v6827_v62 = vld [vmem:[#allocation16 + $0x4dc] ss:$28 sps:$4 sm:$0xff]  }
 0x82f   :  { %4960 = vmatprep.subr.bf16.mxu1 %v6788_v63  ;;  %5042 = vmatprep.subr.bf16.mxu0 %v6791_v0  ;;  %v6822_v63 = vld [vmem:[#allocation16 + $0x4d0] ss:$28 sps:$4 sm:$0xff]   ;;  %v6825_v0 = vld [vmem:[#allocation16 + $0x4d8] ss:$28 sps:$4 sm:$0xff]  }
 0x8c4   :  { %v3398_v5 = vpop.f32.mrb[20].mxu1  ;;  %v8070_v6 = vpop.f32.mrb[12].mxu0 }
 0x8c5   :  { %v3399_v7 = vadd.f32 %v3398_v5, %v3027_v2  ;;  %v3400_v8 = vpop.f32.mrb[21].mxu1  ;;  %v3441_v9 = vpop.f32.mrb[13].mxu0  ;;  %v6830_v2 = vld [vmem:[#allocation16 + $0x50c] ss:$28 sps:$4 sm:$0xff]  }
 0x8c6   :  { %v3401_v10 = vadd.f32 %v3400_v8, %v3031_v3  ;;  %v3442_v11 = vadd.f32 %v3441_v9, %v3039_v4  ;;  %v3402_v17 = vpop.f32.mrb[22].mxu1  ;;  %v3443_v12 = vpop.f32.mrb[14].mxu0  ;;  %v6833_v3 = vld [vmem:[#allocation16 + $0x514] ss:$28 sps:$4 sm:$0xff]   ;;  %v6828_v4 = vld [vmem:[#allocation16 + $0x508] ss:$28 sps:$4 sm:$0xff]  }
 0x8c7   :  { %v3450_v13 = vmin.f32 %v3399_v7, 0.0  ;;  %v3403_v14 = vpop.f32.mrb[23].mxu1  ;;  %v3444_v15 = vpop.f32.mrb[15].mxu0  ;;  %vm3446_vm15 = vcmp.gt.f32.partialorder %v3399_v7, 0.0  ;;  %v6831_v5 = vld [vmem:[#allocation16 + $0x510] ss:$28 sps:$4 sm:$0xff]  }
 0x8c8   :  { %v3451_v16 = vmin.f32 %v3401_v10, 0.0  ;;  %v3453_v18 = vmin.f32 %v3442_v11, 0.0  ;;  %vm3447_vm0 = vcmp.gt.f32.partialorder %v3401_v10, 0.0  ;;  %vm3449_vm1 = vcmp.gt.f32.partialorder %v3442_v11, 0.0  ;;  %v6836_v8 = vld [vmem:[#allocation16 + $0x544] ss:$28 sps:$4 sm:$0xff]  }
 0x8c9   :  { %v3454_v19 = vmul.f32 1.442695, %v3450_v13  ;;  %v6839_v9 = vld [vmem:[#allocation16 + $0x54c] ss:$28 sps:$4 sm:$0xff]   ;;  %v6842_v12 = vld [vmem:[#allocation16 + $0x57c] ss:$28 sps:$4 sm:$0xff]  }
 0x8ca   :  { %v3456_v20 = vmul.f32 1.442695, %v3451_v16  ;;  %v3460_v21 = vmul.f32 1.442695, %v3453_v18  ;;  %v6845_v13 = vld [vmem:[#allocation16 + $0x584] ss:$28 sps:$4 sm:$0xff]  }
 0x8cb   :  { %7032 = vpow2.f32 %v3454_v19  ;;  %v6840_v14 = vld [vmem:[#allocation16 + $0x578] ss:$28 sps:$4 sm:$0xff]   ;;  %v6843_v15 = vld [vmem:[#allocation16 + $0x580] ss:$28 sps:$4 sm:$0xff]   ;;  %v6846_v19 = vld [vmem:[#allocation16 + $0x5b0] ss:$28 sps:$4 sm:$0xff]  }
 0x8cc   :  { %7034 = vpow2.f32 %v3456_v20  ;;  %v6848_v16 = vld [vmem:[#allocation16 + $0x5b4] ss:$28 sps:$4 sm:$0xff]   ;;  %v6851_v18 = vld [vmem:[#allocation16 + $0x5bc] ss:$28 sps:$4 sm:$0xff]  }
 0x8cd   :  { %7036 = vpow2.f32 %v3460_v21  ;;  %v6849_v20 = vld [vmem:[#allocation16 + $0x5b8] ss:$28 sps:$4 sm:$0xff]   ;;  %v6854_v21 = vld [vmem:[#allocation16 + $0x5ec] ss:$28 sps:$4 sm:$0xff]  }
 0x8d5   :  { %v7033_v22 = vpop.eup %7032 }
 0x8d6   :  { %v5709_v23 = vadd.f32 -1.0, %v7033_v22  ;;  %v7035_v24 = vpop.eup %7034  ;;  %v6857_v22 = vld [vmem:[#allocation16 + $0x5f4] ss:$28 sps:$4 sm:$0xff]  }
 0x8d7   :  { %v7037_v25 = vpop.eup %7036  ;;  %v5710_v29 = vadd.f32 -1.0, %v7035_v24  ;;  %v6855_v24 = vld [vmem:[#allocation16 + $0x5f0] ss:$28 sps:$4 sm:$0xff]  }
 0x8d8   :  { %v3466_v30 = vsel %vm3446_vm15, %v3399_v7, %v5709_v23  ;;  %v5712_v31 = vadd.f32 -1.0, %v7037_v25  ;;  %v3035_v7 = vrot.slane %v8062_v1, %v7714_v50  ;;  %v6852_v23 = vld [vmem:[#allocation16 + $0x5e8] ss:$28 sps:$4 sm:$0xff]  }
 0x8d9   :  { %v3467_v32 = vsel %vm3447_vm0, %v3401_v10, %v5710_v29  ;;  %v8074_v37 = vpack.c.bf16 %v3466_v30, %v3466_v30  ;;  %v6834_v10 = vld [vmem:[#allocation16 + $0x540] ss:$28 sps:$4 sm:$0xff]   ;;  %v6863_v29 = vld [vmem:[#allocation16 + $0x62c] ss:$28 sps:$4 sm:$0xff]  }
 0x8da   :  { %v8072_v33 = vpack.c.bf16 %v3467_v32, %v3467_v32  ;;  %v3469_v34 = vsel %vm3449_vm1, %v3442_v11, %v5712_v31  ;;  %v6837_v11 = vld [vmem:[#allocation16 + $0x548] ss:$28 sps:$4 sm:$0xff]   ;;  %v8087_v17 = vadd.f32 %v8070_v6, %v3035_v7  ;;  %v6858_v30 = vld [vmem:[#allocation16 + $0x620] ss:$28 sps:$4 sm:$0xff]   ;;  %v6904_v7 = vld [vmem:[#allocation16 + $0xf4] ss:$28 sps:$4 sm:$0xff]  }
 0x8db   :  { %v8078_v40 = vpack.c.bf16 %v3469_v34, %v3469_v34  ;;  %v6860_v25 = vld [vmem:[#allocation16 + $0x624] ss:$28 sps:$4 sm:$0xff]   ;;  %v6866_v32 = vld [vmem:[#allocation16 + $0x65c] ss:$28 sps:$4 sm:$0xff]  }
 0x8dc   :  { %4951 = vmatprep.mubr.bf16.mxu1 %v8072_v33  ;;  %5033 = vmatprep.mubr.bf16.mxu0 %v8072_v33  ;;  %v3452_v1 = vmin.f32 %v8087_v17, 0.0  ;;  %v6861_v31 = vld [vmem:[#allocation16 + $0x628] ss:$28 sps:$4 sm:$0xff]   ;;  %vm3448_vm2 = vcmp.gt.f32.partialorder %v8087_v17, 0.0 }
 0x8dd   :  { %4952 = vmatmul.mubr.bf16.vlgmr.msra.gmra.mrb[24].mxu1 %v8074_v37  ;;  %5034 = vmatmul.mubr.bf16.vlgmr.msra.gmra.mrb[16].mxu0 %v8074_v37  ;;  %v6869_v34 = vld [vmem:[#allocation16 + $0x664] ss:$28 sps:$4 sm:$0xff]  }
 0x8de   :  { %4961 = vmatpush1.bf16.msra.mxu1 %v6786_v35  ;;  %5043 = vmatpush1.bf16.msra.mxu0 %v6789_v36  ;;  %v3458_v6 = vmul.f32 1.442695, %v3452_v1  ;;  %v6864_v35 = vld [vmem:[#allocation16 + $0x658] ss:$28 sps:$4 sm:$0xff]   ;;  %v6867_v36 = vld [vmem:[#allocation16 + $0x660] ss:$28 sps:$4 sm:$0xff]  }
 0x8df   :  { %4992 = vmatprep.mubr.bf16.mxu1 %v8078_v40  ;;  %5074 = vmatprep.mubr.bf16.mxu0 %v8078_v40  ;;  %v6916_v1 = vld [vmem:[#allocation16 + $0x168] ss:$28 sps:$4 sm:$0xff]  }
 0x8e0   :  { %4962 = vmatprep.subr.bf16.mxu1 %v6794_v38  ;;  %5044 = vmatprep.subr.bf16.mxu0 %v6797_v39  ;;  %7038 = vpow2.f32 %v3458_v6  ;;  %v6872_v38 = vld [vmem:[#allocation16 + $0x694] ss:$28 sps:$4 sm:$0xff]   ;;  %v6875_v39 = vld [vmem:[#allocation16 + $0x69c] ss:$28 sps:$4 sm:$0xff]  }
 0x8e1   :  { %v6924_v6 = vld [vmem:[#allocation16 + $0x1d4] ss:$28 sps:$4 sm:$0xff]  }
 0x8e2   :  { %4963 = vmatpush1.bf16.msra.mxu1 %v6792_v41  ;;  %5045 = vmatpush1.bf16.msra.mxu0 %v6795_v42  ;;  %v6870_v42 = vld [vmem:[#allocation16 + $0x690] ss:$28 sps:$4 sm:$0xff]  }
 0x8e3   :  { %4964 = vmatprep.subr.bf16.mxu1 %v6800_v43  ;;  %5046 = vmatprep.subr.bf16.mxu0 %v6803_v44  ;;  %v6873_v43 = vld [vmem:[#allocation16 + $0x698] ss:$28 sps:$4 sm:$0xff]   ;;  %v6878_v44 = vld [vmem:[#allocation16 + $0x6cc] ss:$28 sps:$4 sm:$0xff]  }
 0x8e6   :  { %4965 = vmatpush1.bf16.msra.mxu1 %v6798_v45  ;;  %5047 = vmatpush1.bf16.msra.mxu0 %v6801_v46  ;;  %v6881_v45 = vld [vmem:[#allocation16 + $0x6d4] ss:$28 sps:$4 sm:$0xff]  }
 0x8e7   :  { %4966 = vmatprep.subr.bf16.mxu1 %v6806_v47  ;;  %5048 = vmatprep.subr.bf16.mxu0 %v6809_v48  ;;  %v6876_v47 = vld [vmem:[#allocation16 + $0x6c8] ss:$28 sps:$4 sm:$0xff]   ;;  %v6879_v48 = vld [vmem:[#allocation16 + $0x6d0] ss:$28 sps:$4 sm:$0xff]  }
 0x8ea   :  { %4967 = vmatpush1.bf16.msra.mxu1 %v6804_v49  ;;  %5049 = vmatpush1.bf16.msra.mxu0 %v6807_v51  ;;  %v7039_v41 = vpop.eup %7038  ;;  %v6884_v49 = vld [vmem:[#allocation16 + $0x14] ss:$28 sps:$4 sm:$0xff]  }
 0x8eb   :  { %4968 = vmatprep.subr.bf16.mxu1 %v6812_v52  ;;  %5050 = vmatprep.subr.bf16.mxu0 %v6815_v54  ;;  %v5711_v46 = vadd.f32 -1.0, %v7039_v41  ;;  %v6885_v51 = vld [vmem:[#allocation16 + $0x1d8] ss:$28 sps:$4 sm:$0xff]   ;;  %v6882_v54 = vld [vmem:[#allocation16 + $0x10] ss:$28 sps:$4 sm:$0xff]  }
 0x8ec   :  { %v6941_v41 = vld [vmem:[#allocation16 + $0x440] ss:$28 sps:$4 sm:$0xff]  }
 0x8ed   :  { %v3468_v52 = vsel %vm3448_vm2, %v8087_v17, %v5711_v46  ;;  %v6907_v17 = vld [vmem:[#allocation16 + $0x128] ss:$28 sps:$4 sm:$0xff]  }
 0x8ee   :  { %4969 = vmatpush1.bf16.msra.mxu1 %v6810_v55  ;;  %5051 = vmatpush1.bf16.msra.mxu0 %v6813_v56  ;;  %v8092_v55 = vpack.c.bf16 %v3468_v52, %v3468_v52  ;;  %v6886_v56 = vld [vmem:[#allocation16 + $0x18] ss:$28 sps:$4 sm:$0xff]   ;;  %v6949_v46 = vld [vmem:[#allocation16 + $0x2ec] ss:$28 sps:$4 sm:$0xff]  }
 0x8ef   :  { %4970 = vmatprep.subr.bf16.mxu1 %v6818_v57  ;;  %5052 = vmatprep.subr.bf16.mxu0 %v6821_v58  ;;  %v6889_v57 = vld [vmem:[#allocation16 + $0x4c] ss:$28 sps:$4 sm:$0xff]  }
 0x8f0   :  { %v6890_v58 = vld [vmem:[#allocation16 + $0x210] ss:$28 sps:$4 sm:$0xff]   ;;  %v6955_v52 = vld [vmem:[#allocation16 + $0x6a8] ss:$28 sps:$4 sm:$0xff]  }
 0x8f2   :  { %4971 = vmatpush1.bf16.msra.mxu1 %v6816_v59  ;;  %5053 = vmatpush1.bf16.msra.mxu0 %v6819_v60  ;;  %v6887_v59 = vld [vmem:[#allocation16 + $0x48] ss:$28 sps:$4 sm:$0xff]   ;;  %v6891_v60 = vld [vmem:[#allocation16 + $0x50] ss:$28 sps:$4 sm:$0xff]  }
 0x8f3   :  { %4972 = vmatprep.subr.bf16.mxu1 %v6824_v61  ;;  %5054 = vmatprep.subr.bf16.mxu0 %v6827_v62  ;;  %v6894_v61 = vld [vmem:[#allocation16 + $0x84] ss:$28 sps:$4 sm:$0xff]  }
 0x8f4   :  { %v6895_v62 = vld [vmem:[#allocation16 + $0x248] ss:$28 sps:$4 sm:$0xff]  }
 0x8f6   :  { %4973 = vmatpush1.bf16.msra.mxu1 %v6822_v63  ;;  %5055 = vmatpush1.bf16.msra.mxu0 %v6825_v0  ;;  %v6892_v63 = vld [vmem:[#allocation16 + $0x80] ss:$28 sps:$4 sm:$0xff]   ;;  %v6896_v0 = vld [vmem:[#allocation16 + $0x88] ss:$28 sps:$4 sm:$0xff]  }
 0x8f7   :  { %4974 = vmatprep.subr.bf16.mxu1 %v6830_v2  ;;  %5056 = vmatprep.subr.bf16.mxu0 %v6833_v3  ;;  %v6899_v2 = vld [vmem:[#allocation16 + $0xbc] ss:$28 sps:$4 sm:$0xff]  }
 0x8f8   :  { %v6900_v3 = vld [vmem:[#allocation16 + $0x280] ss:$28 sps:$4 sm:$0xff]  }
 0x8fa   :  { %4975 = vmatpush1.bf16.msra.mxu1 %v6828_v4  ;;  %5057 = vmatpush1.bf16.msra.mxu0 %v6831_v5  ;;  %v6897_v4 = vld [vmem:[#allocation16 + $0xb8] ss:$28 sps:$4 sm:$0xff]   ;;  %v6901_v5 = vld [vmem:[#allocation16 + $0xc0] ss:$28 sps:$4 sm:$0xff]  }
 0x8fb   :  { %4976 = vmatprep.subr.bf16.mxu1 %v6836_v8  ;;  %5058 = vmatprep.subr.bf16.mxu0 %v6839_v9  ;;  %v6902_v8 = vld [vmem:[#allocation16 + $0xf0] ss:$28 sps:$4 sm:$0xff]   ;;  %v6906_v9 = vld [vmem:[#allocation16 + $0xf8] ss:$28 sps:$4 sm:$0xff]  }
 0x8fe   :  { %4977 = vmatpush1.bf16.msra.mxu1 %v6834_v10  ;;  %5059 = vmatpush1.bf16.msra.mxu0 %v6837_v11  ;;  %v6909_v10 = vld [vmem:[#allocation16 + $0x12c] ss:$28 sps:$4 sm:$0xff]  }
 0x8ff   :  { %4978 = vmatprep.subr.bf16.mxu1 %v6842_v12  ;;  %5060 = vmatprep.subr.bf16.mxu0 %v6845_v13  ;;  %v6910_v11 = vld [vmem:[#allocation16 + $0x2f0] ss:$28 sps:$4 sm:$0xff]   ;;  %v6914_v13 = vld [vmem:[#allocation16 + $0x164] ss:$28 sps:$4 sm:$0xff]  }
 0x900   :  { %v6911_v12 = vld [vmem:[#allocation16 + $0x130] ss:$28 sps:$4 sm:$0xff]  }
 0x902   :  { %4979 = vmatpush1.bf16.msra.mxu1 %v6840_v14  ;;  %5061 = vmatpush1.bf16.msra.mxu0 %v6843_v15  ;;  %v6915_v14 = vld [vmem:[#allocation16 + $0x328] ss:$28 sps:$4 sm:$0xff]   ;;  %v6912_v15 = vld [vmem:[#allocation16 + $0x160] ss:$28 sps:$4 sm:$0xff]  }
 0x903   :  { %4980 = vmatprep.subr.bf16.mxu1 %v6848_v16  ;;  %5062 = vmatprep.subr.bf16.mxu0 %v6851_v18  ;;  %v6919_v16 = vld [vmem:[#allocation16 + $0x19c] ss:$28 sps:$4 sm:$0xff]  }
 0x904   :  { %v6920_v18 = vld [vmem:[#allocation16 + $0x360] ss:$28 sps:$4 sm:$0xff]  }
 0x906   :  { %4981 = vmatpush1.bf16.msra.mxu1 %v6846_v19  ;;  %5063 = vmatpush1.bf16.msra.mxu0 %v6849_v20  ;;  %v6917_v19 = vld [vmem:[#allocation16 + $0x198] ss:$28 sps:$4 sm:$0xff]   ;;  %v6921_v20 = vld [vmem:[#allocation16 + $0x1a0] ss:$28 sps:$4 sm:$0xff]  }
 0x907   :  { %4982 = vmatprep.subr.bf16.mxu1 %v6854_v21  ;;  %5064 = vmatprep.subr.bf16.mxu0 %v6857_v22  ;;  %v6925_v21 = vld [vmem:[#allocation16 + $0x558] ss:$28 sps:$4 sm:$0xff]   ;;  %v6922_v22 = vld [vmem:[#allocation16 + $0x1d0] ss:$28 sps:$4 sm:$0xff]  }
 0x90a   :  { %4983 = vmatpush1.bf16.msra.mxu1 %v6852_v23  ;;  %5065 = vmatpush1.bf16.msra.mxu0 %v6855_v24  ;;  %v6926_v23 = vld [vmem:[#allocation16 + $0x398] ss:$28 sps:$4 sm:$0xff]   ;;  %v6929_v24 = vld [vmem:[#allocation16 + $0x20c] ss:$28 sps:$4 sm:$0xff]  }
 0x90b   :  { %4984 = vmatprep.subr.bf16.mxu1 %v6860_v25  ;;  %5066 = vmatprep.subr.bf16.mxu0 %v6863_v29  ;;  %v6930_v25 = vld [vmem:[#allocation16 + $0x590] ss:$28 sps:$4 sm:$0xff]   ;;  %v6927_v29 = vld [vmem:[#allocation16 + $0x208] ss:$28 sps:$4 sm:$0xff]  }
 0x90e   :  { %4985 = vmatpush1.bf16.msra.mxu1 %v6858_v30  ;;  %5067 = vmatpush1.bf16.msra.mxu0 %v6861_v31  ;;  %v6931_v30 = vld [vmem:[#allocation16 + $0x3d0] ss:$28 sps:$4 sm:$0xff]   ;;  %v6934_v31 = vld [vmem:[#allocation16 + $0x244] ss:$28 sps:$4 sm:$0xff]  }
 0x90f   :  { %4986 = vmatprep.subr.bf16.mxu1 %v6866_v32  ;;  %5068 = vmatprep.subr.bf16.mxu0 %v6869_v34  ;;  %v6935_v32 = vld [vmem:[#allocation16 + $0x5c8] ss:$28 sps:$4 sm:$0xff]   ;;  %v6932_v34 = vld [vmem:[#allocation16 + $0x240] ss:$28 sps:$4 sm:$0xff]  }
 0x912   :  { %4987 = vmatpush1.bf16.msra.mxu1 %v6864_v35  ;;  %5069 = vmatpush1.bf16.msra.mxu0 %v6867_v36  ;;  %v6936_v35 = vld [vmem:[#allocation16 + $0x408] ss:$28 sps:$4 sm:$0xff]   ;;  %v6939_v36 = vld [vmem:[#allocation16 + $0x27c] ss:$28 sps:$4 sm:$0xff]  }
 0x913   :  { %4988 = vmatprep.subr.bf16.mxu1 %v6872_v38  ;;  %5070 = vmatprep.subr.bf16.mxu0 %v6875_v39  ;;  %v6940_v38 = vld [vmem:[#allocation16 + $0x600] ss:$28 sps:$4 sm:$0xff]   ;;  %v6937_v39 = vld [vmem:[#allocation16 + $0x278] ss:$28 sps:$4 sm:$0xff]  }
 0x916   :  { %4989 = vmatpush1.bf16.msra.mxu1 %v6870_v42  ;;  %5071 = vmatpush1.bf16.msra.mxu0 %v6873_v43  ;;  %v6944_v42 = vld [vmem:[#allocation16 + $0x2b4] ss:$28 sps:$4 sm:$0xff]  }
 0x917   :  { %4990 = vmatprep.subr.bf16.mxu1 %v6878_v44  ;;  %5072 = vmatprep.subr.bf16.mxu0 %v6881_v45  ;;  %v6945_v43 = vld [vmem:[#allocation16 + $0x638] ss:$28 sps:$4 sm:$0xff]   ;;  %v6942_v44 = vld [vmem:[#allocation16 + $0x2b0] ss:$28 sps:$4 sm:$0xff]  }
 0x918   :  { %v6946_v45 = vld [vmem:[#allocation16 + $0x478] ss:$28 sps:$4 sm:$0xff]  }
 0x91a   :  { %4991 = vmatpush1.bf16.msra.mxu1 %v6876_v47  ;;  %5073 = vmatpush1.bf16.msra.mxu0 %v6879_v48  ;;  %v6950_v47 = vld [vmem:[#allocation16 + $0x670] ss:$28 sps:$4 sm:$0xff]   ;;  %v6947_v48 = vld [vmem:[#allocation16 + $0x2e8] ss:$28 sps:$4 sm:$0xff]  }
 0x91b   :  { %5083 = vmatprep.subr.bf16.mxu1 %v6884_v49  ;;  %5970 = vmatprep.subr.bf16.mxu0 %v6885_v51  ;;  %v6951_v49 = vld [vmem:[#allocation16 + $0x4b0] ss:$28 sps:$4 sm:$0xff]   ;;  %v6954_v51 = vld [vmem:[#allocation16 + $0x324] ss:$28 sps:$4 sm:$0xff]  }
 0x91d   :  { %4993 = vmatmul.mubr.bf16.vlgmr.msra.gmra.mrb[24].mxu1 %v8092_v55  ;;  %5075 = vmatmul.mubr.bf16.vlgmr.msra.gmra.mrb[16].mxu0 %v8092_v55 }
 0x91e   :  { %5084 = vmatpush1.bf16.msra.mxu1 %v6882_v54  ;;  %5115 = vmatprep.mubr.bf16.mxu1 %v8072_v33  ;;  %v6952_v54 = vld [vmem:[#allocation16 + $0x320] ss:$28 sps:$4 sm:$0xff]  }
 0x91f   :  { %5971 = vmatpush3.bf16.msra.mxu0 %v6886_v56  ;;  %5197 = vmatprep.mubr.bf16.mxu0 %v8072_v33  ;;  %v6905_v33 = vld [vmem:[#allocation16 + $0x2b8] ss:$28 sps:$4 sm:$0xff]   ;;  %v6956_v56 = vld [vmem:[#allocation16 + $0x4e8] ss:$28 sps:$4 sm:$0xff]  }
 0x920   :  { %5085 = vmatprep.subr.bf16.mxu1 %v6889_v57  ;;  %5972 = vmatprep.subr.bf16.mxu0 %v6890_v58  ;;  %v6959_v57 = vld [vmem:[#allocation16 + $0x35c] ss:$28 sps:$4 sm:$0xff]  }
 0x921   :  { %v6960_v58 = vld [vmem:[#allocation16 + $0x6e0] ss:$28 sps:$4 sm:$0xff]  }
 0x922   :  { %5086 = vmatpush1.bf16.msra.mxu1 %v6887_v59  ;;  %v6957_v59 = vld [vmem:[#allocation16 + $0x358] ss:$28 sps:$4 sm:$0xff]  }
 0x923   :  { %5973 = vmatpush3.bf16.msra.mxu0 %v6891_v60  ;;  %5087 = vmatprep.subr.bf16.mxu1 %v6894_v61  ;;  %v6961_v60 = vld [vmem:[#allocation16 + $0x520] ss:$28 sps:$4 sm:$0xff]   ;;  %v6964_v61 = vld [vmem:[#allocation16 + $0x394] ss:$28 sps:$4 sm:$0xff]  }
 0x924   :  { %5974 = vmatprep.subr.bf16.mxu0 %v6895_v62  ;;  %v6962_v62 = vld [vmem:[#allocation16 + $0x390] ss:$28 sps:$4 sm:$0xff]  }
 0x926   :  { %5088 = vmatpush1.bf16.msra.mxu1 %v6892_v63  ;;  %v6967_v63 = vld [vmem:[#allocation16 + $0x3cc] ss:$28 sps:$4 sm:$0xff]  }
 0x927   :  { %5975 = vmatpush3.bf16.msra.mxu0 %v6896_v0  ;;  %5089 = vmatprep.subr.bf16.mxu1 %v6899_v2  ;;  %v6965_v0 = vld [vmem:[#allocation16 + $0x3c8] ss:$28 sps:$4 sm:$0xff]  }
 0x928   :  { %5976 = vmatprep.subr.bf16.mxu0 %v6900_v3  ;;  %v6970_v2 = vld [vmem:[#allocation16 + $0x404] ss:$28 sps:$4 sm:$0xff]  }
 0x929   :  { %v6968_v3 = vld [vmem:[#allocation16 + $0x400] ss:$28 sps:$4 sm:$0xff]  }
 0x92a   :  { %5090 = vmatpush1.bf16.msra.mxu1 %v6897_v4  ;;  %v6973_v4 = vld [vmem:[#allocation16 + $0x43c] ss:$28 sps:$4 sm:$0xff]  }
 0x92b   :  { %5977 = vmatpush3.bf16.msra.mxu0 %v6901_v5  ;;  %5091 = vmatprep.subr.bf16.mxu1 %v6904_v7  ;;  %v6971_v5 = vld [vmem:[#allocation16 + $0x438] ss:$28 sps:$4 sm:$0xff]  }
 0x92c   :  { %5978 = vmatprep.subr.bf16.mxu0 %v6905_v33  ;;  %v6976_v7 = vld [vmem:[#allocation16 + $0x474] ss:$28 sps:$4 sm:$0xff]  }
 0x92d   :  { %v6974_v33 = vld [vmem:[#allocation16 + $0x470] ss:$28 sps:$4 sm:$0xff]  }
 0x92e   :  { %5092 = vmatpush1.bf16.msra.mxu1 %v6902_v8  ;;  %v6977_v8 = vld [vmem:[#allocation16 + $0x4a8] ss:$28 sps:$4 sm:$0xff]  }
 0x92f   :  { %5979 = vmatpush3.bf16.msra.mxu0 %v6906_v9  ;;  %5093 = vmatprep.subr.bf16.mxu1 %v6909_v10  ;;  %v6982_v9 = vld [vmem:[#allocation16 + $0x4e4] ss:$28 sps:$4 sm:$0xff]   ;;  %v6985_v10 = vld [vmem:[#allocation16 + $0x51c] ss:$28 sps:$4 sm:$0xff]  }
 0x930   :  { %5980 = vmatprep.subr.bf16.mxu0 %v6910_v11  ;;  %v6983_v11 = vld [vmem:[#allocation16 + $0x518] ss:$28 sps:$4 sm:$0xff]  }
 0x932   :  { %5094 = vmatpush1.bf16.msra.mxu1 %v6907_v17  ;;  %v6988_v17 = vld [vmem:[#allocation16 + $0x554] ss:$28 sps:$4 sm:$0xff]  }
 0x933   :  { %5981 = vmatpush3.bf16.msra.mxu0 %v6911_v12  ;;  %5095 = vmatprep.subr.bf16.mxu1 %v6914_v13  ;;  %v6986_v12 = vld [vmem:[#allocation16 + $0x550] ss:$28 sps:$4 sm:$0xff]  }
 0x934   :  { %5982 = vmatprep.subr.bf16.mxu0 %v6915_v14  ;;  %v6991_v13 = vld [vmem:[#allocation16 + $0x58c] ss:$28 sps:$4 sm:$0xff]  }
 0x935   :  { %v6989_v14 = vld [vmem:[#allocation16 + $0x588] ss:$28 sps:$4 sm:$0xff]  }
 0x936   :  { %5096 = vmatpush1.bf16.msra.mxu1 %v6912_v15  ;;  %v6994_v15 = vld [vmem:[#allocation16 + $0x5c4] ss:$28 sps:$4 sm:$0xff]  }
 0x937   :  { %5983 = vmatpush3.bf16.msra.mxu0 %v6916_v1  ;;  %5097 = vmatprep.subr.bf16.mxu1 %v6919_v16  ;;  %v6992_v1 = vld [vmem:[#allocation16 + $0x5c0] ss:$28 sps:$4 sm:$0xff]  }
 0x938   :  { %5984 = vmatprep.subr.bf16.mxu0 %v6920_v18  ;;  %v6997_v16 = vld [vmem:[#allocation16 + $0x5fc] ss:$28 sps:$4 sm:$0xff]  }
 0x939   :  { %v6995_v18 = vld [vmem:[#allocation16 + $0x5f8] ss:$28 sps:$4 sm:$0xff]  }
 0x93a   :  { %5098 = vmatpush1.bf16.msra.mxu1 %v6917_v19  ;;  %v7000_v19 = vld [vmem:[#allocation16 + $0x634] ss:$28 sps:$4 sm:$0xff]  }
 0x93b   :  { %5985 = vmatpush3.bf16.msra.mxu0 %v6921_v20  ;;  %5099 = vmatprep.subr.bf16.mxu1 %v6924_v6  ;;  %v6998_v20 = vld [vmem:[#allocation16 + $0x630] ss:$28 sps:$4 sm:$0xff]  }
 0x93c   :  { %5992 = vmatprep.subr.bf16.mxu0 %v6925_v21  ;;  %v7003_v6 = vld [vmem:[#allocation16 + $0x66c] ss:$28 sps:$4 sm:$0xff]  }
 0x93d   :  { %v7001_v21 = vld [vmem:[#allocation16 + $0x668] ss:$28 sps:$4 sm:$0xff]  }
 0x93e   :  { %5198 = vmatmul.mubr.bf16.vlgmr.msra.gmra.mrb[20].mxu0 %v8074_v37  ;;  %5100 = vmatpush1.bf16.msra.mxu1 %v6922_v22  ;;  %v7006_v22 = vld [vmem:[#allocation16 + $0x6a4] ss:$28 sps:$4 sm:$0xff]  }
 0x93f   :  { %5993 = vmatpush3.bf16.msra.mxu0 %v6926_v23  ;;  %5237 = vmatprep.mubr.bf16.mxu0 %v8078_v40  ;;  %v7004_v23 = vld [vmem:[#allocation16 + $0x6a0] ss:$28 sps:$4 sm:$0xff]  }
 0x940   :  { %5101 = vmatprep.subr.bf16.mxu1 %v6929_v24  ;;  %5994 = vmatprep.subr.bf16.mxu0 %v6930_v25  ;;  %v7009_v24 = vld [vmem:[#allocation16 + $0x6dc] ss:$28 sps:$4 sm:$0xff]  }
 0x941   :  { %v7007_v25 = vld [vmem:[#allocation16 + $0x6d8] ss:$28 sps:$4 sm:$0xff]  }
 0x942   :  { %5102 = vmatpush1.bf16.msra.mxu1 %v6927_v29  ;;  %v8104_v29 = vld [vmem:[#allocation18] sm:$0xff] }
 0x943   :  { %5995 = vmatpush3.bf16.msra.mxu0 %v6931_v30  ;;  %5103 = vmatprep.subr.bf16.mxu1 %v6934_v31  ;;  %v3735_v30 = vrot.slane %v8104_v29, %v7703_v27  ;;  %v3743_v31 = vrot.slane %v8104_v29, %v7714_v50 }
 0x944   :  { %5996 = vmatprep.subr.bf16.mxu0 %v6935_v32  ;;  %v3739_v32 = vrot.slane %v8104_v29, %v7706_v28 }
 0x946   :  { %5104 = vmatpush1.bf16.msra.mxu1 %v6932_v34  ;;  %v3747_v34 = vrot.slane %v8104_v29, %v7720_v53 }
 0x947   :  { %5997 = vmatpush3.bf16.msra.mxu0 %v6936_v35  ;;  %5105 = vmatprep.subr.bf16.mxu1 %v6939_v36 }
 0x948   :  { %5998 = vmatprep.subr.bf16.mxu0 %v6940_v38 }
 0x94a   :  { %5106 = vmatpush1.bf16.msra.mxu1 %v6937_v39 }
 0x94b   :  { %5999 = vmatpush3.bf16.msra.mxu0 %v6941_v41  ;;  %5107 = vmatprep.subr.bf16.mxu1 %v6944_v42 }
 0x94c   :  { %6000 = vmatprep.subr.bf16.mxu0 %v6945_v43 }
 0x94e   :  { %5108 = vmatpush1.bf16.msra.mxu1 %v6942_v44 }
 0x94f   :  { %6001 = vmatpush3.bf16.msra.mxu0 %v6946_v45  ;;  %5109 = vmatprep.subr.bf16.mxu1 %v6949_v46 }
 0x950   :  { %6002 = vmatprep.subr.bf16.mxu0 %v6950_v47 }
 0x952   :  { %5110 = vmatpush1.bf16.msra.mxu1 %v6947_v48 }
 0x953   :  { %6003 = vmatpush3.bf16.msra.mxu0 %v6951_v49  ;;  %5111 = vmatprep.subr.bf16.mxu1 %v6954_v51 }
 0x954   :  { %6004 = vmatprep.subr.bf16.mxu0 %v6955_v52 }
 0x956   :  { %5112 = vmatpush1.bf16.msra.mxu1 %v6952_v54 }
 0x957   :  { %6005 = vmatpush3.bf16.msra.mxu0 %v6956_v56  ;;  %5113 = vmatprep.subr.bf16.mxu1 %v6959_v57 }
 0x958   :  { %6006 = vmatprep.subr.bf16.mxu0 %v6960_v58 }
 0x95a   :  { %5114 = vmatpush1.bf16.msra.mxu1 %v6957_v59 }
 0x95b   :  { %6007 = vmatpush3.bf16.msra.mxu0 %v6961_v60  ;;  %5124 = vmatprep.subr.bf16.mxu1 %v6964_v61 }
 0x95d   :  { %5116 = vmatmul.mubr.bf16.vlgmr.msra.gmra.mrb[28].mxu1 %v8074_v37  ;;  %v6979_v37 = vld [vmem:[#allocation16 + $0x4ac] ss:$28 sps:$4 sm:$0xff]  }
 0x95e   :  { %5238 = vmatmul.mubr.bf16.vlgmr.msra.gmra.mrb[24].mxu0 %v8092_v55  ;;  %5125 = vmatpush1.bf16.msra.mxu1 %v6962_v62 }
 0x95f   :  { %5156 = vmatprep.mubr.bf16.mxu1 %v8078_v40  ;;  %5126 = vmatprep.subr.bf16.mxu1 %v6967_v63  ;;  %v6980_v40 = vld [vmem:[#allocation16 + $0x4e0] ss:$28 sps:$4 sm:$0xff]  }
 0x962   :  { %5127 = vmatpush1.bf16.msra.mxu1 %v6965_v0 }
 0x963   :  { %5128 = vmatprep.subr.bf16.mxu1 %v6970_v2 }
 0x966   :  { %5129 = vmatpush1.bf16.msra.mxu1 %v6968_v3 }
 0x967   :  { %5130 = vmatprep.subr.bf16.mxu1 %v6973_v4 }
 0x96a   :  { %5131 = vmatpush1.bf16.msra.mxu1 %v6971_v5 }
 0x96b   :  { %5132 = vmatprep.subr.bf16.mxu1 %v6976_v7 }
 0x96e   :  { %5133 = vmatpush1.bf16.msra.mxu1 %v6974_v33 }
 0x96f   :  { %5134 = vmatprep.subr.bf16.mxu1 %v6979_v37 }
 0x972   :  { %5135 = vmatpush1.bf16.msra.mxu1 %v6977_v8  ;;  %v3758_v8 = vsub.s32 6, %v7700_v26 }
 0x973   :  { %5136 = vmatprep.subr.bf16.mxu1 %v6982_v9 }
 0x974   :  { %v3759_v9 = vrot.slane %v8104_v29, %v3758_v8 }
 0x976   :  { %5137 = vmatpush1.bf16.msra.mxu1 %v6980_v40 }
 0x977   :  { %5138 = vmatprep.subr.bf16.mxu1 %v6985_v10 }
 0x97a   :  { %5139 = vmatpush1.bf16.msra.mxu1 %v6983_v11 }
 0x97b   :  { %5140 = vmatprep.subr.bf16.mxu1 %v6988_v17 }
 0x97e   :  { %5141 = vmatpush1.bf16.msra.mxu1 %v6986_v12 }
 0x97f   :  { %5142 = vmatprep.subr.bf16.mxu1 %v6991_v13 }
 0x982   :  { %5143 = vmatpush1.bf16.msra.mxu1 %v6989_v14 }
 0x983   :  { %5144 = vmatprep.subr.bf16.mxu1 %v6994_v15 }
 0x986   :  { %5145 = vmatpush1.bf16.msra.mxu1 %v6992_v1 }
 0x987   :  { %5146 = vmatprep.subr.bf16.mxu1 %v6997_v16 }
 0x98a   :  { %5147 = vmatpush1.bf16.msra.mxu1 %v6995_v18 }
 0x98b   :  { %5148 = vmatprep.subr.bf16.mxu1 %v7000_v19 }
 0x98e   :  { %5149 = vmatpush1.bf16.msra.mxu1 %v6998_v20  ;;  %v3750_v20 = vsub.s32 4, %v7700_v26 }
 0x98f   :  { %5150 = vmatprep.subr.bf16.mxu1 %v7003_v6  ;;  %v3754_v6 = vsub.s32 5, %v7700_v26 }
 0x992   :  { %5151 = vmatpush1.bf16.msra.mxu1 %v7001_v21  ;;  %v3751_v21 = vrot.slane %v8104_v29, %v3750_v20 }
 0x993   :  { %5152 = vmatprep.subr.bf16.mxu1 %v7006_v22  ;;  %v3755_v22 = vrot.slane %v8104_v29, %v3754_v6 }
 0x996   :  { %5153 = vmatpush1.bf16.msra.mxu1 %v7004_v23 }
 0x997   :  { %5154 = vmatprep.subr.bf16.mxu1 %v7009_v24 }
 0x99a   :  { %5155 = vmatpush1.bf16.msra.mxu1 %v7007_v25 }
 0x99d   :  { %5157 = vmatmul.mubr.bf16.vlgmr.msra.gmra.mrb[28].mxu1 %v8092_v55 }
 0x9f0   :  { %v4994_v35 = vpop.f32.mrb[24].mxu1  ;;  %v5076_v36 = vpop.f32.mrb[16].mxu0 }
 0x9f1   :  { %v6048_v38 = vadd.f32 %v4994_v35, %v3735_v30  ;;  %v6050_v39 = vadd.f32 %v5076_v36, %v3743_v31  ;;  %v4996_v41 = vpop.f32.mrb[25].mxu1  ;;  %v5078_v55 = vpop.f32.mrb[17].mxu0 }
 0x9f2   :  { %v6049_v42 = vadd.f32 %v4996_v41, %v3739_v32  ;;  %v6051_v43 = vadd.f32 %v5078_v55, %v3747_v34  ;;  %v4998_v44 = vpop.f32.mrb[26].mxu1  ;;  %v5080_v45 = vpop.f32.mrb[18].mxu0 }
 0x9f3   :  { %v5245_v27 = vsub.f32 0.0, %v6048_v38  ;;  %v5247_v46 = vsub.f32 0.0, %v6050_v39  ;;  %v4999_v47 = vpop.f32.mrb[27].mxu1  ;;  %v5081_v50 = vpop.f32.mrb[19].mxu0 }
 0x9f4   :  { %v5246_v48 = vsub.f32 0.0, %v6049_v42  ;;  %v5248_v49 = vsub.f32 0.0, %v6051_v43 }
 0x9f5   :  { %v5252_v28 = vmul.f32 1.442695, %v5245_v27  ;;  %v5256_v51 = vmul.f32 1.442695, %v5247_v46 }
 0x9f6   :  { %v5254_v52 = vmul.f32 1.442695, %v5246_v48  ;;  %v5258_v53 = vmul.f32 1.442695, %v5248_v49 }
 0x9f7   :  { %7040 = vpow2.f32 %v5252_v28 }
 0x9f8   :  { %7042 = vpow2.f32 %v5256_v51 }
 0x9f9   :  { %7044 = vpow2.f32 %v5254_v52 }
 0x9fa   :  { %7046 = vpow2.f32 %v5258_v53 }
 0xa01   :  { %v7041_v54 = vpop.eup %7040 }
 0xa02   :  { %v7043_v56 = vpop.eup %7042  ;;  %v5266_v57 = vadd.f32 1.0, %v7041_v54 }
 0xa03   :  { %v7045_v58 = vpop.eup %7044  ;;  %v5268_v59 = vadd.f32 1.0, %v7043_v56 }
 0xa04   :  { %v7047_v60 = vpop.eup %7046  ;;  %7048 = vrcp.f32 %v5266_v57  ;;  %v5267_v61 = vadd.f32 1.0, %v7045_v58 }
 0xa05   :  { %7050 = vrcp.f32 %v5268_v59  ;;  %v5269_v62 = vadd.f32 1.0, %v7047_v60 }
 0xa06   :  { %7052 = vrcp.f32 %v5267_v61 }
 0xa07   :  { %7054 = vrcp.f32 %v5269_v62 }
 0xa0e   :  { %v7049_v63 = vpop.eup %7048 }
 0xa0f   :  { %v7051_v0 = vpop.eup %7050  ;;  %5280 = vst [vmem:[%s8159_s18] sm:$0xff] %v7049_v63 }
 0xa10   :  { %v7053_v2 = vpop.eup %7052  ;;  %5282 = vst [vmem:[%s8159_s18 + $0x10] sm:$0xff] %v7051_v0 }
 0xa11   :  { %v7055_v3 = vpop.eup %7054  ;;  %5281 = vst [vmem:[%s8159_s18 + $0x8] sm:$0xff] %v7053_v2  ;;  %v5986_v4 = vpop.f32.mrb[20].mxu0 }
 0xa12   :  { %5283 = vst [vmem:[%s8159_s18 + $0x18] sm:$0xff] %v7055_v3  ;;  %v5987_v5 = vpop.f32.mrb[21].mxu0 }
 0xa13   :  { %v5988_v7 = vadd.f32 %v5987_v5, %v5986_v4  ;;  %v5989_v33 = vpop.f32.mrb[22].mxu0 }
 0xa14   :  { %v5990_v37 = vpop.f32.mrb[23].mxu0 }
 0xa15   :  { %v5200_v11 = vadd.f32 %v5988_v7, %v3759_v9 }
 0xa31   :  { %v6008_v40 = vpop.f32.mrb[24].mxu0 }
 0xa32   :  { %v6009_v10 = vpop.f32.mrb[25].mxu0 }
 0xa33   :  { %v6010_v17 = vadd.f32 %v6009_v10, %v6008_v40  ;;  %v6011_v12 = vpop.f32.mrb[26].mxu0 }
 0xa34   :  { %v6012_v13 = vpop.f32.mrb[27].mxu0 }
 0xa35   :  { %v5240_v14 = vadd.f32 %v6010_v17, %v5200_v11 }
 0xa37   :  { %v5251_v15 = vsub.f32 0.0, %v5240_v14 }
 0xa39   :  { %v5264_v1 = vmul.f32 1.442695, %v5251_v15 }
 0xa3b   :  { %7056 = vpow2.f32 %v5264_v1 }
 0xa45   :  { %v7057_v16 = vpop.eup %7056 }
 0xa46   :  { %v5272_v18 = vadd.f32 1.0, %v7057_v16 }
 0xa48   :  { %7058 = vrcp.f32 %v5272_v18 }
 0xa52   :  { %v7059_v19 = vpop.eup %7058 }
 0xa53   :  { %5286 = vst [vmem:[%s8159_s18 + $0x30] sm:$0xff] %v7059_v19 }
 0xa70   :  { %v5158_v23 = vpop.f32.mrb[28].mxu1 }
 0xa71   :  { %v6052_v24 = vadd.f32 %v5158_v23, %v3751_v21  ;;  %v5160_v25 = vpop.f32.mrb[29].mxu1 }
 0xa72   :  { %v6053_v30 = vadd.f32 %v5160_v25, %v3755_v22  ;;  %v5162_v31 = vpop.f32.mrb[30].mxu1 }
 0xa73   :  { %v5249_v32 = vsub.f32 0.0, %v6052_v24  ;;  %v5163_v34 = vpop.f32.mrb[31].mxu1 }
 0xa74   :  { %v5250_v35 = vsub.f32 0.0, %v6053_v30 }
 0xa75   :  { %v5260_v36 = vmul.f32 1.442695, %v5249_v32 }
 0xa76   :  { %v5262_v38 = vmul.f32 1.442695, %v5250_v35 }
 0xa77   :  { %7060 = vpow2.f32 %v5260_v36 }
 0xa78   :  { %7062 = vpow2.f32 %v5262_v38 }
 0xa81   :  { %v7061_v39 = vpop.eup %7060 }
 0xa82   :  { %v7063_v41 = vpop.eup %7062  ;;  %v5270_v55 = vadd.f32 1.0, %v7061_v39 }
 0xa83   :  { %v5271_v26 = vadd.f32 1.0, %v7063_v41 }
 0xa84   :  { %7064 = vrcp.f32 %v5270_v55 }
 0xa85   :  { %7066 = vrcp.f32 %v5271_v26 }
 0xa8e   :  { %v7065_v42 = vpop.eup %7064 }
 0xa8f   :  { %v7067_v29 = vpop.eup %7066  ;;  %5284 = vst [vmem:[%s8159_s18 + $0x20] sm:$0xff] %v7065_v42 }
 0xa90   :  { %5285 = vst [vmem:[%s8159_s18 + $0x28] sm:$0xff] %v7067_v29 }
 0xa91   :  { %5297 = vsyncpa [#allocation3], 1 }
 0xa92   :  { %5298 = vsyncpa [#allocation5], 1 }
 0xa93   :  { %5299 = vsyncpa [#allocation8], 1 }
 0xa94   :  { %5300 = vsyncpa [#allocation11], 1 }
 0xa95   :  { %5301 = vsyncpa [#allocation14], 1 }
 0xa96   :  { %5302 = vsyncpa [#allocation17], 1 }

</bundles_post_ra>
